<compile_context>
chip_gen: v6e
topology: v6e:2x2x1
jax: 0.10.0
libtpu: 0.0.40
codegen_flags: <defaults>
</compile_context>

<pallas_src>
import functools
import jax
import jax.numpy as jnp
from jax import lax
from jax.experimental import pallas as pl
from jax.experimental.pallas import tpu as pltpu

# ---- synthetic config (stands in for cfg.* in the reference code) ----
FEATURE_CHANNEL = 32      # cfg.BIIA.FEATURE_CHANNEL
HIDDEN = 32
ALPHA_1 = 0.5             # cfg.BIIA.ALPHA1
ALPHA_2 = 0.5             # cfg.BIIA.ALPHA2
ITERATION = 3             # cfg.BIIA.ITERATION_
VOTING_ALPHA = 20.0       # FullPro voting temperature
SINKHORN_ITERS = 10


# --------------------------- fused kernel ------------------------------------

def _matching_kernel(x_all_ref, adj_all_ref, w1_ref, b1_ref, w2_ref, b2_ref,
                     ns_ref, nt_ref, prob_ref, bm_ref):
    # x_all_ref  : (2B, N, Cin)   source graphs stacked on top of target graphs
    # adj_all_ref: (2B, N, N)
    # w1/b1/w2/b2: encoder weights
    # ns_ref/nt_ref: (B, 1, 1) int32 node counts
    # prob_ref/bm_ref: (B, N, N) outputs
    two_b, n, cin = x_all_ref.shape
    bsz = two_b // 2

    # ---- GNN encoder (surrogate), batched over {source, target} x batch -----
    x = x_all_ref[...]
    a = adj_all_ref[...]
    h = x + jnp.einsum('bij,bjc->bic', a, x,
                       preferred_element_type=jnp.float32)          # (2B,N,Cin)
    hf = h.reshape(two_b * n, cin)                                   # one MXU dot
    hf = jnp.maximum(
        jnp.dot(hf, w1_ref[...], preferred_element_type=jnp.float32)
        + b1_ref[...], 0.0)
    zf = jnp.dot(hf, w2_ref[...], preferred_element_type=jnp.float32) \
        + b2_ref[...]
    cz = zf.shape[-1]
    z_all = zf.reshape(two_b, n, cz)
    z_s = z_all[:bsz]                                                # (B,N,C)
    z_t = z_all[bsz:]                                                # (B,N,C)

    # ---- masks built in-kernel from node-count scalars (hoisted) -------------
    ri = lax.broadcasted_iota(jnp.int32, (bsz, n, 1), 1)
    cj = lax.broadcasted_iota(jnp.int32, (bsz, 1, n), 2)
    rm = (ri < ns_ref[...]).astype(jnp.float32)                      # (B,Ns,1)
    cm = (cj < nt_ref[...]).astype(jnp.float32)                      # (B,1,Nt)
    mask = rm * cm                                                   # (B,Ns,Nt)
    eps_mask = 1e-9 * mask                                           # hoisted
    big = jnp.float32(1e30)
    col_bias = (cm - 1.0) * big      # 0 on valid cols, -1e30 on padded cols
    neg_inf = jnp.float32(-1e30)
    cols = lax.broadcasted_iota(jnp.int32, (bsz, n, n), 2)

    # iteration-invariant affinity term (hoisted out of the loop)
    m0 = jnp.einsum('bic,bjc->bij', z_s, z_t,
                    preferred_element_type=jnp.float32)              # (B,Ns,Nt)

    prob = jnp.zeros_like(m0)
    bm = jnp.zeros_like(m0)
    for k in range(ITERATION):
        if k == 0:
            m = m0
        else:
            # a1 * z_s z_t^T + a2 * (Bm z_t)(Bm^T z_s)^T, associativity-
            # reordered so every contraction is a standard batched matmul
            # (no in-kernel transposes):
            #   (Bm z_t)(Bm^T z_s)^T = [(Bm z_t) z_s^T] Bm
            bzt = jnp.einsum('bst,btc->bsc', bm, z_t,
                             preferred_element_type=jnp.float32)     # (B,Ns,C)
            tmp = jnp.einsum('bsc,buc->bsu', bzt, z_s,
                             preferred_element_type=jnp.float32)     # (B,Ns,Ns)
            m1 = jnp.einsum('bsu,but->bst', tmp, bm,
                            preferred_element_type=jnp.float32)      # (B,Ns,Nt)
            m = ALPHA_1 * m0 + ALPHA_2 * m1

        # ---- voting (FullPro): temperature masked softmax over columns ------
        logits = VOTING_ALPHA * m + col_bias          # additive mask (hoisted)
        mx = jnp.max(logits, axis=-1, keepdims=True)
        e = jnp.exp(logits - mx)
        denom = jnp.sum(e, axis=-1, keepdims=True)
        prob = (e / denom) * mask       # exact division: valid rows sum to 1

        # ---- Sinkhorn: entries outside mask are zero once; plain rescales
        #      keep them zero, so no per-iteration selects are needed ---------
        s = prob + eps_mask

        def sink_body(_, s):
            rsum = jnp.maximum(jnp.sum(s, axis=-1, keepdims=True), 1e-9)
            s = s * pl.reciprocal(rsum, approx=True)
            csum = jnp.maximum(jnp.sum(s, axis=-2, keepdims=True), 1e-9)
            s = s * pl.reciprocal(csum, approx=True)
            return s

        ds = lax.fori_loop(0, SINKHORN_ITERS, sink_body, s, unroll=True)

        # ---- greedy Hungarian surrogate: one-hot of per-row argmax ----------
        sm = jnp.where(mask > 0.0, ds, neg_inf)
        mxr = jnp.max(sm, axis=-1, keepdims=True)
        idx = jnp.min(jnp.where(sm >= mxr, cols, n), axis=-1, keepdims=True)
        bm = (cols == idx).astype(jnp.float32) * mask

    prob_ref[...] = prob
    bm_ref[...] = bm


# --------------------------- glue (plain JAX) --------------------------------

def dense_adj(edge_index, batch, B, N):
    src, dst = edge_index[0], edge_index[1]
    b = batch[src]
    adj = jnp.zeros((B, N, N), jnp.float32)
    return adj.at[b, src - b * N, dst - b * N].set(1.0)


@functools.partial(jax.jit, static_argnums=(9, 10))
def matching_forward(params, x_s, edge_index_s, edge_attr_s, batch_s,
                     x_t, edge_index_t, edge_attr_t, batch_t, B, N):
    w1, b1, w2, b2 = params

    adj_s = dense_adj(edge_index_s, batch_s, B, N)
    adj_t = dense_adj(edge_index_t, batch_t, B, N)

    # to_dense_batch: equal-size graphs -> reshape; masks are all-valid here.
    xs_d = x_s.reshape(B, N, -1).astype(jnp.float32)
    xt_d = x_t.reshape(B, N, -1).astype(jnp.float32)
    s_mask = jnp.ones((B, N), bool)
    t_mask = jnp.ones((B, N), bool)
    s_num_node = s_mask.sum(axis=-1).astype(jnp.int32)
    t_num_node = t_mask.sum(axis=-1).astype(jnp.int32)

    # stack source/target so the encoder runs once over everything
    x_all = jnp.concatenate([xs_d, xt_d], axis=0)       # (2B, N, Cin)
    adj_all = jnp.concatenate([adj_s, adj_t], axis=0)   # (2B, N, N)
    ns_in = s_num_node.reshape(B, 1, 1)
    nt_in = t_num_node.reshape(B, 1, 1)

    probability, binary_m = pl.pallas_call(
        _matching_kernel,
        out_shape=(jax.ShapeDtypeStruct((B, N, N), jnp.float32),
                   jax.ShapeDtypeStruct((B, N, N), jnp.float32)),
        compiler_params=pltpu.CompilerParams(
            vmem_limit_bytes=64 * 1024 * 1024),
    )(x_all, adj_all, w1, b1, w2, b2, ns_in, nt_in)

    return probability, binary_m, s_num_node, t_num_node


# --------------------------- main --------------------------------------------

if __name__ == "__main__":
    B, N, C_IN = 2, 8, 16
    key = jax.random.PRNGKey(0)
    k1, k2, k3, k4 = jax.random.split(key, 4)

    # deterministic synthetic encoder parameters
    w1 = jax.random.normal(k1, (C_IN, HIDDEN), jnp.float32) * 0.1
    b1 = jnp.zeros((1, HIDDEN), jnp.float32)
    w2 = jax.random.normal(k2, (HIDDEN, FEATURE_CHANNEL), jnp.float32) * 0.1
    b2 = jnp.zeros((1, FEATURE_CHANNEL), jnp.float32)
    params = (w1, b1, w2, b2)

    # node features [B*N, C_in]
    x_s = jax.random.normal(k3, (B * N, C_IN), jnp.float32)
    x_t = jax.random.normal(k4, (B * N, C_IN), jnp.float32)

    # ring-graph edges (bidirectional) per graph, offset per batch element
    i = jnp.arange(N)
    src = jnp.concatenate([i, (i + 1) % N])
    dst = jnp.concatenate([(i + 1) % N, i])
    srcs = jnp.concatenate([src + b * N for b in range(B)])
    dsts = jnp.concatenate([dst + b * N for b in range(B)])
    edge_index = jnp.stack([srcs, dsts]).astype(jnp.int32)   # [2, 2*N*B]
    batch_vec = jnp.repeat(jnp.arange(B), N).astype(jnp.int32)

    out = matching_forward(params,
                           x_s, edge_index, None, batch_vec,
                           x_t, edge_index, None, batch_vec,
                           B, N)
    out = jax.block_until_ready(out)

    probability, binary_m, s_num, t_num = out
    assert probability.shape == (B, N, N)
    assert binary_m.shape == (B, N, N)
    assert bool(jnp.all(jnp.isfinite(probability)))
    # all rows valid here -> softmax rows sum to 1, greedy assignment one-hot
    assert bool(jnp.allclose(probability.sum(-1), 1.0, atol=1e-2))
    assert bool(jnp.allclose(binary_m.sum(-1), 1.0, atol=1e-5))
    print("KERNEL_OK")
</pallas_src>

<mosaic_0001>
module attributes {stable_mosaic.version = 11 : i64} {
  func.func @_matching_kernel(%arg0: memref<4x8x16xf32, #tpu.memory_space<vmem>>, %arg1: memref<4x8x8xf32, #tpu.memory_space<vmem>>, %arg2: memref<16x32xf32, #tpu.memory_space<vmem>>, %arg3: memref<1x32xf32, #tpu.memory_space<vmem>>, %arg4: memref<32x32xf32, #tpu.memory_space<vmem>>, %arg5: memref<1x32xf32, #tpu.memory_space<vmem>>, %arg6: memref<2x1x1xi32, #tpu.memory_space<vmem>>, %arg7: memref<2x1x1xi32, #tpu.memory_space<vmem>>, %arg8: memref<2x8x8xf32, #tpu.memory_space<vmem>>, %arg9: memref<2x8x8xf32, #tpu.memory_space<vmem>>) attributes {dimension_semantics = [], scalar_prefetch = 0 : i64, scratch_operands = 0 : i64, tpu.core_type = #tpu.core_type<tc>} {
    %c0 = arith.constant 0 : index
    %c0_0 = arith.constant 0 : index
    %c0_1 = arith.constant 0 : index
    %0 = vector.load %arg0[%c0, %c0_0, %c0_1] : memref<4x8x16xf32, #tpu.memory_space<vmem>>, vector<4x8x16xf32>
    %c0_2 = arith.constant 0 : index
    %c0_3 = arith.constant 0 : index
    %c0_4 = arith.constant 0 : index
    %1 = vector.load %arg1[%c0_2, %c0_3, %c0_4] : memref<4x8x8xf32, #tpu.memory_space<vmem>>, vector<4x8x8xf32>
    "tpu.trace_start"() <{level = 10 : i32, message = "bij,bjc->bic"}> : () -> ()
    %cst = arith.constant dense<0.000000e+00> : vector<4x8x16xf32>
    %2 = tpu.matmul %1, %0, %cst {dimension_numbers = #tpu.dot_dimension_numbers<[2], [1], [1], [2], [0, 0, 0, 1, 1, 2], [0], [0]>} : vector<4x8x8xf32>, vector<4x8x16xf32>, vector<4x8x16xf32> -> vector<4x8x16xf32>
    "tpu.trace_stop"() : () -> ()
    %3 = arith.addf %0, %2 : vector<4x8x16xf32>
    %4 = vector.shape_cast %3 : vector<4x8x16xf32> to vector<32x16xf32>
    %c0_5 = arith.constant 0 : index
    %c0_6 = arith.constant 0 : index
    %5 = vector.load %arg2[%c0_5, %c0_6] : memref<16x32xf32, #tpu.memory_space<vmem>>, vector<16x32xf32>
    %cst_7 = arith.constant dense<0.000000e+00> : vector<32x32xf32>
    %6 = tpu.matmul %4, %5, %cst_7 {dimension_numbers = #tpu.dot_dimension_numbers<[1], [0], [0], [1], [0, 0, 1, 1], [], []>} : vector<32x16xf32>, vector<16x32xf32>, vector<32x32xf32> -> vector<32x32xf32>
    %c0_8 = arith.constant 0 : index
    %c0_9 = arith.constant 0 : index
    %7 = vector.load %arg3[%c0_8, %c0_9] : memref<1x32xf32, #tpu.memory_space<vmem>>, vector<1x32xf32>
    %8 = vector.broadcast %7 : vector<1x32xf32> to vector<32x32xf32>
    %9 = arith.addf %6, %8 : vector<32x32xf32>
    %cst_10 = arith.constant 0.000000e+00 : f32
    %10 = vector.broadcast %cst_10 : f32 to vector<32x32xf32>
    %11 = arith.maximumf %9, %10 : vector<32x32xf32>
    %c0_11 = arith.constant 0 : index
    %c0_12 = arith.constant 0 : index
    %12 = vector.load %arg4[%c0_11, %c0_12] : memref<32x32xf32, #tpu.memory_space<vmem>>, vector<32x32xf32>
    %cst_13 = arith.constant dense<0.000000e+00> : vector<32x32xf32>
    %13 = tpu.matmul %11, %12, %cst_13 {dimension_numbers = #tpu.dot_dimension_numbers<[1], [0], [0], [1], [0, 0, 1, 1], [], []>} : vector<32x32xf32>, vector<32x32xf32>, vector<32x32xf32> -> vector<32x32xf32>
    %c0_14 = arith.constant 0 : index
    %c0_15 = arith.constant 0 : index
    %14 = vector.load %arg5[%c0_14, %c0_15] : memref<1x32xf32, #tpu.memory_space<vmem>>, vector<1x32xf32>
    %15 = vector.broadcast %14 : vector<1x32xf32> to vector<32x32xf32>
    %16 = arith.addf %13, %15 : vector<32x32xf32>
    %17 = vector.shape_cast %16 : vector<32x32xf32> to vector<4x8x32xf32>
    %18 = vector.extract_strided_slice %17 {offsets = [0, 0, 0], sizes = [2, 8, 32], strides = [1, 1, 1]} : vector<4x8x32xf32> to vector<2x8x32xf32>
    %19 = vector.extract_strided_slice %17 {offsets = [2, 0, 0], sizes = [2, 8, 32], strides = [1, 1, 1]} : vector<4x8x32xf32> to vector<2x8x32xf32>
    %20 = tpu.iota {dimensions = array<i32: 1>} : vector<2x8x1xi32>
    %21 = tpu.iota {dimensions = array<i32: 2>} : vector<2x1x8xi32>
    %c0_16 = arith.constant 0 : index
    %c0_17 = arith.constant 0 : index
    %c0_18 = arith.constant 0 : index
    %22 = vector.load %arg6[%c0_16, %c0_17, %c0_18] : memref<2x1x1xi32, #tpu.memory_space<vmem>>, vector<2x1x1xi32>
    %23 = vector.broadcast %22 : vector<2x1x1xi32> to vector<2x8x1xi32>
    %24 = arith.cmpi slt, %20, %23 : vector<2x8x1xi32>
    %25 = arith.extui %24 : vector<2x8x1xi1> to vector<2x8x1xi32>
    %26 = arith.sitofp %25 : vector<2x8x1xi32> to vector<2x8x1xf32>
    %c0_19 = arith.constant 0 : index
    %c0_20 = arith.constant 0 : index
    %c0_21 = arith.constant 0 : index
    %27 = vector.load %arg7[%c0_19, %c0_20, %c0_21] : memref<2x1x1xi32, #tpu.memory_space<vmem>>, vector<2x1x1xi32>
    %28 = vector.broadcast %27 : vector<2x1x1xi32> to vector<2x1x8xi32>
    %29 = arith.cmpi slt, %21, %28 : vector<2x1x8xi32>
    %30 = arith.extui %29 : vector<2x1x8xi1> to vector<2x1x8xi32>
    %31 = arith.sitofp %30 : vector<2x1x8xi32> to vector<2x1x8xf32>
    %32 = vector.broadcast %26 : vector<2x8x1xf32> to vector<2x8x8xf32>
    %33 = vector.broadcast %31 : vector<2x1x8xf32> to vector<2x8x8xf32>
    %34 = arith.mulf %32, %33 : vector<2x8x8xf32>
    %cst_22 = arith.constant 9.99999971E-10 : f32
    %35 = vector.broadcast %cst_22 : f32 to vector<2x8x8xf32>
    %36 = arith.mulf %35, %34 : vector<2x8x8xf32>
    %cst_23 = arith.constant 1.000000e+00 : f32
    %37 = vector.broadcast %cst_23 : f32 to vector<2x1x8xf32>
    %38 = arith.subf %31, %37 : vector<2x1x8xf32>
    %cst_24 = arith.constant 1.000000e+30 : f32
    %39 = vector.broadcast %cst_24 : f32 to vector<2x1x8xf32>
    %40 = arith.mulf %38, %39 : vector<2x1x8xf32>
    %41 = tpu.iota {dimensions = array<i32: 2>} : vector<2x8x8xi32>
    "tpu.trace_start"() <{level = 10 : i32, message = "bic,bjc->bij"}> : () -> ()
    %cst_25 = arith.constant dense<0.000000e+00> : vector<2x8x8xf32>
    %42 = tpu.matmul %18, %19, %cst_25 {dimension_numbers = #tpu.dot_dimension_numbers<[2], [2], [1], [1], [0, 0, 0, 1, 1, 1], [0], [0]>} : vector<2x8x32xf32>, vector<2x8x32xf32>, vector<2x8x8xf32> -> vector<2x8x8xf32>
    "tpu.trace_stop"() : () -> ()
    %cst_26 = arith.constant 2.000000e+01 : f32
    %43 = vector.broadcast %cst_26 : f32 to vector<2x8x8xf32>
    %44 = arith.mulf %43, %42 : vector<2x8x8xf32>
    %45 = vector.broadcast %40 : vector<2x1x8xf32> to vector<2x8x8xf32>
    %46 = arith.addf %44, %45 : vector<2x8x8xf32>
    %cst_27 = arith.constant dense<0xFF800000> : vector<2x8xf32>
    %47 = vector.multi_reduction <maximumf>, %46, %cst_27 [2] : vector<2x8x8xf32> to vector<2x8xf32>
    %48 = vector.shape_cast %47 : vector<2x8xf32> to vector<2x8x1xf32>
    %49 = vector.broadcast %48 : vector<2x8x1xf32> to vector<2x8x8xf32>
    %50 = arith.subf %46, %49 : vector<2x8x8xf32>
    %51 = math.exp %50 : vector<2x8x8xf32>
    %cst_28 = arith.constant dense<0.000000e+00> : vector<2x8xf32>
    %52 = vector.multi_reduction <add>, %51, %cst_28 [2] : vector<2x8x8xf32> to vector<2x8xf32>
    %53 = vector.shape_cast %52 : vector<2x8xf32> to vector<2x8x1xf32>
    %54 = vector.broadcast %53 : vector<2x8x1xf32> to vector<2x8x8xf32>
    %55 = arith.divf %51, %54 : vector<2x8x8xf32>
    %56 = arith.mulf %55, %34 : vector<2x8x8xf32>
    %57 = arith.addf %56, %36 : vector<2x8x8xf32>
    %c0_i32 = arith.constant 0 : i32
    %cst_29 = arith.constant dense<0.000000e+00> : vector<2x8xf32>
    %58 = vector.multi_reduction <add>, %57, %cst_29 [2] : vector<2x8x8xf32> to vector<2x8xf32>
    %59 = vector.shape_cast %58 : vector<2x8xf32> to vector<2x8x1xf32>
    %cst_30 = arith.constant 9.99999971E-10 : f32
    %60 = vector.broadcast %cst_30 : f32 to vector<2x8x1xf32>
    %61 = arith.maximumf %59, %60 : vector<2x8x1xf32>
    %62 = tpu.reciprocal %61 {approx = true} : vector<2x8x1xf32> -> vector<2x8x1xf32>
    %63 = vector.broadcast %62 : vector<2x8x1xf32> to vector<2x8x8xf32>
    %64 = arith.mulf %57, %63 : vector<2x8x8xf32>
    %cst_31 = arith.constant dense<0.000000e+00> : vector<2x8xf32>
    %65 = vector.multi_reduction <add>, %64, %cst_31 [1] : vector<2x8x8xf32> to vector<2x8xf32>
    %66 = vector.shape_cast %65 : vector<2x8xf32> to vector<2x1x8xf32>
    %cst_32 = arith.constant 9.99999971E-10 : f32
    %67 = vector.broadcast %cst_32 : f32 to vector<2x1x8xf32>
    %68 = arith.maximumf %66, %67 : vector<2x1x8xf32>
    %69 = tpu.reciprocal %68 {approx = true} : vector<2x1x8xf32> -> vector<2x1x8xf32>
    %70 = vector.broadcast %69 : vector<2x1x8xf32> to vector<2x8x8xf32>
    %71 = arith.mulf %64, %70 : vector<2x8x8xf32>
    %c1_i32 = arith.constant 1 : i32
    %cst_33 = arith.constant dense<0.000000e+00> : vector<2x8xf32>
    %72 = vector.multi_reduction <add>, %71, %cst_33 [2] : vector<2x8x8xf32> to vector<2x8xf32>
    %73 = vector.shape_cast %72 : vector<2x8xf32> to vector<2x8x1xf32>
    %cst_34 = arith.constant 9.99999971E-10 : f32
    %74 = vector.broadcast %cst_34 : f32 to vector<2x8x1xf32>
    %75 = arith.maximumf %73, %74 : vector<2x8x1xf32>
    %76 = tpu.reciprocal %75 {approx = true} : vector<2x8x1xf32> -> vector<2x8x1xf32>
    %77 = vector.broadcast %76 : vector<2x8x1xf32> to vector<2x8x8xf32>
    %78 = arith.mulf %71, %77 : vector<2x8x8xf32>
    %cst_35 = arith.constant dense<0.000000e+00> : vector<2x8xf32>
    %79 = vector.multi_reduction <add>, %78, %cst_35 [1] : vector<2x8x8xf32> to vector<2x8xf32>
    %80 = vector.shape_cast %79 : vector<2x8xf32> to vector<2x1x8xf32>
    %cst_36 = arith.constant 9.99999971E-10 : f32
    %81 = vector.broadcast %cst_36 : f32 to vector<2x1x8xf32>
    %82 = arith.maximumf %80, %81 : vector<2x1x8xf32>
    %83 = tpu.reciprocal %82 {approx = true} : vector<2x1x8xf32> -> vector<2x1x8xf32>
    %84 = vector.broadcast %83 : vector<2x1x8xf32> to vector<2x8x8xf32>
    %85 = arith.mulf %78, %84 : vector<2x8x8xf32>
    %c2_i32 = arith.constant 2 : i32
    %cst_37 = arith.constant dense<0.000000e+00> : vector<2x8xf32>
    %86 = vector.multi_reduction <add>, %85, %cst_37 [2] : vector<2x8x8xf32> to vector<2x8xf32>
    %87 = vector.shape_cast %86 : vector<2x8xf32> to vector<2x8x1xf32>
    %cst_38 = arith.constant 9.99999971E-10 : f32
    %88 = vector.broadcast %cst_38 : f32 to vector<2x8x1xf32>
    %89 = arith.maximumf %87, %88 : vector<2x8x1xf32>
    %90 = tpu.reciprocal %89 {approx = true} : vector<2x8x1xf32> -> vector<2x8x1xf32>
    %91 = vector.broadcast %90 : vector<2x8x1xf32> to vector<2x8x8xf32>
    %92 = arith.mulf %85, %91 : vector<2x8x8xf32>
    %cst_39 = arith.constant dense<0.000000e+00> : vector<2x8xf32>
    %93 = vector.multi_reduction <add>, %92, %cst_39 [1] : vector<2x8x8xf32> to vector<2x8xf32>
    %94 = vector.shape_cast %93 : vector<2x8xf32> to vector<2x1x8xf32>
    %cst_40 = arith.constant 9.99999971E-10 : f32
    %95 = vector.broadcast %cst_40 : f32 to vector<2x1x8xf32>
    %96 = arith.maximumf %94, %95 : vector<2x1x8xf32>
    %97 = tpu.reciprocal %96 {approx = true} : vector<2x1x8xf32> -> vector<2x1x8xf32>
    %98 = vector.broadcast %97 : vector<2x1x8xf32> to vector<2x8x8xf32>
    %99 = arith.mulf %92, %98 : vector<2x8x8xf32>
    %c3_i32 = arith.constant 3 : i32
    %cst_41 = arith.constant dense<0.000000e+00> : vector<2x8xf32>
    %100 = vector.multi_reduction <add>, %99, %cst_41 [2] : vector<2x8x8xf32> to vector<2x8xf32>
    %101 = vector.shape_cast %100 : vector<2x8xf32> to vector<2x8x1xf32>
    %cst_42 = arith.constant 9.99999971E-10 : f32
    %102 = vector.broadcast %cst_42 : f32 to vector<2x8x1xf32>
    %103 = arith.maximumf %101, %102 : vector<2x8x1xf32>
    %104 = tpu.reciprocal %103 {approx = true} : vector<2x8x1xf32> -> vector<2x8x1xf32>
    %105 = vector.broadcast %104 : vector<2x8x1xf32> to vector<2x8x8xf32>
    %106 = arith.mulf %99, %105 : vector<2x8x8xf32>
    %cst_43 = arith.constant dense<0.000000e+00> : vector<2x8xf32>
    %107 = vector.multi_reduction <add>, %106, %cst_43 [1] : vector<2x8x8xf32> to vector<2x8xf32>
    %108 = vector.shape_cast %107 : vector<2x8xf32> to vector<2x1x8xf32>
    %cst_44 = arith.constant 9.99999971E-10 : f32
    %109 = vector.broadcast %cst_44 : f32 to vector<2x1x8xf32>
    %110 = arith.maximumf %108, %109 : vector<2x1x8xf32>
    %111 = tpu.reciprocal %110 {approx = true} : vector<2x1x8xf32> -> vector<2x1x8xf32>
    %112 = vector.broadcast %111 : vector<2x1x8xf32> to vector<2x8x8xf32>
    %113 = arith.mulf %106, %112 : vector<2x8x8xf32>
    %c4_i32 = arith.constant 4 : i32
    %cst_45 = arith.constant dense<0.000000e+00> : vector<2x8xf32>
    %114 = vector.multi_reduction <add>, %113, %cst_45 [2] : vector<2x8x8xf32> to vector<2x8xf32>
    %115 = vector.shape_cast %114 : vector<2x8xf32> to vector<2x8x1xf32>
    %cst_46 = arith.constant 9.99999971E-10 : f32
    %116 = vector.broadcast %cst_46 : f32 to vector<2x8x1xf32>
    %117 = arith.maximumf %115, %116 : vector<2x8x1xf32>
    %118 = tpu.reciprocal %117 {approx = true} : vector<2x8x1xf32> -> vector<2x8x1xf32>
    %119 = vector.broadcast %118 : vector<2x8x1xf32> to vector<2x8x8xf32>
    %120 = arith.mulf %113, %119 : vector<2x8x8xf32>
    %cst_47 = arith.constant dense<0.000000e+00> : vector<2x8xf32>
    %121 = vector.multi_reduction <add>, %120, %cst_47 [1] : vector<2x8x8xf32> to vector<2x8xf32>
    %122 = vector.shape_cast %121 : vector<2x8xf32> to vector<2x1x8xf32>
    %cst_48 = arith.constant 9.99999971E-10 : f32
    %123 = vector.broadcast %cst_48 : f32 to vector<2x1x8xf32>
    %124 = arith.maximumf %122, %123 : vector<2x1x8xf32>
    %125 = tpu.reciprocal %124 {approx = true} : vector<2x1x8xf32> -> vector<2x1x8xf32>
    %126 = vector.broadcast %125 : vector<2x1x8xf32> to vector<2x8x8xf32>
    %127 = arith.mulf %120, %126 : vector<2x8x8xf32>
    %c5_i32 = arith.constant 5 : i32
    %cst_49 = arith.constant dense<0.000000e+00> : vector<2x8xf32>
    %128 = vector.multi_reduction <add>, %127, %cst_49 [2] : vector<2x8x8xf32> to vector<2x8xf32>
    %129 = vector.shape_cast %128 : vector<2x8xf32> to vector<2x8x1xf32>
    %cst_50 = arith.constant 9.99999971E-10 : f32
    %130 = vector.broadcast %cst_50 : f32 to vector<2x8x1xf32>
    %131 = arith.maximumf %129, %130 : vector<2x8x1xf32>
    %132 = tpu.reciprocal %131 {approx = true} : vector<2x8x1xf32> -> vector<2x8x1xf32>
    %133 = vector.broadcast %132 : vector<2x8x1xf32> to vector<2x8x8xf32>
    %134 = arith.mulf %127, %133 : vector<2x8x8xf32>
    %cst_51 = arith.constant dense<0.000000e+00> : vector<2x8xf32>
    %135 = vector.multi_reduction <add>, %134, %cst_51 [1] : vector<2x8x8xf32> to vector<2x8xf32>
    %136 = vector.shape_cast %135 : vector<2x8xf32> to vector<2x1x8xf32>
    %cst_52 = arith.constant 9.99999971E-10 : f32
    %137 = vector.broadcast %cst_52 : f32 to vector<2x1x8xf32>
    %138 = arith.maximumf %136, %137 : vector<2x1x8xf32>
    %139 = tpu.reciprocal %138 {approx = true} : vector<2x1x8xf32> -> vector<2x1x8xf32>
    %140 = vector.broadcast %139 : vector<2x1x8xf32> to vector<2x8x8xf32>
    %141 = arith.mulf %134, %140 : vector<2x8x8xf32>
    %c6_i32 = arith.constant 6 : i32
    %cst_53 = arith.constant dense<0.000000e+00> : vector<2x8xf32>
    %142 = vector.multi_reduction <add>, %141, %cst_53 [2] : vector<2x8x8xf32> to vector<2x8xf32>
    %143 = vector.shape_cast %142 : vector<2x8xf32> to vector<2x8x1xf32>
    %cst_54 = arith.constant 9.99999971E-10 : f32
    %144 = vector.broadcast %cst_54 : f32 to vector<2x8x1xf32>
    %145 = arith.maximumf %143, %144 : vector<2x8x1xf32>
    %146 = tpu.reciprocal %145 {approx = true} : vector<2x8x1xf32> -> vector<2x8x1xf32>
    %147 = vector.broadcast %146 : vector<2x8x1xf32> to vector<2x8x8xf32>
    %148 = arith.mulf %141, %147 : vector<2x8x8xf32>
    %cst_55 = arith.constant dense<0.000000e+00> : vector<2x8xf32>
    %149 = vector.multi_reduction <add>, %148, %cst_55 [1] : vector<2x8x8xf32> to vector<2x8xf32>
    %150 = vector.shape_cast %149 : vector<2x8xf32> to vector<2x1x8xf32>
    %cst_56 = arith.constant 9.99999971E-10 : f32
    %151 = vector.broadcast %cst_56 : f32 to vector<2x1x8xf32>
    %152 = arith.maximumf %150, %151 : vector<2x1x8xf32>
    %153 = tpu.reciprocal %152 {approx = true} : vector<2x1x8xf32> -> vector<2x1x8xf32>
    %154 = vector.broadcast %153 : vector<2x1x8xf32> to vector<2x8x8xf32>
    %155 = arith.mulf %148, %154 : vector<2x8x8xf32>
    %c7_i32 = arith.constant 7 : i32
    %cst_57 = arith.constant dense<0.000000e+00> : vector<2x8xf32>
    %156 = vector.multi_reduction <add>, %155, %cst_57 [2] : vector<2x8x8xf32> to vector<2x8xf32>
    %157 = vector.shape_cast %156 : vector<2x8xf32> to vector<2x8x1xf32>
    %cst_58 = arith.constant 9.99999971E-10 : f32
    %158 = vector.broadcast %cst_58 : f32 to vector<2x8x1xf32>
    %159 = arith.maximumf %157, %158 : vector<2x8x1xf32>
    %160 = tpu.reciprocal %159 {approx = true} : vector<2x8x1xf32> -> vector<2x8x1xf32>
    %161 = vector.broadcast %160 : vector<2x8x1xf32> to vector<2x8x8xf32>
    %162 = arith.mulf %155, %161 : vector<2x8x8xf32>
    %cst_59 = arith.constant dense<0.000000e+00> : vector<2x8xf32>
    %163 = vector.multi_reduction <add>, %162, %cst_59 [1] : vector<2x8x8xf32> to vector<2x8xf32>
    %164 = vector.shape_cast %163 : vector<2x8xf32> to vector<2x1x8xf32>
    %cst_60 = arith.constant 9.99999971E-10 : f32
    %165 = vector.broadcast %cst_60 : f32 to vector<2x1x8xf32>
    %166 = arith.maximumf %164, %165 : vector<2x1x8xf32>
    %167 = tpu.reciprocal %166 {approx = true} : vector<2x1x8xf32> -> vector<2x1x8xf32>
    %168 = vector.broadcast %167 : vector<2x1x8xf32> to vector<2x8x8xf32>
    %169 = arith.mulf %162, %168 : vector<2x8x8xf32>
    %c8_i32 = arith.constant 8 : i32
    %cst_61 = arith.constant dense<0.000000e+00> : vector<2x8xf32>
    %170 = vector.multi_reduction <add>, %169, %cst_61 [2] : vector<2x8x8xf32> to vector<2x8xf32>
    %171 = vector.shape_cast %170 : vector<2x8xf32> to vector<2x8x1xf32>
    %cst_62 = arith.constant 9.99999971E-10 : f32
    %172 = vector.broadcast %cst_62 : f32 to vector<2x8x1xf32>
    %173 = arith.maximumf %171, %172 : vector<2x8x1xf32>
    %174 = tpu.reciprocal %173 {approx = true} : vector<2x8x1xf32> -> vector<2x8x1xf32>
    %175 = vector.broadcast %174 : vector<2x8x1xf32> to vector<2x8x8xf32>
    %176 = arith.mulf %169, %175 : vector<2x8x8xf32>
    %cst_63 = arith.constant dense<0.000000e+00> : vector<2x8xf32>
    %177 = vector.multi_reduction <add>, %176, %cst_63 [1] : vector<2x8x8xf32> to vector<2x8xf32>
    %178 = vector.shape_cast %177 : vector<2x8xf32> to vector<2x1x8xf32>
    %cst_64 = arith.constant 9.99999971E-10 : f32
    %179 = vector.broadcast %cst_64 : f32 to vector<2x1x8xf32>
    %180 = arith.maximumf %178, %179 : vector<2x1x8xf32>
    %181 = tpu.reciprocal %180 {approx = true} : vector<2x1x8xf32> -> vector<2x1x8xf32>
    %182 = vector.broadcast %181 : vector<2x1x8xf32> to vector<2x8x8xf32>
    %183 = arith.mulf %176, %182 : vector<2x8x8xf32>
    %c9_i32 = arith.constant 9 : i32
    %cst_65 = arith.constant dense<0.000000e+00> : vector<2x8xf32>
    %184 = vector.multi_reduction <add>, %183, %cst_65 [2] : vector<2x8x8xf32> to vector<2x8xf32>
    %185 = vector.shape_cast %184 : vector<2x8xf32> to vector<2x8x1xf32>
    %cst_66 = arith.constant 9.99999971E-10 : f32
    %186 = vector.broadcast %cst_66 : f32 to vector<2x8x1xf32>
    %187 = arith.maximumf %185, %186 : vector<2x8x1xf32>
    %188 = tpu.reciprocal %187 {approx = true} : vector<2x8x1xf32> -> vector<2x8x1xf32>
    %189 = vector.broadcast %188 : vector<2x8x1xf32> to vector<2x8x8xf32>
    %190 = arith.mulf %183, %189 : vector<2x8x8xf32>
    %cst_67 = arith.constant dense<0.000000e+00> : vector<2x8xf32>
    %191 = vector.multi_reduction <add>, %190, %cst_67 [1] : vector<2x8x8xf32> to vector<2x8xf32>
    %192 = vector.shape_cast %191 : vector<2x8xf32> to vector<2x1x8xf32>
    %cst_68 = arith.constant 9.99999971E-10 : f32
    %193 = vector.broadcast %cst_68 : f32 to vector<2x1x8xf32>
    %194 = arith.maximumf %192, %193 : vector<2x1x8xf32>
    %195 = tpu.reciprocal %194 {approx = true} : vector<2x1x8xf32> -> vector<2x1x8xf32>
    %196 = vector.broadcast %195 : vector<2x1x8xf32> to vector<2x8x8xf32>
    %197 = arith.mulf %190, %196 : vector<2x8x8xf32>
    %cst_69 = arith.constant 0.000000e+00 : f32
    %198 = vector.broadcast %cst_69 : f32 to vector<2x8x8xf32>
    %199 = arith.cmpf ogt, %34, %198 : vector<2x8x8xf32>
    %cst_70 = arith.constant -1.000000e+30 : f32
    %200 = vector.broadcast %cst_70 : f32 to vector<2x8x8xf32>
    %201 = arith.select %199, %197, %200 : vector<2x8x8xi1>, vector<2x8x8xf32>
    %cst_71 = arith.constant dense<0xFF800000> : vector<2x8xf32>
    %202 = vector.multi_reduction <maximumf>, %201, %cst_71 [2] : vector<2x8x8xf32> to vector<2x8xf32>
    %203 = vector.shape_cast %202 : vector<2x8xf32> to vector<2x8x1xf32>
    %204 = vector.broadcast %203 : vector<2x8x1xf32> to vector<2x8x8xf32>
    %205 = arith.cmpf oge, %201, %204 : vector<2x8x8xf32>
    %c8_i32_72 = arith.constant 8 : i32
    %206 = vector.broadcast %c8_i32_72 : i32 to vector<2x8x8xi32>
    %207 = arith.select %205, %41, %206 : vector<2x8x8xi1>, vector<2x8x8xi32>
    %cst_73 = arith.constant dense<2147483647> : vector<2x8xi32>
    %208 = vector.multi_reduction <minsi>, %207, %cst_73 [2] : vector<2x8x8xi32> to vector<2x8xi32>
    %209 = vector.shape_cast %208 : vector<2x8xi32> to vector<2x8x1xi32>
    %210 = vector.broadcast %209 : vector<2x8x1xi32> to vector<2x8x8xi32>
    %211 = arith.cmpi eq, %41, %210 : vector<2x8x8xi32>
    %212 = arith.extui %211 : vector<2x8x8xi1> to vector<2x8x8xi32>
    %213 = arith.sitofp %212 : vector<2x8x8xi32> to vector<2x8x8xf32>
    %214 = arith.mulf %213, %34 : vector<2x8x8xf32>
    "tpu.trace_start"() <{level = 10 : i32, message = "bst,btc->bsc"}> : () -> ()
    %cst_74 = arith.constant dense<0.000000e+00> : vector<2x8x32xf32>
    %215 = tpu.matmul %214, %19, %cst_74 {dimension_numbers = #tpu.dot_dimension_numbers<[2], [1], [1], [2], [0, 0, 0, 1, 1, 2], [0], [0]>} : vector<2x8x8xf32>, vector<2x8x32xf32>, vector<2x8x32xf32> -> vector<2x8x32xf32>
    "tpu.trace_stop"() : () -> ()
    "tpu.trace_start"() <{level = 10 : i32, message = "bsc,buc->bsu"}> : () -> ()
    %cst_75 = arith.constant dense<0.000000e+00> : vector<2x8x8xf32>
    %216 = tpu.matmul %215, %18, %cst_75 {dimension_numbers = #tpu.dot_dimension_numbers<[2], [2], [1], [1], [0, 0, 0, 1, 1, 1], [0], [0]>} : vector<2x8x32xf32>, vector<2x8x32xf32>, vector<2x8x8xf32> -> vector<2x8x8xf32>
    "tpu.trace_stop"() : () -> ()
    "tpu.trace_start"() <{level = 10 : i32, message = "bsu,but->bst"}> : () -> ()
    %cst_76 = arith.constant dense<0.000000e+00> : vector<2x8x8xf32>
    %217 = tpu.matmul %216, %214, %cst_76 {dimension_numbers = #tpu.dot_dimension_numbers<[2], [1], [1], [2], [0, 0, 0, 1, 1, 2], [0], [0]>} : vector<2x8x8xf32>, vector<2x8x8xf32>, vector<2x8x8xf32> -> vector<2x8x8xf32>
    "tpu.trace_stop"() : () -> ()
    %cst_77 = arith.constant 5.000000e-01 : f32
    %218 = vector.broadcast %cst_77 : f32 to vector<2x8x8xf32>
    %219 = arith.mulf %218, %42 : vector<2x8x8xf32>
    %cst_78 = arith.constant 5.000000e-01 : f32
    %220 = vector.broadcast %cst_78 : f32 to vector<2x8x8xf32>
    %221 = arith.mulf %220, %217 : vector<2x8x8xf32>
    %222 = arith.addf %219, %221 : vector<2x8x8xf32>
    %cst_79 = arith.constant 2.000000e+01 : f32
    %223 = vector.broadcast %cst_79 : f32 to vector<2x8x8xf32>
    %224 = arith.mulf %223, %222 : vector<2x8x8xf32>
    %225 = vector.broadcast %40 : vector<2x1x8xf32> to vector<2x8x8xf32>
    %226 = arith.addf %224, %225 : vector<2x8x8xf32>
    %cst_80 = arith.constant dense<0xFF800000> : vector<2x8xf32>
    %227 = vector.multi_reduction <maximumf>, %226, %cst_80 [2] : vector<2x8x8xf32> to vector<2x8xf32>
    %228 = vector.shape_cast %227 : vector<2x8xf32> to vector<2x8x1xf32>
    %229 = vector.broadcast %228 : vector<2x8x1xf32> to vector<2x8x8xf32>
    %230 = arith.subf %226, %229 : vector<2x8x8xf32>
    %231 = math.exp %230 : vector<2x8x8xf32>
    %cst_81 = arith.constant dense<0.000000e+00> : vector<2x8xf32>
    %232 = vector.multi_reduction <add>, %231, %cst_81 [2] : vector<2x8x8xf32> to vector<2x8xf32>
    %233 = vector.shape_cast %232 : vector<2x8xf32> to vector<2x8x1xf32>
    %234 = vector.broadcast %233 : vector<2x8x1xf32> to vector<2x8x8xf32>
    %235 = arith.divf %231, %234 : vector<2x8x8xf32>
    %236 = arith.mulf %235, %34 : vector<2x8x8xf32>
    %237 = arith.addf %236, %36 : vector<2x8x8xf32>
    %c0_i32_82 = arith.constant 0 : i32
    %cst_83 = arith.constant dense<0.000000e+00> : vector<2x8xf32>
    %238 = vector.multi_reduction <add>, %237, %cst_83 [2] : vector<2x8x8xf32> to vector<2x8xf32>
    %239 = vector.shape_cast %238 : vector<2x8xf32> to vector<2x8x1xf32>
    %cst_84 = arith.constant 9.99999971E-10 : f32
    %240 = vector.broadcast %cst_84 : f32 to vector<2x8x1xf32>
    %241 = arith.maximumf %239, %240 : vector<2x8x1xf32>
    %242 = tpu.reciprocal %241 {approx = true} : vector<2x8x1xf32> -> vector<2x8x1xf32>
    %243 = vector.broadcast %242 : vector<2x8x1xf32> to vector<2x8x8xf32>
    %244 = arith.mulf %237, %243 : vector<2x8x8xf32>
    %cst_85 = arith.constant dense<0.000000e+00> : vector<2x8xf32>
    %245 = vector.multi_reduction <add>, %244, %cst_85 [1] : vector<2x8x8xf32> to vector<2x8xf32>
    %246 = vector.shape_cast %245 : vector<2x8xf32> to vector<2x1x8xf32>
    %cst_86 = arith.constant 9.99999971E-10 : f32
    %247 = vector.broadcast %cst_86 : f32 to vector<2x1x8xf32>
    %248 = arith.maximumf %246, %247 : vector<2x1x8xf32>
    %249 = tpu.reciprocal %248 {approx = true} : vector<2x1x8xf32> -> vector<2x1x8xf32>
    %250 = vector.broadcast %249 : vector<2x1x8xf32> to vector<2x8x8xf32>
    %251 = arith.mulf %244, %250 : vector<2x8x8xf32>
    %c1_i32_87 = arith.constant 1 : i32
    %cst_88 = arith.constant dense<0.000000e+00> : vector<2x8xf32>
    %252 = vector.multi_reduction <add>, %251, %cst_88 [2] : vector<2x8x8xf32> to vector<2x8xf32>
    %253 = vector.shape_cast %252 : vector<2x8xf32> to vector<2x8x1xf32>
    %cst_89 = arith.constant 9.99999971E-10 : f32
    %254 = vector.broadcast %cst_89 : f32 to vector<2x8x1xf32>
    %255 = arith.maximumf %253, %254 : vector<2x8x1xf32>
    %256 = tpu.reciprocal %255 {approx = true} : vector<2x8x1xf32> -> vector<2x8x1xf32>
    %257 = vector.broadcast %256 : vector<2x8x1xf32> to vector<2x8x8xf32>
    %258 = arith.mulf %251, %257 : vector<2x8x8xf32>
    %cst_90 = arith.constant dense<0.000000e+00> : vector<2x8xf32>
    %259 = vector.multi_reduction <add>, %258, %cst_90 [1] : vector<2x8x8xf32> to vector<2x8xf32>
    %260 = vector.shape_cast %259 : vector<2x8xf32> to vector<2x1x8xf32>
    %cst_91 = arith.constant 9.99999971E-10 : f32
    %261 = vector.broadcast %cst_91 : f32 to vector<2x1x8xf32>
    %262 = arith.maximumf %260, %261 : vector<2x1x8xf32>
    %263 = tpu.reciprocal %262 {approx = true} : vector<2x1x8xf32> -> vector<2x1x8xf32>
    %264 = vector.broadcast %263 : vector<2x1x8xf32> to vector<2x8x8xf32>
    %265 = arith.mulf %258, %264 : vector<2x8x8xf32>
    %c2_i32_92 = arith.constant 2 : i32
    %cst_93 = arith.constant dense<0.000000e+00> : vector<2x8xf32>
    %266 = vector.multi_reduction <add>, %265, %cst_93 [2] : vector<2x8x8xf32> to vector<2x8xf32>
    %267 = vector.shape_cast %266 : vector<2x8xf32> to vector<2x8x1xf32>
    %cst_94 = arith.constant 9.99999971E-10 : f32
    %268 = vector.broadcast %cst_94 : f32 to vector<2x8x1xf32>
    %269 = arith.maximumf %267, %268 : vector<2x8x1xf32>
    %270 = tpu.reciprocal %269 {approx = true} : vector<2x8x1xf32> -> vector<2x8x1xf32>
    %271 = vector.broadcast %270 : vector<2x8x1xf32> to vector<2x8x8xf32>
    %272 = arith.mulf %265, %271 : vector<2x8x8xf32>
    %cst_95 = arith.constant dense<0.000000e+00> : vector<2x8xf32>
    %273 = vector.multi_reduction <add>, %272, %cst_95 [1] : vector<2x8x8xf32> to vector<2x8xf32>
    %274 = vector.shape_cast %273 : vector<2x8xf32> to vector<2x1x8xf32>
    %cst_96 = arith.constant 9.99999971E-10 : f32
    %275 = vector.broadcast %cst_96 : f32 to vector<2x1x8xf32>
    %276 = arith.maximumf %274, %275 : vector<2x1x8xf32>
    %277 = tpu.reciprocal %276 {approx = true} : vector<2x1x8xf32> -> vector<2x1x8xf32>
    %278 = vector.broadcast %277 : vector<2x1x8xf32> to vector<2x8x8xf32>
    %279 = arith.mulf %272, %278 : vector<2x8x8xf32>
    %c3_i32_97 = arith.constant 3 : i32
    %cst_98 = arith.constant dense<0.000000e+00> : vector<2x8xf32>
    %280 = vector.multi_reduction <add>, %279, %cst_98 [2] : vector<2x8x8xf32> to vector<2x8xf32>
    %281 = vector.shape_cast %280 : vector<2x8xf32> to vector<2x8x1xf32>
    %cst_99 = arith.constant 9.99999971E-10 : f32
    %282 = vector.broadcast %cst_99 : f32 to vector<2x8x1xf32>
    %283 = arith.maximumf %281, %282 : vector<2x8x1xf32>
    %284 = tpu.reciprocal %283 {approx = true} : vector<2x8x1xf32> -> vector<2x8x1xf32>
    %285 = vector.broadcast %284 : vector<2x8x1xf32> to vector<2x8x8xf32>
    %286 = arith.mulf %279, %285 : vector<2x8x8xf32>
    %cst_100 = arith.constant dense<0.000000e+00> : vector<2x8xf32>
    %287 = vector.multi_reduction <add>, %286, %cst_100 [1] : vector<2x8x8xf32> to vector<2x8xf32>
    %288 = vector.shape_cast %287 : vector<2x8xf32> to vector<2x1x8xf32>
    %cst_101 = arith.constant 9.99999971E-10 : f32
    %289 = vector.broadcast %cst_101 : f32 to vector<2x1x8xf32>
    %290 = arith.maximumf %288, %289 : vector<2x1x8xf32>
    %291 = tpu.reciprocal %290 {approx = true} : vector<2x1x8xf32> -> vector<2x1x8xf32>
    %292 = vector.broadcast %291 : vector<2x1x8xf32> to vector<2x8x8xf32>
    %293 = arith.mulf %286, %292 : vector<2x8x8xf32>
    %c4_i32_102 = arith.constant 4 : i32
    %cst_103 = arith.constant dense<0.000000e+00> : vector<2x8xf32>
    %294 = vector.multi_reduction <add>, %293, %cst_103 [2] : vector<2x8x8xf32> to vector<2x8xf32>
    %295 = vector.shape_cast %294 : vector<2x8xf32> to vector<2x8x1xf32>
    %cst_104 = arith.constant 9.99999971E-10 : f32
    %296 = vector.broadcast %cst_104 : f32 to vector<2x8x1xf32>
    %297 = arith.maximumf %295, %296 : vector<2x8x1xf32>
    %298 = tpu.reciprocal %297 {approx = true} : vector<2x8x1xf32> -> vector<2x8x1xf32>
    %299 = vector.broadcast %298 : vector<2x8x1xf32> to vector<2x8x8xf32>
    %300 = arith.mulf %293, %299 : vector<2x8x8xf32>
    %cst_105 = arith.constant dense<0.000000e+00> : vector<2x8xf32>
    %301 = vector.multi_reduction <add>, %300, %cst_105 [1] : vector<2x8x8xf32> to vector<2x8xf32>
    %302 = vector.shape_cast %301 : vector<2x8xf32> to vector<2x1x8xf32>
    %cst_106 = arith.constant 9.99999971E-10 : f32
    %303 = vector.broadcast %cst_106 : f32 to vector<2x1x8xf32>
    %304 = arith.maximumf %302, %303 : vector<2x1x8xf32>
    %305 = tpu.reciprocal %304 {approx = true} : vector<2x1x8xf32> -> vector<2x1x8xf32>
    %306 = vector.broadcast %305 : vector<2x1x8xf32> to vector<2x8x8xf32>
    %307 = arith.mulf %300, %306 : vector<2x8x8xf32>
    %c5_i32_107 = arith.constant 5 : i32
    %cst_108 = arith.constant dense<0.000000e+00> : vector<2x8xf32>
    %308 = vector.multi_reduction <add>, %307, %cst_108 [2] : vector<2x8x8xf32> to vector<2x8xf32>
    %309 = vector.shape_cast %308 : vector<2x8xf32> to vector<2x8x1xf32>
    %cst_109 = arith.constant 9.99999971E-10 : f32
    %310 = vector.broadcast %cst_109 : f32 to vector<2x8x1xf32>
    %311 = arith.maximumf %309, %310 : vector<2x8x1xf32>
    %312 = tpu.reciprocal %311 {approx = true} : vector<2x8x1xf32> -> vector<2x8x1xf32>
    %313 = vector.broadcast %312 : vector<2x8x1xf32> to vector<2x8x8xf32>
    %314 = arith.mulf %307, %313 : vector<2x8x8xf32>
    %cst_110 = arith.constant dense<0.000000e+00> : vector<2x8xf32>
    %315 = vector.multi_reduction <add>, %314, %cst_110 [1] : vector<2x8x8xf32> to vector<2x8xf32>
    %316 = vector.shape_cast %315 : vector<2x8xf32> to vector<2x1x8xf32>
    %cst_111 = arith.constant 9.99999971E-10 : f32
    %317 = vector.broadcast %cst_111 : f32 to vector<2x1x8xf32>
    %318 = arith.maximumf %316, %317 : vector<2x1x8xf32>
    %319 = tpu.reciprocal %318 {approx = true} : vector<2x1x8xf32> -> vector<2x1x8xf32>
    %320 = vector.broadcast %319 : vector<2x1x8xf32> to vector<2x8x8xf32>
    %321 = arith.mulf %314, %320 : vector<2x8x8xf32>
    %c6_i32_112 = arith.constant 6 : i32
    %cst_113 = arith.constant dense<0.000000e+00> : vector<2x8xf32>
    %322 = vector.multi_reduction <add>, %321, %cst_113 [2] : vector<2x8x8xf32> to vector<2x8xf32>
    %323 = vector.shape_cast %322 : vector<2x8xf32> to vector<2x8x1xf32>
    %cst_114 = arith.constant 9.99999971E-10 : f32
    %324 = vector.broadcast %cst_114 : f32 to vector<2x8x1xf32>
    %325 = arith.maximumf %323, %324 : vector<2x8x1xf32>
    %326 = tpu.reciprocal %325 {approx = true} : vector<2x8x1xf32> -> vector<2x8x1xf32>
    %327 = vector.broadcast %326 : vector<2x8x1xf32> to vector<2x8x8xf32>
    %328 = arith.mulf %321, %327 : vector<2x8x8xf32>
    %cst_115 = arith.constant dense<0.000000e+00> : vector<2x8xf32>
    %329 = vector.multi_reduction <add>, %328, %cst_115 [1] : vector<2x8x8xf32> to vector<2x8xf32>
    %330 = vector.shape_cast %329 : vector<2x8xf32> to vector<2x1x8xf32>
    %cst_116 = arith.constant 9.99999971E-10 : f32
    %331 = vector.broadcast %cst_116 : f32 to vector<2x1x8xf32>
    %332 = arith.maximumf %330, %331 : vector<2x1x8xf32>
    %333 = tpu.reciprocal %332 {approx = true} : vector<2x1x8xf32> -> vector<2x1x8xf32>
    %334 = vector.broadcast %333 : vector<2x1x8xf32> to vector<2x8x8xf32>
    %335 = arith.mulf %328, %334 : vector<2x8x8xf32>
    %c7_i32_117 = arith.constant 7 : i32
    %cst_118 = arith.constant dense<0.000000e+00> : vector<2x8xf32>
    %336 = vector.multi_reduction <add>, %335, %cst_118 [2] : vector<2x8x8xf32> to vector<2x8xf32>
    %337 = vector.shape_cast %336 : vector<2x8xf32> to vector<2x8x1xf32>
    %cst_119 = arith.constant 9.99999971E-10 : f32
    %338 = vector.broadcast %cst_119 : f32 to vector<2x8x1xf32>
    %339 = arith.maximumf %337, %338 : vector<2x8x1xf32>
    %340 = tpu.reciprocal %339 {approx = true} : vector<2x8x1xf32> -> vector<2x8x1xf32>
    %341 = vector.broadcast %340 : vector<2x8x1xf32> to vector<2x8x8xf32>
    %342 = arith.mulf %335, %341 : vector<2x8x8xf32>
    %cst_120 = arith.constant dense<0.000000e+00> : vector<2x8xf32>
    %343 = vector.multi_reduction <add>, %342, %cst_120 [1] : vector<2x8x8xf32> to vector<2x8xf32>
    %344 = vector.shape_cast %343 : vector<2x8xf32> to vector<2x1x8xf32>
    %cst_121 = arith.constant 9.99999971E-10 : f32
    %345 = vector.broadcast %cst_121 : f32 to vector<2x1x8xf32>
    %346 = arith.maximumf %344, %345 : vector<2x1x8xf32>
    %347 = tpu.reciprocal %346 {approx = true} : vector<2x1x8xf32> -> vector<2x1x8xf32>
    %348 = vector.broadcast %347 : vector<2x1x8xf32> to vector<2x8x8xf32>
    %349 = arith.mulf %342, %348 : vector<2x8x8xf32>
    %c8_i32_122 = arith.constant 8 : i32
    %cst_123 = arith.constant dense<0.000000e+00> : vector<2x8xf32>
    %350 = vector.multi_reduction <add>, %349, %cst_123 [2] : vector<2x8x8xf32> to vector<2x8xf32>
    %351 = vector.shape_cast %350 : vector<2x8xf32> to vector<2x8x1xf32>
    %cst_124 = arith.constant 9.99999971E-10 : f32
    %352 = vector.broadcast %cst_124 : f32 to vector<2x8x1xf32>
    %353 = arith.maximumf %351, %352 : vector<2x8x1xf32>
    %354 = tpu.reciprocal %353 {approx = true} : vector<2x8x1xf32> -> vector<2x8x1xf32>
    %355 = vector.broadcast %354 : vector<2x8x1xf32> to vector<2x8x8xf32>
    %356 = arith.mulf %349, %355 : vector<2x8x8xf32>
    %cst_125 = arith.constant dense<0.000000e+00> : vector<2x8xf32>
    %357 = vector.multi_reduction <add>, %356, %cst_125 [1] : vector<2x8x8xf32> to vector<2x8xf32>
    %358 = vector.shape_cast %357 : vector<2x8xf32> to vector<2x1x8xf32>
    %cst_126 = arith.constant 9.99999971E-10 : f32
    %359 = vector.broadcast %cst_126 : f32 to vector<2x1x8xf32>
    %360 = arith.maximumf %358, %359 : vector<2x1x8xf32>
    %361 = tpu.reciprocal %360 {approx = true} : vector<2x1x8xf32> -> vector<2x1x8xf32>
    %362 = vector.broadcast %361 : vector<2x1x8xf32> to vector<2x8x8xf32>
    %363 = arith.mulf %356, %362 : vector<2x8x8xf32>
    %c9_i32_127 = arith.constant 9 : i32
    %cst_128 = arith.constant dense<0.000000e+00> : vector<2x8xf32>
    %364 = vector.multi_reduction <add>, %363, %cst_128 [2] : vector<2x8x8xf32> to vector<2x8xf32>
    %365 = vector.shape_cast %364 : vector<2x8xf32> to vector<2x8x1xf32>
    %cst_129 = arith.constant 9.99999971E-10 : f32
    %366 = vector.broadcast %cst_129 : f32 to vector<2x8x1xf32>
    %367 = arith.maximumf %365, %366 : vector<2x8x1xf32>
    %368 = tpu.reciprocal %367 {approx = true} : vector<2x8x1xf32> -> vector<2x8x1xf32>
    %369 = vector.broadcast %368 : vector<2x8x1xf32> to vector<2x8x8xf32>
    %370 = arith.mulf %363, %369 : vector<2x8x8xf32>
    %cst_130 = arith.constant dense<0.000000e+00> : vector<2x8xf32>
    %371 = vector.multi_reduction <add>, %370, %cst_130 [1] : vector<2x8x8xf32> to vector<2x8xf32>
    %372 = vector.shape_cast %371 : vector<2x8xf32> to vector<2x1x8xf32>
    %cst_131 = arith.constant 9.99999971E-10 : f32
    %373 = vector.broadcast %cst_131 : f32 to vector<2x1x8xf32>
    %374 = arith.maximumf %372, %373 : vector<2x1x8xf32>
    %375 = tpu.reciprocal %374 {approx = true} : vector<2x1x8xf32> -> vector<2x1x8xf32>
    %376 = vector.broadcast %375 : vector<2x1x8xf32> to vector<2x8x8xf32>
    %377 = arith.mulf %370, %376 : vector<2x8x8xf32>
    %cst_132 = arith.constant 0.000000e+00 : f32
    %378 = vector.broadcast %cst_132 : f32 to vector<2x8x8xf32>
    %379 = arith.cmpf ogt, %34, %378 : vector<2x8x8xf32>
    %cst_133 = arith.constant -1.000000e+30 : f32
    %380 = vector.broadcast %cst_133 : f32 to vector<2x8x8xf32>
    %381 = arith.select %379, %377, %380 : vector<2x8x8xi1>, vector<2x8x8xf32>
    %cst_134 = arith.constant dense<0xFF800000> : vector<2x8xf32>
    %382 = vector.multi_reduction <maximumf>, %381, %cst_134 [2] : vector<2x8x8xf32> to vector<2x8xf32>
    %383 = vector.shape_cast %382 : vector<2x8xf32> to vector<2x8x1xf32>
    %384 = vector.broadcast %383 : vector<2x8x1xf32> to vector<2x8x8xf32>
    %385 = arith.cmpf oge, %381, %384 : vector<2x8x8xf32>
    %c8_i32_135 = arith.constant 8 : i32
    %386 = vector.broadcast %c8_i32_135 : i32 to vector<2x8x8xi32>
    %387 = arith.select %385, %41, %386 : vector<2x8x8xi1>, vector<2x8x8xi32>
    %cst_136 = arith.constant dense<2147483647> : vector<2x8xi32>
    %388 = vector.multi_reduction <minsi>, %387, %cst_136 [2] : vector<2x8x8xi32> to vector<2x8xi32>
    %389 = vector.shape_cast %388 : vector<2x8xi32> to vector<2x8x1xi32>
    %390 = vector.broadcast %389 : vector<2x8x1xi32> to vector<2x8x8xi32>
    %391 = arith.cmpi eq, %41, %390 : vector<2x8x8xi32>
    %392 = arith.extui %391 : vector<2x8x8xi1> to vector<2x8x8xi32>
    %393 = arith.sitofp %392 : vector<2x8x8xi32> to vector<2x8x8xf32>
    %394 = arith.mulf %393, %34 : vector<2x8x8xf32>
    "tpu.trace_start"() <{level = 10 : i32, message = "bst,btc->bsc"}> : () -> ()
    %cst_137 = arith.constant dense<0.000000e+00> : vector<2x8x32xf32>
    %395 = tpu.matmul %394, %19, %cst_137 {dimension_numbers = #tpu.dot_dimension_numbers<[2], [1], [1], [2], [0, 0, 0, 1, 1, 2], [0], [0]>} : vector<2x8x8xf32>, vector<2x8x32xf32>, vector<2x8x32xf32> -> vector<2x8x32xf32>
    "tpu.trace_stop"() : () -> ()
    "tpu.trace_start"() <{level = 10 : i32, message = "bsc,buc->bsu"}> : () -> ()
    %cst_138 = arith.constant dense<0.000000e+00> : vector<2x8x8xf32>
    %396 = tpu.matmul %395, %18, %cst_138 {dimension_numbers = #tpu.dot_dimension_numbers<[2], [2], [1], [1], [0, 0, 0, 1, 1, 1], [0], [0]>} : vector<2x8x32xf32>, vector<2x8x32xf32>, vector<2x8x8xf32> -> vector<2x8x8xf32>
    "tpu.trace_stop"() : () -> ()
    "tpu.trace_start"() <{level = 10 : i32, message = "bsu,but->bst"}> : () -> ()
    %cst_139 = arith.constant dense<0.000000e+00> : vector<2x8x8xf32>
    %397 = tpu.matmul %396, %394, %cst_139 {dimension_numbers = #tpu.dot_dimension_numbers<[2], [1], [1], [2], [0, 0, 0, 1, 1, 2], [0], [0]>} : vector<2x8x8xf32>, vector<2x8x8xf32>, vector<2x8x8xf32> -> vector<2x8x8xf32>
    "tpu.trace_stop"() : () -> ()
    %cst_140 = arith.constant 5.000000e-01 : f32
    %398 = vector.broadcast %cst_140 : f32 to vector<2x8x8xf32>
    %399 = arith.mulf %398, %42 : vector<2x8x8xf32>
    %cst_141 = arith.constant 5.000000e-01 : f32
    %400 = vector.broadcast %cst_141 : f32 to vector<2x8x8xf32>
    %401 = arith.mulf %400, %397 : vector<2x8x8xf32>
    %402 = arith.addf %399, %401 : vector<2x8x8xf32>
    %cst_142 = arith.constant 2.000000e+01 : f32
    %403 = vector.broadcast %cst_142 : f32 to vector<2x8x8xf32>
    %404 = arith.mulf %403, %402 : vector<2x8x8xf32>
    %405 = vector.broadcast %40 : vector<2x1x8xf32> to vector<2x8x8xf32>
    %406 = arith.addf %404, %405 : vector<2x8x8xf32>
    %cst_143 = arith.constant dense<0xFF800000> : vector<2x8xf32>
    %407 = vector.multi_reduction <maximumf>, %406, %cst_143 [2] : vector<2x8x8xf32> to vector<2x8xf32>
    %408 = vector.shape_cast %407 : vector<2x8xf32> to vector<2x8x1xf32>
    %409 = vector.broadcast %408 : vector<2x8x1xf32> to vector<2x8x8xf32>
    %410 = arith.subf %406, %409 : vector<2x8x8xf32>
    %411 = math.exp %410 : vector<2x8x8xf32>
    %cst_144 = arith.constant dense<0.000000e+00> : vector<2x8xf32>
    %412 = vector.multi_reduction <add>, %411, %cst_144 [2] : vector<2x8x8xf32> to vector<2x8xf32>
    %413 = vector.shape_cast %412 : vector<2x8xf32> to vector<2x8x1xf32>
    %414 = vector.broadcast %413 : vector<2x8x1xf32> to vector<2x8x8xf32>
    %415 = arith.divf %411, %414 : vector<2x8x8xf32>
    %416 = arith.mulf %415, %34 : vector<2x8x8xf32>
    %417 = arith.addf %416, %36 : vector<2x8x8xf32>
    %c0_i32_145 = arith.constant 0 : i32
    %cst_146 = arith.constant dense<0.000000e+00> : vector<2x8xf32>
    %418 = vector.multi_reduction <add>, %417, %cst_146 [2] : vector<2x8x8xf32> to vector<2x8xf32>
    %419 = vector.shape_cast %418 : vector<2x8xf32> to vector<2x8x1xf32>
    %cst_147 = arith.constant 9.99999971E-10 : f32
    %420 = vector.broadcast %cst_147 : f32 to vector<2x8x1xf32>
    %421 = arith.maximumf %419, %420 : vector<2x8x1xf32>
    %422 = tpu.reciprocal %421 {approx = true} : vector<2x8x1xf32> -> vector<2x8x1xf32>
    %423 = vector.broadcast %422 : vector<2x8x1xf32> to vector<2x8x8xf32>
    %424 = arith.mulf %417, %423 : vector<2x8x8xf32>
    %cst_148 = arith.constant dense<0.000000e+00> : vector<2x8xf32>
    %425 = vector.multi_reduction <add>, %424, %cst_148 [1] : vector<2x8x8xf32> to vector<2x8xf32>
    %426 = vector.shape_cast %425 : vector<2x8xf32> to vector<2x1x8xf32>
    %cst_149 = arith.constant 9.99999971E-10 : f32
    %427 = vector.broadcast %cst_149 : f32 to vector<2x1x8xf32>
    %428 = arith.maximumf %426, %427 : vector<2x1x8xf32>
    %429 = tpu.reciprocal %428 {approx = true} : vector<2x1x8xf32> -> vector<2x1x8xf32>
    %430 = vector.broadcast %429 : vector<2x1x8xf32> to vector<2x8x8xf32>
    %431 = arith.mulf %424, %430 : vector<2x8x8xf32>
    %c1_i32_150 = arith.constant 1 : i32
    %cst_151 = arith.constant dense<0.000000e+00> : vector<2x8xf32>
    %432 = vector.multi_reduction <add>, %431, %cst_151 [2] : vector<2x8x8xf32> to vector<2x8xf32>
    %433 = vector.shape_cast %432 : vector<2x8xf32> to vector<2x8x1xf32>
    %cst_152 = arith.constant 9.99999971E-10 : f32
    %434 = vector.broadcast %cst_152 : f32 to vector<2x8x1xf32>
    %435 = arith.maximumf %433, %434 : vector<2x8x1xf32>
    %436 = tpu.reciprocal %435 {approx = true} : vector<2x8x1xf32> -> vector<2x8x1xf32>
    %437 = vector.broadcast %436 : vector<2x8x1xf32> to vector<2x8x8xf32>
    %438 = arith.mulf %431, %437 : vector<2x8x8xf32>
    %cst_153 = arith.constant dense<0.000000e+00> : vector<2x8xf32>
    %439 = vector.multi_reduction <add>, %438, %cst_153 [1] : vector<2x8x8xf32> to vector<2x8xf32>
    %440 = vector.shape_cast %439 : vector<2x8xf32> to vector<2x1x8xf32>
    %cst_154 = arith.constant 9.99999971E-10 : f32
    %441 = vector.broadcast %cst_154 : f32 to vector<2x1x8xf32>
    %442 = arith.maximumf %440, %441 : vector<2x1x8xf32>
    %443 = tpu.reciprocal %442 {approx = true} : vector<2x1x8xf32> -> vector<2x1x8xf32>
    %444 = vector.broadcast %443 : vector<2x1x8xf32> to vector<2x8x8xf32>
    %445 = arith.mulf %438, %444 : vector<2x8x8xf32>
    %c2_i32_155 = arith.constant 2 : i32
    %cst_156 = arith.constant dense<0.000000e+00> : vector<2x8xf32>
    %446 = vector.multi_reduction <add>, %445, %cst_156 [2] : vector<2x8x8xf32> to vector<2x8xf32>
    %447 = vector.shape_cast %446 : vector<2x8xf32> to vector<2x8x1xf32>
    %cst_157 = arith.constant 9.99999971E-10 : f32
    %448 = vector.broadcast %cst_157 : f32 to vector<2x8x1xf32>
    %449 = arith.maximumf %447, %448 : vector<2x8x1xf32>
    %450 = tpu.reciprocal %449 {approx = true} : vector<2x8x1xf32> -> vector<2x8x1xf32>
    %451 = vector.broadcast %450 : vector<2x8x1xf32> to vector<2x8x8xf32>
    %452 = arith.mulf %445, %451 : vector<2x8x8xf32>
    %cst_158 = arith.constant dense<0.000000e+00> : vector<2x8xf32>
    %453 = vector.multi_reduction <add>, %452, %cst_158 [1] : vector<2x8x8xf32> to vector<2x8xf32>
    %454 = vector.shape_cast %453 : vector<2x8xf32> to vector<2x1x8xf32>
    %cst_159 = arith.constant 9.99999971E-10 : f32
    %455 = vector.broadcast %cst_159 : f32 to vector<2x1x8xf32>
    %456 = arith.maximumf %454, %455 : vector<2x1x8xf32>
    %457 = tpu.reciprocal %456 {approx = true} : vector<2x1x8xf32> -> vector<2x1x8xf32>
    %458 = vector.broadcast %457 : vector<2x1x8xf32> to vector<2x8x8xf32>
    %459 = arith.mulf %452, %458 : vector<2x8x8xf32>
    %c3_i32_160 = arith.constant 3 : i32
    %cst_161 = arith.constant dense<0.000000e+00> : vector<2x8xf32>
    %460 = vector.multi_reduction <add>, %459, %cst_161 [2] : vector<2x8x8xf32> to vector<2x8xf32>
    %461 = vector.shape_cast %460 : vector<2x8xf32> to vector<2x8x1xf32>
    %cst_162 = arith.constant 9.99999971E-10 : f32
    %462 = vector.broadcast %cst_162 : f32 to vector<2x8x1xf32>
    %463 = arith.maximumf %461, %462 : vector<2x8x1xf32>
    %464 = tpu.reciprocal %463 {approx = true} : vector<2x8x1xf32> -> vector<2x8x1xf32>
    %465 = vector.broadcast %464 : vector<2x8x1xf32> to vector<2x8x8xf32>
    %466 = arith.mulf %459, %465 : vector<2x8x8xf32>
    %cst_163 = arith.constant dense<0.000000e+00> : vector<2x8xf32>
    %467 = vector.multi_reduction <add>, %466, %cst_163 [1] : vector<2x8x8xf32> to vector<2x8xf32>
    %468 = vector.shape_cast %467 : vector<2x8xf32> to vector<2x1x8xf32>
    %cst_164 = arith.constant 9.99999971E-10 : f32
    %469 = vector.broadcast %cst_164 : f32 to vector<2x1x8xf32>
    %470 = arith.maximumf %468, %469 : vector<2x1x8xf32>
    %471 = tpu.reciprocal %470 {approx = true} : vector<2x1x8xf32> -> vector<2x1x8xf32>
    %472 = vector.broadcast %471 : vector<2x1x8xf32> to vector<2x8x8xf32>
    %473 = arith.mulf %466, %472 : vector<2x8x8xf32>
    %c4_i32_165 = arith.constant 4 : i32
    %cst_166 = arith.constant dense<0.000000e+00> : vector<2x8xf32>
    %474 = vector.multi_reduction <add>, %473, %cst_166 [2] : vector<2x8x8xf32> to vector<2x8xf32>
    %475 = vector.shape_cast %474 : vector<2x8xf32> to vector<2x8x1xf32>
    %cst_167 = arith.constant 9.99999971E-10 : f32
    %476 = vector.broadcast %cst_167 : f32 to vector<2x8x1xf32>
    %477 = arith.maximumf %475, %476 : vector<2x8x1xf32>
    %478 = tpu.reciprocal %477 {approx = true} : vector<2x8x1xf32> -> vector<2x8x1xf32>
    %479 = vector.broadcast %478 : vector<2x8x1xf32> to vector<2x8x8xf32>
    %480 = arith.mulf %473, %479 : vector<2x8x8xf32>
    %cst_168 = arith.constant dense<0.000000e+00> : vector<2x8xf32>
    %481 = vector.multi_reduction <add>, %480, %cst_168 [1] : vector<2x8x8xf32> to vector<2x8xf32>
    %482 = vector.shape_cast %481 : vector<2x8xf32> to vector<2x1x8xf32>
    %cst_169 = arith.constant 9.99999971E-10 : f32
    %483 = vector.broadcast %cst_169 : f32 to vector<2x1x8xf32>
    %484 = arith.maximumf %482, %483 : vector<2x1x8xf32>
    %485 = tpu.reciprocal %484 {approx = true} : vector<2x1x8xf32> -> vector<2x1x8xf32>
    %486 = vector.broadcast %485 : vector<2x1x8xf32> to vector<2x8x8xf32>
    %487 = arith.mulf %480, %486 : vector<2x8x8xf32>
    %c5_i32_170 = arith.constant 5 : i32
    %cst_171 = arith.constant dense<0.000000e+00> : vector<2x8xf32>
    %488 = vector.multi_reduction <add>, %487, %cst_171 [2] : vector<2x8x8xf32> to vector<2x8xf32>
    %489 = vector.shape_cast %488 : vector<2x8xf32> to vector<2x8x1xf32>
    %cst_172 = arith.constant 9.99999971E-10 : f32
    %490 = vector.broadcast %cst_172 : f32 to vector<2x8x1xf32>
    %491 = arith.maximumf %489, %490 : vector<2x8x1xf32>
    %492 = tpu.reciprocal %491 {approx = true} : vector<2x8x1xf32> -> vector<2x8x1xf32>
    %493 = vector.broadcast %492 : vector<2x8x1xf32> to vector<2x8x8xf32>
    %494 = arith.mulf %487, %493 : vector<2x8x8xf32>
    %cst_173 = arith.constant dense<0.000000e+00> : vector<2x8xf32>
    %495 = vector.multi_reduction <add>, %494, %cst_173 [1] : vector<2x8x8xf32> to vector<2x8xf32>
    %496 = vector.shape_cast %495 : vector<2x8xf32> to vector<2x1x8xf32>
    %cst_174 = arith.constant 9.99999971E-10 : f32
    %497 = vector.broadcast %cst_174 : f32 to vector<2x1x8xf32>
    %498 = arith.maximumf %496, %497 : vector<2x1x8xf32>
    %499 = tpu.reciprocal %498 {approx = true} : vector<2x1x8xf32> -> vector<2x1x8xf32>
    %500 = vector.broadcast %499 : vector<2x1x8xf32> to vector<2x8x8xf32>
    %501 = arith.mulf %494, %500 : vector<2x8x8xf32>
    %c6_i32_175 = arith.constant 6 : i32
    %cst_176 = arith.constant dense<0.000000e+00> : vector<2x8xf32>
    %502 = vector.multi_reduction <add>, %501, %cst_176 [2] : vector<2x8x8xf32> to vector<2x8xf32>
    %503 = vector.shape_cast %502 : vector<2x8xf32> to vector<2x8x1xf32>
    %cst_177 = arith.constant 9.99999971E-10 : f32
    %504 = vector.broadcast %cst_177 : f32 to vector<2x8x1xf32>
    %505 = arith.maximumf %503, %504 : vector<2x8x1xf32>
    %506 = tpu.reciprocal %505 {approx = true} : vector<2x8x1xf32> -> vector<2x8x1xf32>
    %507 = vector.broadcast %506 : vector<2x8x1xf32> to vector<2x8x8xf32>
    %508 = arith.mulf %501, %507 : vector<2x8x8xf32>
    %cst_178 = arith.constant dense<0.000000e+00> : vector<2x8xf32>
    %509 = vector.multi_reduction <add>, %508, %cst_178 [1] : vector<2x8x8xf32> to vector<2x8xf32>
    %510 = vector.shape_cast %509 : vector<2x8xf32> to vector<2x1x8xf32>
    %cst_179 = arith.constant 9.99999971E-10 : f32
    %511 = vector.broadcast %cst_179 : f32 to vector<2x1x8xf32>
    %512 = arith.maximumf %510, %511 : vector<2x1x8xf32>
    %513 = tpu.reciprocal %512 {approx = true} : vector<2x1x8xf32> -> vector<2x1x8xf32>
    %514 = vector.broadcast %513 : vector<2x1x8xf32> to vector<2x8x8xf32>
    %515 = arith.mulf %508, %514 : vector<2x8x8xf32>
    %c7_i32_180 = arith.constant 7 : i32
    %cst_181 = arith.constant dense<0.000000e+00> : vector<2x8xf32>
    %516 = vector.multi_reduction <add>, %515, %cst_181 [2] : vector<2x8x8xf32> to vector<2x8xf32>
    %517 = vector.shape_cast %516 : vector<2x8xf32> to vector<2x8x1xf32>
    %cst_182 = arith.constant 9.99999971E-10 : f32
    %518 = vector.broadcast %cst_182 : f32 to vector<2x8x1xf32>
    %519 = arith.maximumf %517, %518 : vector<2x8x1xf32>
    %520 = tpu.reciprocal %519 {approx = true} : vector<2x8x1xf32> -> vector<2x8x1xf32>
    %521 = vector.broadcast %520 : vector<2x8x1xf32> to vector<2x8x8xf32>
    %522 = arith.mulf %515, %521 : vector<2x8x8xf32>
    %cst_183 = arith.constant dense<0.000000e+00> : vector<2x8xf32>
    %523 = vector.multi_reduction <add>, %522, %cst_183 [1] : vector<2x8x8xf32> to vector<2x8xf32>
    %524 = vector.shape_cast %523 : vector<2x8xf32> to vector<2x1x8xf32>
    %cst_184 = arith.constant 9.99999971E-10 : f32
    %525 = vector.broadcast %cst_184 : f32 to vector<2x1x8xf32>
    %526 = arith.maximumf %524, %525 : vector<2x1x8xf32>
    %527 = tpu.reciprocal %526 {approx = true} : vector<2x1x8xf32> -> vector<2x1x8xf32>
    %528 = vector.broadcast %527 : vector<2x1x8xf32> to vector<2x8x8xf32>
    %529 = arith.mulf %522, %528 : vector<2x8x8xf32>
    %c8_i32_185 = arith.constant 8 : i32
    %cst_186 = arith.constant dense<0.000000e+00> : vector<2x8xf32>
    %530 = vector.multi_reduction <add>, %529, %cst_186 [2] : vector<2x8x8xf32> to vector<2x8xf32>
    %531 = vector.shape_cast %530 : vector<2x8xf32> to vector<2x8x1xf32>
    %cst_187 = arith.constant 9.99999971E-10 : f32
    %532 = vector.broadcast %cst_187 : f32 to vector<2x8x1xf32>
    %533 = arith.maximumf %531, %532 : vector<2x8x1xf32>
    %534 = tpu.reciprocal %533 {approx = true} : vector<2x8x1xf32> -> vector<2x8x1xf32>
    %535 = vector.broadcast %534 : vector<2x8x1xf32> to vector<2x8x8xf32>
    %536 = arith.mulf %529, %535 : vector<2x8x8xf32>
    %cst_188 = arith.constant dense<0.000000e+00> : vector<2x8xf32>
    %537 = vector.multi_reduction <add>, %536, %cst_188 [1] : vector<2x8x8xf32> to vector<2x8xf32>
    %538 = vector.shape_cast %537 : vector<2x8xf32> to vector<2x1x8xf32>
    %cst_189 = arith.constant 9.99999971E-10 : f32
    %539 = vector.broadcast %cst_189 : f32 to vector<2x1x8xf32>
    %540 = arith.maximumf %538, %539 : vector<2x1x8xf32>
    %541 = tpu.reciprocal %540 {approx = true} : vector<2x1x8xf32> -> vector<2x1x8xf32>
    %542 = vector.broadcast %541 : vector<2x1x8xf32> to vector<2x8x8xf32>
    %543 = arith.mulf %536, %542 : vector<2x8x8xf32>
    %c9_i32_190 = arith.constant 9 : i32
    %cst_191 = arith.constant dense<0.000000e+00> : vector<2x8xf32>
    %544 = vector.multi_reduction <add>, %543, %cst_191 [2] : vector<2x8x8xf32> to vector<2x8xf32>
    %545 = vector.shape_cast %544 : vector<2x8xf32> to vector<2x8x1xf32>
    %cst_192 = arith.constant 9.99999971E-10 : f32
    %546 = vector.broadcast %cst_192 : f32 to vector<2x8x1xf32>
    %547 = arith.maximumf %545, %546 : vector<2x8x1xf32>
    %548 = tpu.reciprocal %547 {approx = true} : vector<2x8x1xf32> -> vector<2x8x1xf32>
    %549 = vector.broadcast %548 : vector<2x8x1xf32> to vector<2x8x8xf32>
    %550 = arith.mulf %543, %549 : vector<2x8x8xf32>
    %cst_193 = arith.constant dense<0.000000e+00> : vector<2x8xf32>
    %551 = vector.multi_reduction <add>, %550, %cst_193 [1] : vector<2x8x8xf32> to vector<2x8xf32>
    %552 = vector.shape_cast %551 : vector<2x8xf32> to vector<2x1x8xf32>
    %cst_194 = arith.constant 9.99999971E-10 : f32
    %553 = vector.broadcast %cst_194 : f32 to vector<2x1x8xf32>
    %554 = arith.maximumf %552, %553 : vector<2x1x8xf32>
    %555 = tpu.reciprocal %554 {approx = true} : vector<2x1x8xf32> -> vector<2x1x8xf32>
    %556 = vector.broadcast %555 : vector<2x1x8xf32> to vector<2x8x8xf32>
    %557 = arith.mulf %550, %556 : vector<2x8x8xf32>
    %cst_195 = arith.constant 0.000000e+00 : f32
    %558 = vector.broadcast %cst_195 : f32 to vector<2x8x8xf32>
    %559 = arith.cmpf ogt, %34, %558 : vector<2x8x8xf32>
    %cst_196 = arith.constant -1.000000e+30 : f32
    %560 = vector.broadcast %cst_196 : f32 to vector<2x8x8xf32>
    %561 = arith.select %559, %557, %560 : vector<2x8x8xi1>, vector<2x8x8xf32>
    %cst_197 = arith.constant dense<0xFF800000> : vector<2x8xf32>
    %562 = vector.multi_reduction <maximumf>, %561, %cst_197 [2] : vector<2x8x8xf32> to vector<2x8xf32>
    %563 = vector.shape_cast %562 : vector<2x8xf32> to vector<2x8x1xf32>
    %564 = vector.broadcast %563 : vector<2x8x1xf32> to vector<2x8x8xf32>
    %565 = arith.cmpf oge, %561, %564 : vector<2x8x8xf32>
    %c8_i32_198 = arith.constant 8 : i32
    %566 = vector.broadcast %c8_i32_198 : i32 to vector<2x8x8xi32>
    %567 = arith.select %565, %41, %566 : vector<2x8x8xi1>, vector<2x8x8xi32>
    %cst_199 = arith.constant dense<2147483647> : vector<2x8xi32>
    %568 = vector.multi_reduction <minsi>, %567, %cst_199 [2] : vector<2x8x8xi32> to vector<2x8xi32>
    %569 = vector.shape_cast %568 : vector<2x8xi32> to vector<2x8x1xi32>
    %570 = vector.broadcast %569 : vector<2x8x1xi32> to vector<2x8x8xi32>
    %571 = arith.cmpi eq, %41, %570 : vector<2x8x8xi32>
    %572 = arith.extui %571 : vector<2x8x8xi1> to vector<2x8x8xi32>
    %573 = arith.sitofp %572 : vector<2x8x8xi32> to vector<2x8x8xf32>
    %574 = arith.mulf %573, %34 : vector<2x8x8xf32>
    %c0_200 = arith.constant 0 : index
    %c0_201 = arith.constant 0 : index
    %c0_202 = arith.constant 0 : index
    %575 = vector.load %arg8[%c0_200, %c0_201, %c0_202] : memref<2x8x8xf32, #tpu.memory_space<vmem>>, vector<2x8x8xf32>
    tpu.vector_store %arg8[%c0_200, %c0_201, %c0_202], %416 {strides = array<i32>} : memref<2x8x8xf32, #tpu.memory_space<vmem>>, vector<2x8x8xf32>,
    %c0_203 = arith.constant 0 : index
    %c0_204 = arith.constant 0 : index
    %c0_205 = arith.constant 0 : index
    %576 = vector.load %arg9[%c0_203, %c0_204, %c0_205] : memref<2x8x8xf32, #tpu.memory_space<vmem>>, vector<2x8x8xf32>
    tpu.vector_store %arg9[%c0_203, %c0_204, %c0_205], %574 {strides = array<i32>} : memref<2x8x8xf32, #tpu.memory_space<vmem>>, vector<2x8x8xf32>,
    return
  }
}

</mosaic_0001>

<bundles_post_ra>
// kernel: matching_forward.1
= control target key start
LH: loop header
LB: loop body
LE: loop exit
PB: predicated region body
PF: predicated region fallthrough
CT: control target
= control target key end

     0   :  { %15 = vsyncpa [#allocation3], 0  ;;  %v3428_v2 = vmov 0.0   ;;  %vm41_vm0 = vcmask 64512   ;;  %vm3429_vm1 = vmmov 0   ;;  %s3901_s0 = inlined_call_operand.vmem [shape: f32[4,8,16], index: 0, kind: input, shape index: {}]   ;;  %s3902_s1 = inlined_call_operand.vmem [shape: f32[4,8,8], index: 1, kind: input, shape index: {}]   ;;  %s3903_s2 = inlined_call_operand.vmem [shape: f32[16,32], index: 2, kind: input, shape index: {}]   ;;  %s3904_s3 = inlined_call_operand.vmem [shape: f32[1,32], index: 3, kind: input, shape index: {}]   ;;  %s3905_s4 = inlined_call_operand.vmem [shape: f32[32,32], index: 4, kind: input, shape index: {}]   ;;  %s3906_s5 = inlined_call_operand.vmem [shape: f32[1,32], index: 5, kind: input, shape index: {}]   ;;  %s3907_s6 = inlined_call_operand.vmem [shape: s32[2,1,1], index: 6, kind: input, shape index: {}, may-alias: {6,7}]   ;;  %s3908_s7 = inlined_call_operand.vmem [shape: s32[2,1,1], index: 7, kind: input, shape index: {}, may-alias: {6,7}]   ;;  %s3909_s8 = inlined_call_operand.hbm [shape: f32[2,8,8], index: 8, kind: output, shape index: {0}]   ;;  %s3910_s9 = inlined_call_operand.hbm [shape: f32[2,8,8], index: 9, kind: output, shape index: {1}]  }
   0x1   :  { %v33_v0 = vld [vmem:[%s3901_s0] sm:$0xff]  ;;  %v34_v1 = vld [vmem:[%s3901_s0 + $0x8] sm:$0xff]  ;;  %2992 = vmatprep.subr.mxu0 %v3428_v2  ;;  %2997 = vmatprep.subr.mxu1 %v3428_v2 }
   0x2   :  { %v37_v3 = vld [vmem:[%s3902_s1] sm:$0xff]  ;;  %v38_v4 = vld [vmem:[%s3902_s1 + $0x8] sm:$0xff]  ;;  %2993 = vmatpush3.msra.mxu0 %v33_v0  ;;  %2994 = vmatprep.mubr.msk.f32.mxu0 %vm3429_vm1, %v3428_v2 }
   0x3   :  { %16 = vsyncpa [#allocation5], 0  ;;  %2998 = vmatpush3.msra.mxu1 %v34_v1  ;;  %2999 = vmatprep.mubr.msk.f32.mxu1 %vm3429_vm1, %v3428_v2  ;;  %v35_v5 = vld [vmem:[%s3901_s0 + $0x10] sm:$0xff]  ;;  %v36_v6 = vld [vmem:[%s3901_s0 + $0x18] sm:$0xff]  ;;  %vm347_vm2 = vcmask 130048   ;;  %vm460_vm3 = vcmask 261120   ;;  %v558_v52 = vlaneseq }
   0x4   :  { %2995 = vmatmul.mubr.msk.f32.vlgmr.msra.gmra.mxu0 %vm41_vm0, %v37_v3  ;;  %3000 = vmatmul.mubr.msk.f32.vlgmr.msra.gmra.mxu1 %vm41_vm0, %v38_v4  ;;  %v39_v7 = vld [vmem:[%s3902_s1 + $0x10] sm:$0xff]  ;;  %v40_v8 = vld [vmem:[%s3902_s1 + $0x18] sm:$0xff]  ;;  %v339_v9 = vld [vmem:[%s3903_s2 + $0x8] sm:$0xff]  ;;  %v3430_v41 = vmov 0  }
   0x5   :  { %3002 = vmatprep.subr.mxu0 %v3428_v2  ;;  %3007 = vmatprep.subr.mxu1 %v3428_v2  ;;  %v338_v10 = vld [vmem:[%s3903_s2] sm:$0xff]  ;;  %v452_v23 = vld [vmem:[%s3905_s4 + $0x18] sm:$0xff]  ;;  %v451_v24 = vld [vmem:[%s3905_s4 + $0x10] sm:$0xff]  ;;  %v559_v53 = vshrl.u32 %v558_v52, 7  ;;  %v3591_v56 = vand.u32 127, %v558_v52 }
   0x6   :  { %3003 = vmatpush3.msra.mxu0 %v35_v5  ;;  %3004 = vmatprep.mubr.msk.f32.mxu0 %vm3429_vm1, %v3428_v2  ;;  %v450_v25 = vld [vmem:[%s3905_s4 + $0x8] sm:$0xff]  ;;  %v449_v26 = vld [vmem:[%s3905_s4] sm:$0xff] }
   0x7   :  { %3008 = vmatpush3.msra.mxu1 %v36_v6  ;;  %3009 = vmatprep.mubr.msk.f32.mxu1 %vm3429_vm1, %v3428_v2  ;;  %v2898_v27 = vld [vmem:[%s3904_s3] ss:$0 sm:$0xff]  ;;  %v579_v42 = vld [vmem:[%s3908_s7 + $0x1] sm:$0x1]  ;;  %v585_v54 = vsub.s32 0, %v559_v53 }
   0x8   :  { %3005 = vmatmul.mubr.msk.f32.vlgmr.msra.gmra.mxu0 %vm41_vm0, %v39_v7  ;;  %3010 = vmatmul.mubr.msk.f32.vlgmr.msra.gmra.mxu1 %vm41_vm0, %v40_v8  ;;  %v578_v40 = vld [vmem:[%s3908_s7] sm:$0x1] }
   0x9   :  { %3012 = vmatprep.subr.mxu0 %v339_v9  ;;  %3022 = vmatprep.subr.mxu1 %v452_v23  ;;  %v2903_v46 = vld [vmem:[%s3906_s5] ss:$0 sm:$0xff] }
   0xa   :  { %3013 = vmatpush3.msra.mxu0 %v339_v9  ;;  %3023 = vmatpush3.msra.mxu1 %v452_v23  ;;  %v2908_v23 = vld [vmem:[%s3907_s6] ss:$0 sm:$0xff] }
   0xb   :  { %3014 = vmatprep.subr.mxu0 %v338_v10  ;;  %3024 = vmatprep.subr.mxu1 %v451_v24  ;;  %vm572_vm6 = vcmp.lt.s32.totalorder %v559_v53, %v2908_v23 }
   0xc   :  { %3015 = vmatpush3.msra.mxu0 %v338_v10  ;;  %3025 = vmatpush3.msra.mxu1 %v451_v24  ;;  %v2909_v24 = vld [vmem:[%s3907_s6 + $0x1] ss:$0 sm:$0xff]  ;;  %s3431_s6 = smov [#allocation2]  }
   0xd   :  { %3036 = vmatprep.subr.mxu0 %v3428_v2  ;;  %3026 = vmatprep.subr.mxu1 %v450_v25  ;;  %vm573_vm7 = vcmp.lt.s32.totalorder %v559_v53, %v2909_v24  ;;  %s2867_s21 = sshll.u32 %s3431_s6, 4  ;;  %s2868_s21 = int_to_ptr.vmem [resolvable:$true] %s2867_s21 }
   0xe   :  { %3027 = vmatpush3.msra.mxu1 %v450_v25  ;;  %3113 = vset.pattern.permute.xlu0 %v3430_v41  ;;  %v2910_v25 = vsel %vm572_vm6, 1.0, %v3428_v2  ;;  %s3384_s22 = scalar_lea.vmem %s2868_s21, 256  ;;  %p3389_p1 = scmp.lt.s32.totalorder %s2868_s21, %s2868_s21 }
   0xf   :  { %3028 = vmatprep.subr.mxu1 %v449_v26  ;;  %3114 = vset.pattern.permute.xlu1 %v3430_v41  ;;  %p3385_p0 = scmp.ne.s32.totalorder %s2868_s21, %s3384_s22  ;;  %p3390_p2 = scmp.lt.s32.totalorder %s3384_s22, %s3384_s22 }
  0x10   :  { %3029 = vmatpush3.msra.mxu1 %v449_v26  ;;  %581 = vperm.xlu0 %3113, %v578_v40   ;;  %v2911_v26 = vsel %vm573_vm7, 1.0, %v3428_v2 }
  0x11   :  { %3046 = vmatprep.subr.mxu1 %v3428_v2  ;;  %p3391_p3 = por %p3390_p2, %p3389_p1 }
  0x13   :  { %p3392_p4 = pnand %p3391_p3, %p3385_p0 }
  0x14   :  { %588 = vperm.xlu0 %3113, %v579_v42  }
  0x8b   :  { %v582_v55 = vpop.permute.xlu0 %581 }
  0x8c   :  { %v586_v57 = vrot.slane %v582_v55, %v585_v54 }
  0x8e   :  { %vm594_vm4 = vcmp.lt.s32.totalorder %v3591_v56, %v586_v57 }
  0x8f   :  { %v589_v58 = vpop.permute.xlu0 %588  ;;  %v2912_v60 = vsel %vm594_vm4, 1.0, %v3428_v2 }
  0x90   :  { %v593_v59 = vrot.slane %v589_v58, %v585_v54  ;;  %v2914_v61 = vadd.f32 -1.0, %v2912_v60 }
  0x92   :  { %vm595_vm5 = vcmp.lt.s32.totalorder %v3591_v56, %v593_v59  ;;  %v3597_v63 = vmul.f32 1e+30, %v2914_v61 }
  0x93   :  { %v2913_v62 = vsel %vm595_vm5, 1.0, %v3428_v2 }
  0xc4   :  { %v111_v11 = vpop.f32.mrf.mxu0  ;;  %v184_v12 = vpop.f32.mrf.mxu1 }
  0xc5   :  { %v334_v13 = vadd.f32 %v111_v11, %v33_v0  ;;  %v335_v14 = vadd.f32 %v184_v12, %v34_v1  ;;  %v2915_v1 = vadd.f32 -1.0, %v2913_v62 }
  0xc6   :  { %v2996_v15 = vpop.f32.mrf.mxu0  ;;  %v3001_v16 = vpop.f32.mrf.mxu1 }
  0xc7   :  { %3016 = vmatprep.mubr.msk.f32.mxu0 %vm347_vm2, %v334_v13  ;;  %v3605_v7 = vmul.f32 1e+30, %v2915_v1 }
  0xc8   :  { %v257_v17 = vpop.f32.mrf.mxu0  ;;  %v330_v18 = vpop.f32.mrf.mxu1  ;;  %3017 = vmatmul.mubr.msk.f32.vlgmr.msra.gmra.mxu0 %vm347_vm2, %v335_v14 }
  0xc9   :  { %v336_v19 = vadd.f32 %v257_v17, %v35_v5  ;;  %v337_v20 = vadd.f32 %v330_v18, %v36_v6 }
  0xca   :  { %v3006_v21 = vpop.f32.mrf.mxu0  ;;  %v3011_v22 = vpop.f32.mrf.mxu1 }
  0xcb   :  { %3019 = vmatprep.mubr.msk.f32.mxu0 %vm347_vm2, %v336_v19 }
  0xcc   :  { %3020 = vmatmul.mubr.msk.f32.gmra.mxu0 %vm347_vm2, %v337_v20 }
  0xcd   :  { %3038 = vmatprep.mubr.msk.f32.mxu0 %vm3429_vm1, %v3428_v2 }
 0x188   :  { %v3018_v28 = vpop.f32.mrf.mxu0 }
 0x189   :  { %v432_v29 = vadd.f32 %v3018_v28, %v2898_v27 }
 0x18a   :  { %v426_v30 = vpop.f32.mrf.mxu0 }
 0x18b   :  { %v427_v31 = vadd.f32 %v2898_v27, %v426_v30  ;;  %v446_v34 = vmax.f32 %v432_v29, 0.0 }
 0x18c   :  { %v3021_v32 = vpop.f32.mrf.mxu0 }
 0x18d   :  { %v445_v33 = vmax.f32 %v427_v31, 0.0  ;;  %v442_v35 = vadd.f32 %v3021_v32, %v2898_v27 }
 0x18e   :  { %v436_v36 = vpop.f32.mrf.mxu0 }
 0x18f   :  { %v437_v37 = vadd.f32 %v2898_v27, %v436_v36  ;;  %3030 = vmatprep.mubr.msk.f32.mxu1 %vm460_vm3, %v445_v33  ;;  %v448_v39 = vmax.f32 %v442_v35, 0.0  ;;  %v3115_v27 = vpack.i.bf16 %v2911_v26, %v2910_v25 }
 0x190   :  { %3031 = vmatmul.mubr.msk.f32.vlgmr.msra.gmra.mxu1 %vm460_vm3, %v446_v34 }
 0x191   :  { %v447_v38 = vmax.f32 %v437_v37, 0.0 }
 0x193   :  { %3033 = vmatprep.mubr.msk.f32.mxu1 %vm460_vm3, %v447_v38 }
 0x194   :  { %3034 = vmatmul.mubr.msk.f32.gmra.mxu1 %vm460_vm3, %v448_v39 }
 0x195   :  { %3048 = vmatprep.mubr.msk.f32.mxu1 %vm3429_vm1, %v3428_v2 }
 0x250   :  { %v3032_v43 = vpop.f32.mrf.mxu1 }
 0x251   :  { %v3582_v51 = vadd.f32 %v3032_v43, %v2903_v46 }
 0x252   :  { %v539_v44 = vpop.f32.mrf.mxu1 }
 0x253   :  { %v3570_v49 = vadd.f32 %v2903_v46, %v539_v44 }
 0x254   :  { %v3035_v45 = vpop.f32.mrf.mxu1 }
 0x255   :  { %v3574_v50 = vadd.f32 %v3035_v45, %v2903_v46 }
 0x256   :  { %v549_v47 = vpop.f32.mrf.mxu1 }
 0x257   :  { %v3565_v48 = vadd.f32 %v2903_v46, %v549_v47 }
 0x259   :  { %3037 = vmatpush3.xpose.msk.msra.mxu0 %vm460_vm3, %v3565_v48  ;;  %3047 = vmatpush3.msra.mxu1 %v3565_v48 }
 0x25a   :  { %3041 = vmatprep.subr.mxu0 %v3428_v2  ;;  %3056 = vmatprep.subr.mxu1 %v3428_v2 }
 0x25c   :  { %3039 = vmatmul.mubr.msk.f32.vlgmr.msra.gmra.mxu0 %vm460_vm3, %v3570_v49 }
 0x25d   :  { %3042 = vmatpush3.xpose.msk.msra.mxu0 %vm460_vm3, %v3574_v50  ;;  %3043 = vmatprep.mubr.msk.f32.mxu0 %vm3429_vm1, %v3428_v2 }
 0x25e   :  { %3051 = vmatprep.subr.mxu0 %v3428_v2 }
 0x260   :  { %3044 = vmatmul.mubr.msk.f32.vlgmr.msra.gmra.mxu0 %vm460_vm3, %v3582_v51 }
 0x261   :  { %3052 = vmatpush3.msra.mxu0 %v3574_v50  ;;  %3053 = vmatprep.mubr.msk.f32.mxu0 %vm3429_vm1, %v3428_v2 }
 0x262   :  { %3061 = vmatprep.subr.mxu0 %v3428_v2 }
 0x31c   :  { %v3599_v0 = vpop.f32.mrf.mxu0 }
 0x31d   :  { %v770_v3 = vmul.f32 20.0, %v3599_v0 }
 0x31e   :  { %v3040_v4 = vpop.f32.mrf.mxu0 }
 0x31f   :  { %v772_v5 = vadd.f32 %v770_v3, %v3597_v63 }
 0x320   :  { %v3603_v6 = vpop.f32.mrf.mxu0 }
 0x321   :  { %v771_v8 = vmul.f32 20.0, %v3603_v6  ;;  %v774_v9 = vsel %vm41_vm0, %v772_v5, -inf }
 0x322   :  { %775 = vmax.xlane.f32.xlu1 %v774_v9  ;;  %v3045_v10 = vpop.f32.mrf.mxu0 }
 0x323   :  { %v773_v11 = vadd.f32 %v771_v8, %v3605_v7 }
 0x325   :  { %v777_v12 = vsel %vm41_vm0, %v773_v11, -inf }
 0x326   :  { %778 = vmax.xlane.f32.xlu1 %v777_v12 }
 0x3ab   :  { %v776_v13 = vpop.xlane.xlu1 %775 }
 0x3ac   :  { %v780_v14 = vsub.f32 %v772_v5, %v776_v13 }
 0x3ae   :  { %v782_v15 = vmul.f32 1.442695, %v780_v14 }
 0x3af   :  { %v779_v16 = vpop.xlane.xlu1 %778 }
 0x3b0   :  { %3120 = vpow2.f32 %v782_v15  ;;  %v781_v17 = vsub.f32 %v773_v11, %v779_v16 }
 0x3b2   :  { %v784_v18 = vmul.f32 1.442695, %v781_v17 }
 0x3b4   :  { %3122 = vpow2.f32 %v784_v18 }
 0x3bd   :  { %v3121_v19 = vpop.eup %3120 }
 0x3be   :  { %v786_v20 = vsel %vm41_vm0, %v3121_v19, 0.0 }
 0x3bf   :  { %787 = vadd.xlane.f32.xlu0 %v786_v20 }
 0x3c1   :  { %v3123_v21 = vpop.eup %3122 }
 0x3c2   :  { %v789_v22 = vsel %vm41_vm0, %v3123_v21, 0.0 }
 0x3c3   :  { %790 = vadd.xlane.f32.xlu1 %v789_v22 }
 0x3d4   :  { %3116 = vperm.xlu1 %3114, %v3115_v27  }
 0x448   :  { %v788_v28 = vpop.xlane.xlu0 %787 }
 0x449   :  { %3124 = vrcp.f32 %v788_v28 }
 0x44c   :  { %v791_v29 = vpop.xlane.xlu1 %790 }
 0x44d   :  { %3126 = vrcp.f32 %v791_v29 }
 0x450   :  { %v3117_v30 = vpop.permute.xlu1 %3116 }
 0x451   :  { %v3118_v31 = vunpack.i.l.bf16 %v3117_v30  ;;  %v3119_v32 = vunpack.i.h.bf16 %v3117_v30 }
 0x453   :  { %v3621_v33 = vmul.f32 %v3118_v31, %v2912_v60  ;;  %v3623_v36 = vmul.f32 %v3119_v32, %v2913_v62 }
 0x455   :  { %v3626_v37 = vmul.f32 1e-09, %v3621_v33  ;;  %v3632_v43 = vmul.f32 1e-09, %v3623_v36  ;;  %vm1120_vm8 = vcmp.gt.f32.partialorder %v3621_v33, 0.0  ;;  %vm1121_vm9 = vcmp.gt.f32.partialorder %v3623_v36, 0.0 }
 0x456   :  { %v3125_v34 = vpop.eup %3124 }
 0x457   :  { %v793_v35 = vmul.f32 %v3125_v34, %v3121_v19 }
 0x459   :  { %v796_v38 = vmul.f32 %v793_v35, %v3621_v33 }
 0x45a   :  { %v3127_v39 = vpop.eup %3126 }
 0x45b   :  { %v798_v40 = vadd.f32 %v796_v38, %v3626_v37  ;;  %v795_v41 = vmul.f32 %v3127_v39, %v3123_v21 }
 0x45d   :  { %v800_v42 = vsel %vm41_vm0, %v798_v40, 0.0  ;;  %v797_v44 = vmul.f32 %v795_v41, %v3623_v36 }
 0x45e   :  { %801 = vadd.xlane.f32.xlu1 %v800_v42 }
 0x45f   :  { %v799_v45 = vadd.f32 %v797_v44, %v3632_v43 }
 0x461   :  { %v803_v46 = vsel %vm41_vm0, %v799_v45, 0.0 }
 0x462   :  { %804 = vadd.xlane.f32.xlu0 %v803_v46 }
 0x4e7   :  { %v802_v47 = vpop.xlane.xlu1 %801 }
 0x4e8   :  { %v806_v52 = vmax.f32 %v802_v47, 1e-09 }
 0x4ea   :  { %3128 = vrcp.f32 %v806_v52 }
 0x4eb   :  { %v805_v53 = vpop.xlane.xlu0 %804 }
 0x4ec   :  { %v807_v54 = vmax.f32 %v805_v53, 1e-09 }
 0x4ee   :  { %3130 = vrcp.f32 %v807_v54 }
 0x4f7   :  { %v3129_v55 = vpop.eup %3128 }
 0x4f8   :  { %v810_v57 = vmul.f32 %v3129_v55, %v798_v40 }
 0x4fa   :  { %v812_v58 = vsel %vm41_vm0, %v810_v57, 0.0 }
 0x4fb   :  { %v3131_v59 = vpop.eup %3130  ;;  %v813_v60 = vrot.slane %v812_v58, 4 }
 0x4fc   :  { %v811_v61 = vmul.f32 %v3131_v59, %v799_v45 }
 0x4fd   :  { %v814_v62 = vadd.f32 %v813_v60, %v812_v58 }
 0x4fe   :  { %v819_v1 = vsel %vm41_vm0, %v811_v61, 0.0 }
 0x4ff   :  { %v815_v3 = vrot.slane %v814_v62, 2  ;;  %v820_v4 = vrot.slane %v819_v1, 4 }
 0x501   :  { %v816_v5 = vadd.f32 %v815_v3, %v814_v62  ;;  %v821_v8 = vadd.f32 %v820_v4, %v819_v1 }
 0x503   :  { %v817_v9 = vrot.slane %v816_v5, 1  ;;  %v822_v10 = vrot.slane %v821_v8, 2 }
 0x505   :  { %v818_v11 = vadd.f32 %v817_v9, %v816_v5  ;;  %v823_v12 = vadd.f32 %v822_v10, %v821_v8 }
 0x507   :  { %v826_v13 = vmax.f32 %v818_v11, 1e-09  ;;  %v824_v14 = vrot.slane %v823_v12, 1 }
 0x509   :  { %3132 = vrcp.f32 %v826_v13  ;;  %v825_v15 = vadd.f32 %v824_v14, %v823_v12 }
 0x50b   :  { %v827_v16 = vmax.f32 %v825_v15, 1e-09 }
 0x50d   :  { %3134 = vrcp.f32 %v827_v16 }
 0x516   :  { %v3133_v17 = vpop.eup %3132 }
 0x517   :  { %v830_v18 = vmul.f32 %v3133_v17, %v810_v57 }
 0x519   :  { %v832_v19 = vsel %vm41_vm0, %v830_v18, 0.0 }
 0x51a   :  { %v3135_v20 = vpop.eup %3134  ;;  %833 = vadd.xlane.f32.xlu0 %v832_v19 }
 0x51b   :  { %v831_v21 = vmul.f32 %v3135_v20, %v811_v61 }
 0x51d   :  { %v835_v22 = vsel %vm41_vm0, %v831_v21, 0.0 }
 0x51e   :  { %836 = vadd.xlane.f32.xlu0 %v835_v22 }
 0x5a3   :  { %v834_v23 = vpop.xlane.xlu0 %833 }
 0x5a4   :  { %v838_v24 = vmax.f32 %v834_v23, 1e-09 }
 0x5a6   :  { %3136 = vrcp.f32 %v838_v24 }
 0x5a7   :  { %v837_v25 = vpop.xlane.xlu0 %836 }
 0x5a8   :  { %v839_v26 = vmax.f32 %v837_v25, 1e-09 }
 0x5aa   :  { %3138 = vrcp.f32 %v839_v26 }
 0x5b3   :  { %v3137_v27 = vpop.eup %3136 }
 0x5b4   :  { %v842_v28 = vmul.f32 %v3137_v27, %v830_v18 }
 0x5b6   :  { %v844_v29 = vsel %vm41_vm0, %v842_v28, 0.0 }
 0x5b7   :  { %v3139_v30 = vpop.eup %3138  ;;  %v845_v31 = vrot.slane %v844_v29, 4 }
 0x5b8   :  { %v843_v32 = vmul.f32 %v3139_v30, %v831_v21 }
 0x5b9   :  { %v846_v34 = vadd.f32 %v845_v31, %v844_v29 }
 0x5ba   :  { %v851_v35 = vsel %vm41_vm0, %v843_v32, 0.0 }
 0x5bb   :  { %v847_v38 = vrot.slane %v846_v34, 2  ;;  %v852_v39 = vrot.slane %v851_v35, 4 }
 0x5bd   :  { %v848_v40 = vadd.f32 %v847_v38, %v846_v34  ;;  %v853_v41 = vadd.f32 %v852_v39, %v851_v35 }
 0x5bf   :  { %v849_v42 = vrot.slane %v848_v40, 1  ;;  %v854_v44 = vrot.slane %v853_v41, 2 }
 0x5c1   :  { %v850_v45 = vadd.f32 %v849_v42, %v848_v40  ;;  %v855_v46 = vadd.f32 %v854_v44, %v853_v41 }
 0x5c3   :  { %v858_v47 = vmax.f32 %v850_v45, 1e-09  ;;  %v856_v52 = vrot.slane %v855_v46, 1 }
 0x5c5   :  { %3140 = vrcp.f32 %v858_v47  ;;  %v857_v53 = vadd.f32 %v856_v52, %v855_v46 }
 0x5c7   :  { %v859_v54 = vmax.f32 %v857_v53, 1e-09 }
 0x5c9   :  { %3142 = vrcp.f32 %v859_v54 }
 0x5d2   :  { %v3141_v55 = vpop.eup %3140 }
 0x5d3   :  { %v862_v57 = vmul.f32 %v3141_v55, %v842_v28 }
 0x5d5   :  { %v864_v58 = vsel %vm41_vm0, %v862_v57, 0.0 }
 0x5d6   :  { %v3143_v59 = vpop.eup %3142  ;;  %865 = vadd.xlane.f32.xlu0 %v864_v58 }
 0x5d7   :  { %v863_v60 = vmul.f32 %v3143_v59, %v843_v32 }
 0x5d9   :  { %v867_v61 = vsel %vm41_vm0, %v863_v60, 0.0 }
 0x5da   :  { %868 = vadd.xlane.f32.xlu0 %v867_v61 }
 0x65f   :  { %v866_v62 = vpop.xlane.xlu0 %865 }
 0x660   :  { %v870_v1 = vmax.f32 %v866_v62, 1e-09 }
 0x662   :  { %3144 = vrcp.f32 %v870_v1 }
 0x663   :  { %v869_v3 = vpop.xlane.xlu0 %868 }
 0x664   :  { %v871_v4 = vmax.f32 %v869_v3, 1e-09 }
 0x666   :  { %3146 = vrcp.f32 %v871_v4 }
 0x66f   :  { %v3145_v5 = vpop.eup %3144 }
 0x670   :  { %v874_v8 = vmul.f32 %v3145_v5, %v862_v57 }
 0x672   :  { %v876_v9 = vsel %vm41_vm0, %v874_v8, 0.0 }
 0x673   :  { %v3147_v10 = vpop.eup %3146  ;;  %v877_v11 = vrot.slane %v876_v9, 4 }
 0x674   :  { %v875_v12 = vmul.f32 %v3147_v10, %v863_v60 }
 0x675   :  { %v878_v13 = vadd.f32 %v877_v11, %v876_v9 }
 0x676   :  { %v883_v14 = vsel %vm41_vm0, %v875_v12, 0.0 }
 0x677   :  { %v879_v15 = vrot.slane %v878_v13, 2  ;;  %v884_v16 = vrot.slane %v883_v14, 4 }
 0x679   :  { %v880_v17 = vadd.f32 %v879_v15, %v878_v13  ;;  %v885_v18 = vadd.f32 %v884_v16, %v883_v14 }
 0x67b   :  { %v881_v19 = vrot.slane %v880_v17, 1  ;;  %v886_v20 = vrot.slane %v885_v18, 2 }
 0x67d   :  { %v882_v21 = vadd.f32 %v881_v19, %v880_v17  ;;  %v887_v22 = vadd.f32 %v886_v20, %v885_v18 }
 0x67f   :  { %v890_v23 = vmax.f32 %v882_v21, 1e-09  ;;  %v888_v24 = vrot.slane %v887_v22, 1 }
 0x681   :  { %3148 = vrcp.f32 %v890_v23  ;;  %v889_v25 = vadd.f32 %v888_v24, %v887_v22 }
 0x683   :  { %v891_v26 = vmax.f32 %v889_v25, 1e-09 }
 0x685   :  { %3150 = vrcp.f32 %v891_v26 }
 0x68e   :  { %v3149_v27 = vpop.eup %3148 }
 0x68f   :  { %v894_v28 = vmul.f32 %v3149_v27, %v874_v8 }
 0x691   :  { %v896_v29 = vsel %vm41_vm0, %v894_v28, 0.0 }
 0x692   :  { %v3151_v30 = vpop.eup %3150  ;;  %897 = vadd.xlane.f32.xlu0 %v896_v29 }
 0x693   :  { %v895_v31 = vmul.f32 %v3151_v30, %v875_v12 }
 0x695   :  { %v899_v32 = vsel %vm41_vm0, %v895_v31, 0.0 }
 0x696   :  { %900 = vadd.xlane.f32.xlu0 %v899_v32 }
 0x71b   :  { %v898_v34 = vpop.xlane.xlu0 %897 }
 0x71c   :  { %v902_v35 = vmax.f32 %v898_v34, 1e-09 }
 0x71e   :  { %3152 = vrcp.f32 %v902_v35 }
 0x71f   :  { %v901_v38 = vpop.xlane.xlu0 %900 }
 0x720   :  { %v903_v39 = vmax.f32 %v901_v38, 1e-09 }
 0x722   :  { %3154 = vrcp.f32 %v903_v39 }
 0x72b   :  { %v3153_v40 = vpop.eup %3152 }
 0x72c   :  { %v906_v41 = vmul.f32 %v3153_v40, %v894_v28 }
 0x72e   :  { %v908_v42 = vsel %vm41_vm0, %v906_v41, 0.0 }
 0x72f   :  { %v3155_v44 = vpop.eup %3154  ;;  %v909_v45 = vrot.slane %v908_v42, 4 }
 0x730   :  { %v907_v46 = vmul.f32 %v3155_v44, %v895_v31 }
 0x731   :  { %v910_v47 = vadd.f32 %v909_v45, %v908_v42 }
 0x732   :  { %v915_v52 = vsel %vm41_vm0, %v907_v46, 0.0 }
 0x733   :  { %v911_v53 = vrot.slane %v910_v47, 2  ;;  %v916_v54 = vrot.slane %v915_v52, 4 }
 0x735   :  { %v912_v55 = vadd.f32 %v911_v53, %v910_v47  ;;  %v917_v57 = vadd.f32 %v916_v54, %v915_v52 }
 0x737   :  { %v913_v58 = vrot.slane %v912_v55, 1  ;;  %v918_v59 = vrot.slane %v917_v57, 2 }
 0x739   :  { %v914_v60 = vadd.f32 %v913_v58, %v912_v55  ;;  %v919_v61 = vadd.f32 %v918_v59, %v917_v57 }
 0x73b   :  { %v922_v62 = vmax.f32 %v914_v60, 1e-09  ;;  %v920_v1 = vrot.slane %v919_v61, 1 }
 0x73d   :  { %3156 = vrcp.f32 %v922_v62  ;;  %v921_v3 = vadd.f32 %v920_v1, %v919_v61 }
 0x73f   :  { %v923_v4 = vmax.f32 %v921_v3, 1e-09 }
 0x741   :  { %3158 = vrcp.f32 %v923_v4 }
 0x74a   :  { %v3157_v5 = vpop.eup %3156 }
 0x74b   :  { %v926_v8 = vmul.f32 %v3157_v5, %v906_v41 }
 0x74d   :  { %v928_v9 = vsel %vm41_vm0, %v926_v8, 0.0 }
 0x74e   :  { %v3159_v10 = vpop.eup %3158  ;;  %929 = vadd.xlane.f32.xlu1 %v928_v9 }
 0x74f   :  { %v927_v11 = vmul.f32 %v3159_v10, %v907_v46 }
 0x751   :  { %v931_v12 = vsel %vm41_vm0, %v927_v11, 0.0 }
 0x752   :  { %932 = vadd.xlane.f32.xlu0 %v931_v12 }
 0x7d7   :  { %v930_v13 = vpop.xlane.xlu1 %929 }
 0x7d8   :  { %v934_v14 = vmax.f32 %v930_v13, 1e-09 }
 0x7da   :  { %3160 = vrcp.f32 %v934_v14 }
 0x7db   :  { %v933_v15 = vpop.xlane.xlu0 %932 }
 0x7dc   :  { %v935_v16 = vmax.f32 %v933_v15, 1e-09 }
 0x7de   :  { %3162 = vrcp.f32 %v935_v16 }
 0x7e7   :  { %v3161_v17 = vpop.eup %3160 }
 0x7e8   :  { %v938_v18 = vmul.f32 %v3161_v17, %v926_v8 }
 0x7ea   :  { %v940_v19 = vsel %vm41_vm0, %v938_v18, 0.0 }
 0x7eb   :  { %v3163_v20 = vpop.eup %3162  ;;  %v941_v21 = vrot.slane %v940_v19, 4 }
 0x7ec   :  { %v939_v22 = vmul.f32 %v3163_v20, %v927_v11 }
 0x7ed   :  { %v942_v23 = vadd.f32 %v941_v21, %v940_v19 }
 0x7ee   :  { %v947_v24 = vsel %vm41_vm0, %v939_v22, 0.0 }
 0x7ef   :  { %v943_v25 = vrot.slane %v942_v23, 2  ;;  %v948_v26 = vrot.slane %v947_v24, 4 }
 0x7f1   :  { %v944_v27 = vadd.f32 %v943_v25, %v942_v23  ;;  %v949_v28 = vadd.f32 %v948_v26, %v947_v24 }
 0x7f3   :  { %v945_v29 = vrot.slane %v944_v27, 1  ;;  %v950_v30 = vrot.slane %v949_v28, 2 }
 0x7f5   :  { %v946_v31 = vadd.f32 %v945_v29, %v944_v27  ;;  %v951_v32 = vadd.f32 %v950_v30, %v949_v28 }
 0x7f7   :  { %v954_v34 = vmax.f32 %v946_v31, 1e-09  ;;  %v952_v35 = vrot.slane %v951_v32, 1 }
 0x7f9   :  { %3164 = vrcp.f32 %v954_v34  ;;  %v953_v38 = vadd.f32 %v952_v35, %v951_v32 }
 0x7fb   :  { %v955_v39 = vmax.f32 %v953_v38, 1e-09 }
 0x7fd   :  { %3166 = vrcp.f32 %v955_v39 }
 0x806   :  { %v3165_v40 = vpop.eup %3164 }
 0x807   :  { %v958_v41 = vmul.f32 %v3165_v40, %v938_v18 }
 0x809   :  { %v960_v42 = vsel %vm41_vm0, %v958_v41, 0.0 }
 0x80a   :  { %v3167_v44 = vpop.eup %3166  ;;  %961 = vadd.xlane.f32.xlu1 %v960_v42 }
 0x80b   :  { %v959_v45 = vmul.f32 %v3167_v44, %v939_v22 }
 0x80d   :  { %v963_v46 = vsel %vm41_vm0, %v959_v45, 0.0 }
 0x80e   :  { %964 = vadd.xlane.f32.xlu0 %v963_v46 }
 0x893   :  { %v962_v47 = vpop.xlane.xlu1 %961 }
 0x894   :  { %v966_v52 = vmax.f32 %v962_v47, 1e-09 }
 0x896   :  { %3168 = vrcp.f32 %v966_v52 }
 0x897   :  { %v965_v53 = vpop.xlane.xlu0 %964 }
 0x898   :  { %v967_v54 = vmax.f32 %v965_v53, 1e-09 }
 0x89a   :  { %3170 = vrcp.f32 %v967_v54 }
 0x8a3   :  { %v3169_v55 = vpop.eup %3168 }
 0x8a4   :  { %v970_v57 = vmul.f32 %v3169_v55, %v958_v41 }
 0x8a6   :  { %v972_v58 = vsel %vm41_vm0, %v970_v57, 0.0 }
 0x8a7   :  { %v3171_v59 = vpop.eup %3170  ;;  %v973_v60 = vrot.slane %v972_v58, 4 }
 0x8a8   :  { %v971_v61 = vmul.f32 %v3171_v59, %v959_v45 }
 0x8a9   :  { %v974_v62 = vadd.f32 %v973_v60, %v972_v58 }
 0x8aa   :  { %v979_v1 = vsel %vm41_vm0, %v971_v61, 0.0 }
 0x8ab   :  { %v975_v3 = vrot.slane %v974_v62, 2  ;;  %v980_v4 = vrot.slane %v979_v1, 4 }
 0x8ad   :  { %v976_v5 = vadd.f32 %v975_v3, %v974_v62  ;;  %v981_v8 = vadd.f32 %v980_v4, %v979_v1 }
 0x8af   :  { %v977_v9 = vrot.slane %v976_v5, 1  ;;  %v982_v10 = vrot.slane %v981_v8, 2 }
 0x8b1   :  { %v978_v11 = vadd.f32 %v977_v9, %v976_v5  ;;  %v983_v12 = vadd.f32 %v982_v10, %v981_v8 }
 0x8b3   :  { %v986_v13 = vmax.f32 %v978_v11, 1e-09  ;;  %v984_v14 = vrot.slane %v983_v12, 1 }
 0x8b5   :  { %3172 = vrcp.f32 %v986_v13  ;;  %v985_v15 = vadd.f32 %v984_v14, %v983_v12 }
 0x8b7   :  { %v987_v16 = vmax.f32 %v985_v15, 1e-09 }
 0x8b9   :  { %3174 = vrcp.f32 %v987_v16 }
 0x8c2   :  { %v3173_v17 = vpop.eup %3172 }
 0x8c3   :  { %v990_v18 = vmul.f32 %v3173_v17, %v970_v57 }
 0x8c5   :  { %v992_v19 = vsel %vm41_vm0, %v990_v18, 0.0 }
 0x8c6   :  { %v3175_v20 = vpop.eup %3174  ;;  %993 = vadd.xlane.f32.xlu1 %v992_v19 }
 0x8c7   :  { %v991_v21 = vmul.f32 %v3175_v20, %v971_v61 }
 0x8c9   :  { %v995_v22 = vsel %vm41_vm0, %v991_v21, 0.0 }
 0x8ca   :  { %996 = vadd.xlane.f32.xlu0 %v995_v22 }
 0x94f   :  { %v994_v23 = vpop.xlane.xlu1 %993 }
 0x950   :  { %v998_v24 = vmax.f32 %v994_v23, 1e-09 }
 0x952   :  { %3176 = vrcp.f32 %v998_v24 }
 0x953   :  { %v997_v25 = vpop.xlane.xlu0 %996 }
 0x954   :  { %v999_v26 = vmax.f32 %v997_v25, 1e-09 }
 0x956   :  { %3178 = vrcp.f32 %v999_v26 }
 0x95f   :  { %v3177_v27 = vpop.eup %3176 }
 0x960   :  { %v1002_v28 = vmul.f32 %v3177_v27, %v990_v18 }
 0x962   :  { %v1004_v29 = vsel %vm41_vm0, %v1002_v28, 0.0 }
 0x963   :  { %v3179_v30 = vpop.eup %3178  ;;  %v1005_v31 = vrot.slane %v1004_v29, 4 }
 0x964   :  { %v1003_v32 = vmul.f32 %v3179_v30, %v991_v21 }
 0x965   :  { %v1006_v34 = vadd.f32 %v1005_v31, %v1004_v29 }
 0x966   :  { %v1011_v35 = vsel %vm41_vm0, %v1003_v32, 0.0 }
 0x967   :  { %v1007_v38 = vrot.slane %v1006_v34, 2  ;;  %v1012_v39 = vrot.slane %v1011_v35, 4 }
 0x969   :  { %v1008_v40 = vadd.f32 %v1007_v38, %v1006_v34  ;;  %v1013_v41 = vadd.f32 %v1012_v39, %v1011_v35 }
 0x96b   :  { %v1009_v42 = vrot.slane %v1008_v40, 1  ;;  %v1014_v44 = vrot.slane %v1013_v41, 2 }
 0x96d   :  { %v1010_v45 = vadd.f32 %v1009_v42, %v1008_v40  ;;  %v1015_v46 = vadd.f32 %v1014_v44, %v1013_v41 }
 0x96f   :  { %v1018_v47 = vmax.f32 %v1010_v45, 1e-09  ;;  %v1016_v52 = vrot.slane %v1015_v46, 1 }
 0x971   :  { %3180 = vrcp.f32 %v1018_v47  ;;  %v1017_v53 = vadd.f32 %v1016_v52, %v1015_v46 }
 0x973   :  { %v1019_v54 = vmax.f32 %v1017_v53, 1e-09 }
 0x975   :  { %3182 = vrcp.f32 %v1019_v54 }
 0x97e   :  { %v3181_v55 = vpop.eup %3180 }
 0x97f   :  { %v1022_v57 = vmul.f32 %v3181_v55, %v1002_v28 }
 0x981   :  { %v1024_v58 = vsel %vm41_vm0, %v1022_v57, 0.0 }
 0x982   :  { %v3183_v59 = vpop.eup %3182  ;;  %1025 = vadd.xlane.f32.xlu1 %v1024_v58 }
 0x983   :  { %v1023_v60 = vmul.f32 %v3183_v59, %v1003_v32 }
 0x985   :  { %v1027_v61 = vsel %vm41_vm0, %v1023_v60, 0.0 }
 0x986   :  { %1028 = vadd.xlane.f32.xlu0 %v1027_v61 }
 0xa0b   :  { %v1026_v62 = vpop.xlane.xlu1 %1025 }
 0xa0c   :  { %v1030_v1 = vmax.f32 %v1026_v62, 1e-09 }
 0xa0e   :  { %3184 = vrcp.f32 %v1030_v1 }
 0xa0f   :  { %v1029_v3 = vpop.xlane.xlu0 %1028 }
 0xa10   :  { %v1031_v4 = vmax.f32 %v1029_v3, 1e-09 }
 0xa12   :  { %3186 = vrcp.f32 %v1031_v4 }
 0xa1b   :  { %v3185_v5 = vpop.eup %3184 }
 0xa1c   :  { %v1034_v8 = vmul.f32 %v3185_v5, %v1022_v57 }
 0xa1e   :  { %v1036_v9 = vsel %vm41_vm0, %v1034_v8, 0.0 }
 0xa1f   :  { %v3187_v10 = vpop.eup %3186  ;;  %v1037_v11 = vrot.slane %v1036_v9, 4 }
 0xa20   :  { %v1035_v12 = vmul.f32 %v3187_v10, %v1023_v60 }
 0xa21   :  { %v1038_v13 = vadd.f32 %v1037_v11, %v1036_v9 }
 0xa22   :  { %v1043_v14 = vsel %vm41_vm0, %v1035_v12, 0.0 }
 0xa23   :  { %v1039_v15 = vrot.slane %v1038_v13, 2  ;;  %v1044_v16 = vrot.slane %v1043_v14, 4 }
 0xa25   :  { %v1040_v17 = vadd.f32 %v1039_v15, %v1038_v13  ;;  %v1045_v18 = vadd.f32 %v1044_v16, %v1043_v14 }
 0xa27   :  { %v1041_v19 = vrot.slane %v1040_v17, 1  ;;  %v1046_v20 = vrot.slane %v1045_v18, 2 }
 0xa29   :  { %v1042_v21 = vadd.f32 %v1041_v19, %v1040_v17  ;;  %v1047_v22 = vadd.f32 %v1046_v20, %v1045_v18 }
 0xa2b   :  { %v1050_v23 = vmax.f32 %v1042_v21, 1e-09  ;;  %v1048_v24 = vrot.slane %v1047_v22, 1 }
 0xa2d   :  { %3188 = vrcp.f32 %v1050_v23  ;;  %v1049_v25 = vadd.f32 %v1048_v24, %v1047_v22 }
 0xa2f   :  { %v1051_v26 = vmax.f32 %v1049_v25, 1e-09 }
 0xa31   :  { %3190 = vrcp.f32 %v1051_v26 }
 0xa3a   :  { %v3189_v27 = vpop.eup %3188 }
 0xa3b   :  { %v1054_v28 = vmul.f32 %v3189_v27, %v1034_v8 }
 0xa3d   :  { %v1056_v29 = vsel %vm41_vm0, %v1054_v28, 0.0 }
 0xa3e   :  { %v3191_v30 = vpop.eup %3190  ;;  %1057 = vadd.xlane.f32.xlu1 %v1056_v29 }
 0xa3f   :  { %v1055_v31 = vmul.f32 %v3191_v30, %v1035_v12 }
 0xa41   :  { %v1059_v32 = vsel %vm41_vm0, %v1055_v31, 0.0 }
 0xa42   :  { %1060 = vadd.xlane.f32.xlu0 %v1059_v32 }
 0xac7   :  { %v1058_v34 = vpop.xlane.xlu1 %1057 }
 0xac8   :  { %v1062_v35 = vmax.f32 %v1058_v34, 1e-09 }
 0xaca   :  { %3192 = vrcp.f32 %v1062_v35 }
 0xacb   :  { %v1061_v38 = vpop.xlane.xlu0 %1060 }
 0xacc   :  { %v1063_v39 = vmax.f32 %v1061_v38, 1e-09 }
 0xace   :  { %3194 = vrcp.f32 %v1063_v39 }
 0xad7   :  { %v3193_v40 = vpop.eup %3192 }
 0xad8   :  { %v1066_v41 = vmul.f32 %v3193_v40, %v1054_v28 }
 0xada   :  { %v1068_v42 = vsel %vm41_vm0, %v1066_v41, 0.0 }
 0xadb   :  { %v3195_v44 = vpop.eup %3194  ;;  %v1069_v45 = vrot.slane %v1068_v42, 4 }
 0xadc   :  { %v1067_v46 = vmul.f32 %v3195_v44, %v1055_v31 }
 0xadd   :  { %v1070_v47 = vadd.f32 %v1069_v45, %v1068_v42 }
 0xade   :  { %v1075_v52 = vsel %vm41_vm0, %v1067_v46, 0.0 }
 0xadf   :  { %v1071_v53 = vrot.slane %v1070_v47, 2  ;;  %v1076_v54 = vrot.slane %v1075_v52, 4 }
 0xae1   :  { %v1072_v55 = vadd.f32 %v1071_v53, %v1070_v47  ;;  %v1077_v57 = vadd.f32 %v1076_v54, %v1075_v52 }
 0xae3   :  { %v1073_v58 = vrot.slane %v1072_v55, 1  ;;  %v1078_v59 = vrot.slane %v1077_v57, 2 }
 0xae5   :  { %v1074_v60 = vadd.f32 %v1073_v58, %v1072_v55  ;;  %v1079_v61 = vadd.f32 %v1078_v59, %v1077_v57 }
 0xae7   :  { %v1082_v62 = vmax.f32 %v1074_v60, 1e-09  ;;  %v1080_v1 = vrot.slane %v1079_v61, 1 }
 0xae9   :  { %3196 = vrcp.f32 %v1082_v62  ;;  %v1081_v3 = vadd.f32 %v1080_v1, %v1079_v61 }
 0xaeb   :  { %v1083_v4 = vmax.f32 %v1081_v3, 1e-09 }
 0xaed   :  { %3198 = vrcp.f32 %v1083_v4 }
 0xaf6   :  { %v3197_v5 = vpop.eup %3196 }
 0xaf7   :  { %v1086_v8 = vmul.f32 %v3197_v5, %v1066_v41 }
 0xaf9   :  { %v1088_v9 = vsel %vm41_vm0, %v1086_v8, 0.0 }
 0xafa   :  { %v3199_v10 = vpop.eup %3198  ;;  %1089 = vadd.xlane.f32.xlu1 %v1088_v9 }
 0xafb   :  { %v1087_v11 = vmul.f32 %v3199_v10, %v1067_v46 }
 0xafd   :  { %v1091_v12 = vsel %vm41_vm0, %v1087_v11, 0.0 }
 0xafe   :  { %1092 = vadd.xlane.f32.xlu0 %v1091_v12 }
 0xb83   :  { %v1090_v13 = vpop.xlane.xlu1 %1089 }
 0xb84   :  { %v1094_v14 = vmax.f32 %v1090_v13, 1e-09 }
 0xb86   :  { %3200 = vrcp.f32 %v1094_v14 }
 0xb87   :  { %v1093_v15 = vpop.xlane.xlu0 %1092 }
 0xb88   :  { %v1095_v16 = vmax.f32 %v1093_v15, 1e-09 }
 0xb8a   :  { %3202 = vrcp.f32 %v1095_v16 }
 0xb93   :  { %v3201_v17 = vpop.eup %3200 }
 0xb94   :  { %v1098_v18 = vmul.f32 %v3201_v17, %v1086_v8 }
 0xb96   :  { %v1100_v19 = vsel %vm41_vm0, %v1098_v18, 0.0 }
 0xb97   :  { %v3203_v20 = vpop.eup %3202  ;;  %v1101_v21 = vrot.slane %v1100_v19, 4 }
 0xb98   :  { %v1099_v22 = vmul.f32 %v3203_v20, %v1087_v11 }
 0xb99   :  { %v1102_v23 = vadd.f32 %v1101_v21, %v1100_v19 }
 0xb9a   :  { %v1107_v24 = vsel %vm41_vm0, %v1099_v22, 0.0 }
 0xb9b   :  { %v1103_v25 = vrot.slane %v1102_v23, 2  ;;  %v1108_v26 = vrot.slane %v1107_v24, 4 }
 0xb9d   :  { %v1104_v27 = vadd.f32 %v1103_v25, %v1102_v23  ;;  %v1109_v28 = vadd.f32 %v1108_v26, %v1107_v24 }
 0xb9f   :  { %v1105_v29 = vrot.slane %v1104_v27, 1  ;;  %v1110_v30 = vrot.slane %v1109_v28, 2 }
 0xba1   :  { %v1106_v31 = vadd.f32 %v1105_v29, %v1104_v27  ;;  %v1111_v32 = vadd.f32 %v1110_v30, %v1109_v28 }
 0xba3   :  { %v1114_v34 = vmax.f32 %v1106_v31, 1e-09  ;;  %v1112_v35 = vrot.slane %v1111_v32, 1 }
 0xba5   :  { %3204 = vrcp.f32 %v1114_v34  ;;  %v1113_v38 = vadd.f32 %v1112_v35, %v1111_v32 }
 0xba7   :  { %v1115_v39 = vmax.f32 %v1113_v38, 1e-09 }
 0xba9   :  { %3206 = vrcp.f32 %v1115_v39 }
 0xbb2   :  { %v3205_v40 = vpop.eup %3204 }
 0xbb3   :  { %v1118_v41 = vmul.f32 %v3205_v40, %v1098_v18 }
 0xbb5   :  { %v1122_v42 = vsel %vm1120_vm8, %v1118_v41, -1e+30 }
 0xbb6   :  { %v3207_v44 = vpop.eup %3206  ;;  %v1124_v45 = vsel %vm41_vm0, %v1122_v42, -inf }
 0xbb7   :  { %1125 = vmax.xlane.f32.xlu1 %v1124_v45  ;;  %v1119_v46 = vmul.f32 %v3207_v44, %v1099_v22  ;;  %v3728_v44 = vmul.f32 0.5, %v3603_v6 }
 0xbb9   :  { %v1123_v47 = vsel %vm1121_vm9, %v1119_v46, -1e+30 }
 0xbba   :  { %v1127_v52 = vsel %vm41_vm0, %v1123_v47, -inf }
 0xbbb   :  { %1128 = vmax.xlane.f32.xlu0 %v1127_v52 }
 0xc40   :  { %v1126_v53 = vpop.xlane.xlu1 %1125 }
 0xc41   :  { %vm1130_vm10 = vcmp.ge.f32.partialorder %v1122_v42, %v1126_v53 }
 0xc42   :  { %v1132_v54 = vsel %vm1130_vm10, %v3591_v56, 8 }
 0xc43   :  { %v1134_v55 = vsel %vm41_vm0, %v1132_v54, 2147483647 }
 0xc44   :  { %v1129_v57 = vpop.xlane.xlu0 %1128  ;;  %v1136_v58 = vshra.s32 %v1134_v55, 16  ;;  %v1135_v3 = vand.u32 65535, %v1134_v55 }
 0xc45   :  { %vm1131_vm11 = vcmp.ge.f32.partialorder %v1123_v47, %v1129_v57 }
 0xc46   :  { %v1133_v59 = vsel %vm1131_vm11, %v3591_v56, 8  ;;  %v1138_v60 = vcvt.s32.f32 %v1136_v58  ;;  %v1137_v5 = vcvt.s32.f32 %v1135_v3 }
 0xc47   :  { %v1149_v61 = vsel %vm41_vm0, %v1133_v59, 2147483647 }
 0xc48   :  { %1139 = vmin.xlane.f32.xlu1 %v1138_v60  ;;  %v1151_v62 = vshra.s32 %v1149_v61, 16  ;;  %v1150_v8 = vand.u32 65535, %v1149_v61 }
 0xc4a   :  { %v1153_v1 = vcvt.s32.f32 %v1151_v62  ;;  %v1152_v11 = vcvt.s32.f32 %v1150_v8 }
 0xc4c   :  { %1154 = vmin.xlane.f32.xlu0 %v1153_v1 }
 0xcd1   :  { %v1140_v4 = vpop.xlane.xlu1 %1139 }
 0xcd2   :  { %vm1141_vm12 = vcmp.eq.f32.partialorder %v1138_v60, %v1140_v4  ;;  %v1146_v13 = vcvt.f32.s32 %v1140_v4 }
 0xcd3   :  { %v1142_v9 = vsel %vm1141_vm12, %v1137_v5, inf }
 0xcd4   :  { %1143 = vmin.xlane.f32.xlu1 %v1142_v9  ;;  %v1147_v15 = vshll.u32 %v1146_v13, 16 }
 0xcd5   :  { %v1155_v10 = vpop.xlane.xlu0 %1154 }
 0xcd6   :  { %vm1156_vm13 = vcmp.eq.f32.partialorder %v1153_v1, %v1155_v10  ;;  %v1161_v16 = vcvt.f32.s32 %v1155_v10 }
 0xcd7   :  { %v1157_v12 = vsel %vm1156_vm13, %v1152_v11, inf }
 0xcd8   :  { %1158 = vmin.xlane.f32.xlu0 %v1157_v12  ;;  %v1162_v20 = vshll.u32 %v1161_v16, 16 }
 0xd5d   :  { %v1144_v14 = vpop.xlane.xlu1 %1143 }
 0xd5e   :  { %v1145_v17 = vcvt.f32.s32 %v1144_v14 }
 0xd60   :  { %v1148_v18 = vadd.s32 %v1147_v15, %v1145_v17 }
 0xd61   :  { %v1159_v19 = vpop.xlane.xlu0 %1158 }
 0xd62   :  { %vm1164_vm14 = vcmp.eq.s32.totalorder %v3591_v56, %v1148_v18  ;;  %v1160_v21 = vcvt.f32.s32 %v1159_v19 }
 0xd63   :  { %v2920_v22 = vsel %vm1164_vm14, 1.0, %v3428_v2 }
 0xd64   :  { %v1170_v23 = vmul.f32 %v2920_v22, %v3621_v33  ;;  %v1163_v24 = vadd.s32 %v1162_v20, %v1160_v21 }
 0xd66   :  { %vm1165_vm15 = vcmp.eq.s32.totalorder %v3591_v56, %v1163_v24  ;;  %3049 = vmatmul.mubr.msk.f32.vlgmr.msra.gmra.mxu1 %vm41_vm0, %v1170_v23 }
 0xd67   :  { %v2921_v25 = vsel %vm1165_vm15, 1.0, %v3428_v2  ;;  %3057 = vmatpush3.xpose.msk.msra.mxu1 %vm460_vm3, %v3570_v49  ;;  %3058 = vmatprep.mubr.msk.f32.mxu1 %vm3429_vm1, %v3428_v2 }
 0xd68   :  { %v1171_v26 = vmul.f32 %v2921_v25, %v3623_v36  ;;  %3066 = vmatprep.subr.mxu1 %v3428_v2 }
 0xd6a   :  { %3054 = vmatmul.mubr.msk.f32.vlgmr.msra.gmra.mxu0 %vm41_vm0, %v1171_v26 }
 0xd6b   :  { %3062 = vmatpush3.xpose.msk.msra.mxu0 %vm460_vm3, %v3582_v51  ;;  %3063 = vmatprep.mubr.msk.f32.mxu0 %vm3429_vm1, %v3428_v2 }
 0xd6c   :  { %3071 = vmatprep.subr.mxu0 %v3428_v2 }
 0xe26   :  { %v1241_v27 = vpop.f32.mrf.mxu1 }
 0xe27   :  { %3059 = vmatmul.mubr.msk.f32.vlgmr.msra.gmra.mxu1 %vm460_vm3, %v1241_v27 }
 0xe28   :  { %3067 = vmatpush3.msra.mxu1 %v1170_v23  ;;  %v3050_v28 = vpop.f32.mrf.mxu1  ;;  %3068 = vmatprep.mubr.msk.f32.mxu1 %vm3429_vm1, %v3428_v2 }
 0xe29   :  { %3076 = vmatprep.subr.mxu1 %v3428_v2 }
 0xe2a   :  { %v1314_v29 = vpop.f32.mrf.mxu0 }
 0xe2b   :  { %3064 = vmatmul.mubr.msk.f32.vlgmr.msra.gmra.mxu0 %vm460_vm3, %v1314_v29 }
 0xe2c   :  { %3072 = vmatpush3.msra.mxu0 %v1171_v26  ;;  %v3055_v30 = vpop.f32.mrf.mxu0  ;;  %3073 = vmatprep.mubr.msk.f32.mxu0 %vm3429_vm1, %v3428_v2 }
 0xe2d   :  { %3081 = vmatprep.subr.mxu0 %v3428_v2 }
 0xee7   :  { %v1387_v31 = vpop.f32.mrf.mxu1 }
 0xee8   :  { %3069 = vmatmul.mubr.msk.f32.vlgmr.msra.gmra.mxu1 %vm41_vm0, %v1387_v31 }
 0xee9   :  { %3077 = vmatpush3.msra.mxu1 %v3565_v48  ;;  %v3060_v32 = vpop.f32.mrf.mxu1  ;;  %3078 = vmatprep.mubr.msk.f32.mxu1 %vm3429_vm1, %v3428_v2  ;;  %v3724_v48 = vmul.f32 0.5, %v3599_v0 }
 0xeea   :  { %3086 = vmatprep.subr.mxu1 %v3428_v2 }
 0xeeb   :  { %v1460_v34 = vpop.f32.mrf.mxu0 }
 0xeec   :  { %3074 = vmatmul.mubr.msk.f32.vlgmr.msra.gmra.mxu0 %vm41_vm0, %v1460_v34 }
 0xeed   :  { %3082 = vmatpush3.msra.mxu0 %v3574_v50  ;;  %v3065_v35 = vpop.f32.mrf.mxu0  ;;  %3083 = vmatprep.mubr.msk.f32.mxu0 %vm3429_vm1, %v3428_v2 }
 0xeee   :  { %3091 = vmatprep.subr.mxu0 %v3428_v2 }
 0xfa8   :  { %v1533_v38 = vpop.f32.mrf.mxu1 }
 0xfa9   :  { %v1612_v39 = vmul.f32 0.5, %v1533_v38 }
 0xfaa   :  { %v3070_v40 = vpop.f32.mrf.mxu1 }
 0xfab   :  { %v1614_v41 = vadd.f32 %v1612_v39, %v3724_v48 }
 0xfac   :  { %v1606_v42 = vpop.f32.mrf.mxu0 }
 0xfad   :  { %v1616_v45 = vmul.f32 20.0, %v1614_v41  ;;  %v1613_v50 = vmul.f32 0.5, %v1606_v42 }
 0xfae   :  { %v3075_v46 = vpop.f32.mrf.mxu0 }
 0xfaf   :  { %v1615_v47 = vadd.f32 %v1613_v50, %v3728_v44  ;;  %v1618_v52 = vadd.f32 %v1616_v45, %v3597_v63 }
 0xfb1   :  { %v1617_v53 = vmul.f32 20.0, %v1615_v47  ;;  %v1620_v54 = vsel %vm41_vm0, %v1618_v52, -inf }
 0xfb2   :  { %1621 = vmax.xlane.f32.xlu1 %v1620_v54 }
 0xfb3   :  { %v1619_v0 = vadd.f32 %v1617_v53, %v3605_v7 }
 0xfb5   :  { %v1623_v55 = vsel %vm41_vm0, %v1619_v0, -inf }
 0xfb6   :  { %1624 = vmax.xlane.f32.xlu0 %v1623_v55 }
0x103b   :  { %v1622_v57 = vpop.xlane.xlu1 %1621 }
0x103c   :  { %v1626_v58 = vsub.f32 %v1618_v52, %v1622_v57 }
0x103e   :  { %v1628_v6 = vmul.f32 1.442695, %v1626_v58 }
0x103f   :  { %v1625_v59 = vpop.xlane.xlu0 %1624 }
0x1040   :  { %3208 = vpow2.f32 %v1628_v6  ;;  %v1627_v60 = vsub.f32 %v1619_v0, %v1625_v59 }
0x1042   :  { %v1630_v61 = vmul.f32 1.442695, %v1627_v60 }
0x1044   :  { %3210 = vpow2.f32 %v1630_v61 }
0x104d   :  { %v3209_v62 = vpop.eup %3208 }
0x104e   :  { %v1632_v1 = vsel %vm41_vm0, %v3209_v62, 0.0 }
0x104f   :  { %1633 = vadd.xlane.f32.xlu1 %v1632_v1 }
0x1051   :  { %v3211_v3 = vpop.eup %3210 }
0x1052   :  { %v1635_v4 = vsel %vm41_vm0, %v3211_v3, 0.0 }
0x1053   :  { %1636 = vadd.xlane.f32.xlu0 %v1635_v4 }
0x10d8   :  { %v1634_v5 = vpop.xlane.xlu1 %1633 }
0x10d9   :  { %3212 = vrcp.f32 %v1634_v5 }
0x10dc   :  { %v1637_v8 = vpop.xlane.xlu0 %1636 }
0x10dd   :  { %3214 = vrcp.f32 %v1637_v8 }
0x10e6   :  { %v3213_v9 = vpop.eup %3212 }
0x10e7   :  { %v1639_v10 = vmul.f32 %v3213_v9, %v3209_v62 }
0x10e9   :  { %v1642_v11 = vmul.f32 %v1639_v10, %v3621_v33 }
0x10ea   :  { %v3215_v12 = vpop.eup %3214 }
0x10eb   :  { %v1644_v13 = vadd.f32 %v1642_v11, %v3626_v37  ;;  %v1641_v14 = vmul.f32 %v3215_v12, %v3211_v3 }
0x10ed   :  { %v1646_v15 = vsel %vm41_vm0, %v1644_v13, 0.0  ;;  %v1643_v16 = vmul.f32 %v1641_v14, %v3623_v36 }
0x10ee   :  { %1647 = vadd.xlane.f32.xlu1 %v1646_v15 }
0x10ef   :  { %v1645_v17 = vadd.f32 %v1643_v16, %v3632_v43 }
0x10f1   :  { %v1649_v18 = vsel %vm41_vm0, %v1645_v17, 0.0 }
0x10f2   :  { %1650 = vadd.xlane.f32.xlu0 %v1649_v18 }
0x1177   :  { %v1648_v19 = vpop.xlane.xlu1 %1647 }
0x1178   :  { %v1652_v20 = vmax.f32 %v1648_v19, 1e-09 }
0x117a   :  { %3216 = vrcp.f32 %v1652_v20 }
0x117b   :  { %v1651_v21 = vpop.xlane.xlu0 %1650 }
0x117c   :  { %v1653_v22 = vmax.f32 %v1651_v21, 1e-09 }
0x117e   :  { %3218 = vrcp.f32 %v1653_v22 }
0x1187   :  { %v3217_v23 = vpop.eup %3216 }
0x1188   :  { %v1656_v24 = vmul.f32 %v3217_v23, %v1644_v13 }
0x118a   :  { %v1658_v25 = vsel %vm41_vm0, %v1656_v24, 0.0 }
0x118b   :  { %v3219_v26 = vpop.eup %3218  ;;  %v1659_v27 = vrot.slane %v1658_v25, 4 }
0x118c   :  { %v1657_v28 = vmul.f32 %v3219_v26, %v1645_v17 }
0x118d   :  { %v1660_v29 = vadd.f32 %v1659_v27, %v1658_v25 }
0x118e   :  { %v1665_v30 = vsel %vm41_vm0, %v1657_v28, 0.0 }
0x118f   :  { %v1661_v31 = vrot.slane %v1660_v29, 2  ;;  %v1666_v32 = vrot.slane %v1665_v30, 4 }
0x1191   :  { %v1662_v34 = vadd.f32 %v1661_v31, %v1660_v29  ;;  %v1667_v35 = vadd.f32 %v1666_v32, %v1665_v30 }
0x1193   :  { %v1663_v38 = vrot.slane %v1662_v34, 1  ;;  %v1668_v39 = vrot.slane %v1667_v35, 2 }
0x1195   :  { %v1664_v40 = vadd.f32 %v1663_v38, %v1662_v34  ;;  %v1669_v41 = vadd.f32 %v1668_v39, %v1667_v35 }
0x1197   :  { %v1672_v42 = vmax.f32 %v1664_v40, 1e-09  ;;  %v1670_v45 = vrot.slane %v1669_v41, 1 }
0x1199   :  { %3220 = vrcp.f32 %v1672_v42  ;;  %v1671_v50 = vadd.f32 %v1670_v45, %v1669_v41 }
0x119b   :  { %v1673_v46 = vmax.f32 %v1671_v50, 1e-09 }
0x119d   :  { %3222 = vrcp.f32 %v1673_v46 }
0x11a6   :  { %v3221_v47 = vpop.eup %3220 }
0x11a7   :  { %v1676_v52 = vmul.f32 %v3221_v47, %v1656_v24 }
0x11a9   :  { %v1678_v53 = vsel %vm41_vm0, %v1676_v52, 0.0 }
0x11aa   :  { %v3223_v54 = vpop.eup %3222  ;;  %1679 = vadd.xlane.f32.xlu1 %v1678_v53 }
0x11ab   :  { %v1677_v0 = vmul.f32 %v3223_v54, %v1657_v28 }
0x11ad   :  { %v1681_v55 = vsel %vm41_vm0, %v1677_v0, 0.0 }
0x11ae   :  { %1682 = vadd.xlane.f32.xlu0 %v1681_v55 }
0x1233   :  { %v1680_v57 = vpop.xlane.xlu1 %1679 }
0x1234   :  { %v1684_v58 = vmax.f32 %v1680_v57, 1e-09 }
0x1236   :  { %3224 = vrcp.f32 %v1684_v58 }
0x1237   :  { %v1683_v6 = vpop.xlane.xlu0 %1682 }
0x1238   :  { %v1685_v59 = vmax.f32 %v1683_v6, 1e-09 }
0x123a   :  { %3226 = vrcp.f32 %v1685_v59 }
0x1243   :  { %v3225_v60 = vpop.eup %3224 }
0x1244   :  { %v1688_v61 = vmul.f32 %v3225_v60, %v1676_v52 }
0x1246   :  { %v1690_v62 = vsel %vm41_vm0, %v1688_v61, 0.0 }
0x1247   :  { %v3227_v1 = vpop.eup %3226  ;;  %v1691_v3 = vrot.slane %v1690_v62, 4 }
0x1248   :  { %v1689_v4 = vmul.f32 %v3227_v1, %v1677_v0 }
0x1249   :  { %v1692_v5 = vadd.f32 %v1691_v3, %v1690_v62 }
0x124a   :  { %v1697_v8 = vsel %vm41_vm0, %v1689_v4, 0.0 }
0x124b   :  { %v1693_v9 = vrot.slane %v1692_v5, 2  ;;  %v1698_v10 = vrot.slane %v1697_v8, 4 }
0x124d   :  { %v1694_v11 = vadd.f32 %v1693_v9, %v1692_v5  ;;  %v1699_v12 = vadd.f32 %v1698_v10, %v1697_v8 }
0x124f   :  { %v1695_v13 = vrot.slane %v1694_v11, 1  ;;  %v1700_v14 = vrot.slane %v1699_v12, 2 }
0x1251   :  { %v1696_v15 = vadd.f32 %v1695_v13, %v1694_v11  ;;  %v1701_v16 = vadd.f32 %v1700_v14, %v1699_v12 }
0x1253   :  { %v1704_v17 = vmax.f32 %v1696_v15, 1e-09  ;;  %v1702_v18 = vrot.slane %v1701_v16, 1 }
0x1255   :  { %3228 = vrcp.f32 %v1704_v17  ;;  %v1703_v19 = vadd.f32 %v1702_v18, %v1701_v16 }
0x1257   :  { %v1705_v20 = vmax.f32 %v1703_v19, 1e-09 }
0x1259   :  { %3230 = vrcp.f32 %v1705_v20 }
0x1262   :  { %v3229_v21 = vpop.eup %3228 }
0x1263   :  { %v1708_v22 = vmul.f32 %v3229_v21, %v1688_v61 }
0x1265   :  { %v1710_v23 = vsel %vm41_vm0, %v1708_v22, 0.0 }
0x1266   :  { %v3231_v24 = vpop.eup %3230  ;;  %1711 = vadd.xlane.f32.xlu1 %v1710_v23 }
0x1267   :  { %v1709_v25 = vmul.f32 %v3231_v24, %v1689_v4 }
0x1269   :  { %v1713_v26 = vsel %vm41_vm0, %v1709_v25, 0.0 }
0x126a   :  { %1714 = vadd.xlane.f32.xlu0 %v1713_v26 }
0x12ef   :  { %v1712_v27 = vpop.xlane.xlu1 %1711 }
0x12f0   :  { %v1716_v28 = vmax.f32 %v1712_v27, 1e-09 }
0x12f2   :  { %3232 = vrcp.f32 %v1716_v28 }
0x12f3   :  { %v1715_v29 = vpop.xlane.xlu0 %1714 }
0x12f4   :  { %v1717_v30 = vmax.f32 %v1715_v29, 1e-09 }
0x12f6   :  { %3234 = vrcp.f32 %v1717_v30 }
0x12ff   :  { %v3233_v31 = vpop.eup %3232 }
0x1300   :  { %v1720_v32 = vmul.f32 %v3233_v31, %v1708_v22 }
0x1302   :  { %v1722_v34 = vsel %vm41_vm0, %v1720_v32, 0.0 }
0x1303   :  { %v3235_v35 = vpop.eup %3234  ;;  %v1723_v38 = vrot.slane %v1722_v34, 4 }
0x1304   :  { %v1721_v39 = vmul.f32 %v3235_v35, %v1709_v25 }
0x1305   :  { %v1724_v40 = vadd.f32 %v1723_v38, %v1722_v34 }
0x1306   :  { %v1729_v41 = vsel %vm41_vm0, %v1721_v39, 0.0 }
0x1307   :  { %v1725_v42 = vrot.slane %v1724_v40, 2  ;;  %v1730_v45 = vrot.slane %v1729_v41, 4 }
0x1309   :  { %v1726_v50 = vadd.f32 %v1725_v42, %v1724_v40  ;;  %v1731_v46 = vadd.f32 %v1730_v45, %v1729_v41 }
0x130b   :  { %v1727_v47 = vrot.slane %v1726_v50, 1  ;;  %v1732_v52 = vrot.slane %v1731_v46, 2 }
0x130d   :  { %v1728_v53 = vadd.f32 %v1727_v47, %v1726_v50  ;;  %v1733_v54 = vadd.f32 %v1732_v52, %v1731_v46 }
0x130f   :  { %v1736_v0 = vmax.f32 %v1728_v53, 1e-09  ;;  %v1734_v55 = vrot.slane %v1733_v54, 1 }
0x1311   :  { %3236 = vrcp.f32 %v1736_v0  ;;  %v1735_v57 = vadd.f32 %v1734_v55, %v1733_v54 }
0x1313   :  { %v1737_v58 = vmax.f32 %v1735_v57, 1e-09 }
0x1315   :  { %3238 = vrcp.f32 %v1737_v58 }
0x131e   :  { %v3237_v6 = vpop.eup %3236 }
0x131f   :  { %v1740_v59 = vmul.f32 %v3237_v6, %v1720_v32 }
0x1321   :  { %v1742_v60 = vsel %vm41_vm0, %v1740_v59, 0.0 }
0x1322   :  { %v3239_v61 = vpop.eup %3238  ;;  %1743 = vadd.xlane.f32.xlu1 %v1742_v60 }
0x1323   :  { %v1741_v62 = vmul.f32 %v3239_v61, %v1721_v39 }
0x1325   :  { %v1745_v1 = vsel %vm41_vm0, %v1741_v62, 0.0 }
0x1326   :  { %1746 = vadd.xlane.f32.xlu0 %v1745_v1 }
0x13ab   :  { %v1744_v3 = vpop.xlane.xlu1 %1743 }
0x13ac   :  { %v1748_v4 = vmax.f32 %v1744_v3, 1e-09 }
0x13ae   :  { %3240 = vrcp.f32 %v1748_v4 }
0x13af   :  { %v1747_v5 = vpop.xlane.xlu0 %1746 }
0x13b0   :  { %v1749_v8 = vmax.f32 %v1747_v5, 1e-09 }
0x13b2   :  { %3242 = vrcp.f32 %v1749_v8 }
0x13bb   :  { %v3241_v9 = vpop.eup %3240 }
0x13bc   :  { %v1752_v10 = vmul.f32 %v3241_v9, %v1740_v59 }
0x13be   :  { %v1754_v11 = vsel %vm41_vm0, %v1752_v10, 0.0 }
0x13bf   :  { %v3243_v12 = vpop.eup %3242  ;;  %v1755_v13 = vrot.slane %v1754_v11, 4 }
0x13c0   :  { %v1753_v14 = vmul.f32 %v3243_v12, %v1741_v62 }
0x13c1   :  { %v1756_v15 = vadd.f32 %v1755_v13, %v1754_v11 }
0x13c2   :  { %v1761_v16 = vsel %vm41_vm0, %v1753_v14, 0.0 }
0x13c3   :  { %v1757_v17 = vrot.slane %v1756_v15, 2  ;;  %v1762_v18 = vrot.slane %v1761_v16, 4 }
0x13c5   :  { %v1758_v19 = vadd.f32 %v1757_v17, %v1756_v15  ;;  %v1763_v20 = vadd.f32 %v1762_v18, %v1761_v16 }
0x13c7   :  { %v1759_v21 = vrot.slane %v1758_v19, 1  ;;  %v1764_v22 = vrot.slane %v1763_v20, 2 }
0x13c9   :  { %v1760_v23 = vadd.f32 %v1759_v21, %v1758_v19  ;;  %v1765_v24 = vadd.f32 %v1764_v22, %v1763_v20 }
0x13cb   :  { %v1768_v25 = vmax.f32 %v1760_v23, 1e-09  ;;  %v1766_v26 = vrot.slane %v1765_v24, 1 }
0x13cd   :  { %3244 = vrcp.f32 %v1768_v25  ;;  %v1767_v27 = vadd.f32 %v1766_v26, %v1765_v24 }
0x13cf   :  { %v1769_v28 = vmax.f32 %v1767_v27, 1e-09 }
0x13d1   :  { %3246 = vrcp.f32 %v1769_v28 }
0x13da   :  { %v3245_v29 = vpop.eup %3244 }
0x13db   :  { %v1772_v30 = vmul.f32 %v3245_v29, %v1752_v10 }
0x13dd   :  { %v1774_v31 = vsel %vm41_vm0, %v1772_v30, 0.0 }
0x13de   :  { %v3247_v32 = vpop.eup %3246  ;;  %1775 = vadd.xlane.f32.xlu1 %v1774_v31 }
0x13df   :  { %v1773_v34 = vmul.f32 %v3247_v32, %v1753_v14 }
0x13e1   :  { %v1777_v35 = vsel %vm41_vm0, %v1773_v34, 0.0 }
0x13e2   :  { %1778 = vadd.xlane.f32.xlu0 %v1777_v35 }
0x1467   :  { %v1776_v38 = vpop.xlane.xlu1 %1775 }
0x1468   :  { %v1780_v39 = vmax.f32 %v1776_v38, 1e-09 }
0x146a   :  { %3248 = vrcp.f32 %v1780_v39 }
0x146b   :  { %v1779_v40 = vpop.xlane.xlu0 %1778 }
0x146c   :  { %v1781_v41 = vmax.f32 %v1779_v40, 1e-09 }
0x146e   :  { %3250 = vrcp.f32 %v1781_v41 }
0x1477   :  { %v3249_v42 = vpop.eup %3248 }
0x1478   :  { %v1784_v45 = vmul.f32 %v3249_v42, %v1772_v30 }
0x147a   :  { %v1786_v50 = vsel %vm41_vm0, %v1784_v45, 0.0 }
0x147b   :  { %v3251_v46 = vpop.eup %3250  ;;  %v1787_v47 = vrot.slane %v1786_v50, 4 }
0x147c   :  { %v1785_v52 = vmul.f32 %v3251_v46, %v1773_v34 }
0x147d   :  { %v1788_v53 = vadd.f32 %v1787_v47, %v1786_v50 }
0x147e   :  { %v1793_v54 = vsel %vm41_vm0, %v1785_v52, 0.0 }
0x147f   :  { %v1789_v0 = vrot.slane %v1788_v53, 2  ;;  %v1794_v55 = vrot.slane %v1793_v54, 4 }
0x1481   :  { %v1790_v57 = vadd.f32 %v1789_v0, %v1788_v53  ;;  %v1795_v58 = vadd.f32 %v1794_v55, %v1793_v54 }
0x1483   :  { %v1791_v6 = vrot.slane %v1790_v57, 1  ;;  %v1796_v59 = vrot.slane %v1795_v58, 2 }
0x1485   :  { %v1792_v60 = vadd.f32 %v1791_v6, %v1790_v57  ;;  %v1797_v61 = vadd.f32 %v1796_v59, %v1795_v58 }
0x1487   :  { %v1800_v62 = vmax.f32 %v1792_v60, 1e-09  ;;  %v1798_v1 = vrot.slane %v1797_v61, 1 }
0x1489   :  { %3252 = vrcp.f32 %v1800_v62  ;;  %v1799_v3 = vadd.f32 %v1798_v1, %v1797_v61 }
0x148b   :  { %v1801_v4 = vmax.f32 %v1799_v3, 1e-09 }
0x148d   :  { %3254 = vrcp.f32 %v1801_v4 }
0x1496   :  { %v3253_v5 = vpop.eup %3252 }
0x1497   :  { %v1804_v8 = vmul.f32 %v3253_v5, %v1784_v45 }
0x1499   :  { %v1806_v9 = vsel %vm41_vm0, %v1804_v8, 0.0 }
0x149a   :  { %v3255_v10 = vpop.eup %3254  ;;  %1807 = vadd.xlane.f32.xlu1 %v1806_v9 }
0x149b   :  { %v1805_v11 = vmul.f32 %v3255_v10, %v1785_v52 }
0x149d   :  { %v1809_v12 = vsel %vm41_vm0, %v1805_v11, 0.0 }
0x149e   :  { %1810 = vadd.xlane.f32.xlu0 %v1809_v12 }
0x1523   :  { %v1808_v13 = vpop.xlane.xlu1 %1807 }
0x1524   :  { %v1812_v14 = vmax.f32 %v1808_v13, 1e-09 }
0x1526   :  { %3256 = vrcp.f32 %v1812_v14 }
0x1527   :  { %v1811_v15 = vpop.xlane.xlu0 %1810 }
0x1528   :  { %v1813_v16 = vmax.f32 %v1811_v15, 1e-09 }
0x152a   :  { %3258 = vrcp.f32 %v1813_v16 }
0x1533   :  { %v3257_v17 = vpop.eup %3256 }
0x1534   :  { %v1816_v18 = vmul.f32 %v3257_v17, %v1804_v8 }
0x1536   :  { %v1818_v19 = vsel %vm41_vm0, %v1816_v18, 0.0 }
0x1537   :  { %v3259_v20 = vpop.eup %3258  ;;  %v1819_v21 = vrot.slane %v1818_v19, 4 }
0x1538   :  { %v1817_v22 = vmul.f32 %v3259_v20, %v1805_v11 }
0x1539   :  { %v1820_v23 = vadd.f32 %v1819_v21, %v1818_v19 }
0x153a   :  { %v1825_v24 = vsel %vm41_vm0, %v1817_v22, 0.0 }
0x153b   :  { %v1821_v25 = vrot.slane %v1820_v23, 2  ;;  %v1826_v26 = vrot.slane %v1825_v24, 4 }
0x153d   :  { %v1822_v27 = vadd.f32 %v1821_v25, %v1820_v23  ;;  %v1827_v28 = vadd.f32 %v1826_v26, %v1825_v24 }
0x153f   :  { %v1823_v29 = vrot.slane %v1822_v27, 1  ;;  %v1828_v30 = vrot.slane %v1827_v28, 2 }
0x1541   :  { %v1824_v31 = vadd.f32 %v1823_v29, %v1822_v27  ;;  %v1829_v32 = vadd.f32 %v1828_v30, %v1827_v28 }
0x1543   :  { %v1832_v34 = vmax.f32 %v1824_v31, 1e-09  ;;  %v1830_v35 = vrot.slane %v1829_v32, 1 }
0x1545   :  { %3260 = vrcp.f32 %v1832_v34  ;;  %v1831_v38 = vadd.f32 %v1830_v35, %v1829_v32 }
0x1547   :  { %v1833_v39 = vmax.f32 %v1831_v38, 1e-09 }
0x1549   :  { %3262 = vrcp.f32 %v1833_v39 }
0x1552   :  { %v3261_v40 = vpop.eup %3260 }
0x1553   :  { %v1836_v41 = vmul.f32 %v3261_v40, %v1816_v18 }
0x1555   :  { %v1838_v42 = vsel %vm41_vm0, %v1836_v41, 0.0 }
0x1556   :  { %v3263_v45 = vpop.eup %3262  ;;  %1839 = vadd.xlane.f32.xlu1 %v1838_v42 }
0x1557   :  { %v1837_v50 = vmul.f32 %v3263_v45, %v1817_v22 }
0x1559   :  { %v1841_v46 = vsel %vm41_vm0, %v1837_v50, 0.0 }
0x155a   :  { %1842 = vadd.xlane.f32.xlu0 %v1841_v46 }
0x15df   :  { %v1840_v47 = vpop.xlane.xlu1 %1839 }
0x15e0   :  { %v1844_v52 = vmax.f32 %v1840_v47, 1e-09 }
0x15e2   :  { %3264 = vrcp.f32 %v1844_v52 }
0x15e3   :  { %v1843_v53 = vpop.xlane.xlu0 %1842 }
0x15e4   :  { %v1845_v54 = vmax.f32 %v1843_v53, 1e-09 }
0x15e6   :  { %3266 = vrcp.f32 %v1845_v54 }
0x15ef   :  { %v3265_v0 = vpop.eup %3264 }
0x15f0   :  { %v1848_v55 = vmul.f32 %v3265_v0, %v1836_v41 }
0x15f2   :  { %v1850_v57 = vsel %vm41_vm0, %v1848_v55, 0.0 }
0x15f3   :  { %v3267_v58 = vpop.eup %3266  ;;  %v1851_v6 = vrot.slane %v1850_v57, 4 }
0x15f4   :  { %v1849_v59 = vmul.f32 %v3267_v58, %v1837_v50 }
0x15f5   :  { %v1852_v60 = vadd.f32 %v1851_v6, %v1850_v57 }
0x15f6   :  { %v1857_v61 = vsel %vm41_vm0, %v1849_v59, 0.0 }
0x15f7   :  { %v1853_v62 = vrot.slane %v1852_v60, 2  ;;  %v1858_v1 = vrot.slane %v1857_v61, 4 }
0x15f9   :  { %v1854_v3 = vadd.f32 %v1853_v62, %v1852_v60  ;;  %v1859_v4 = vadd.f32 %v1858_v1, %v1857_v61 }
0x15fb   :  { %v1855_v5 = vrot.slane %v1854_v3, 1  ;;  %v1860_v8 = vrot.slane %v1859_v4, 2 }
0x15fd   :  { %v1856_v9 = vadd.f32 %v1855_v5, %v1854_v3  ;;  %v1861_v10 = vadd.f32 %v1860_v8, %v1859_v4 }
0x15ff   :  { %v1864_v11 = vmax.f32 %v1856_v9, 1e-09  ;;  %v1862_v12 = vrot.slane %v1861_v10, 1 }
0x1601   :  { %3268 = vrcp.f32 %v1864_v11  ;;  %v1863_v13 = vadd.f32 %v1862_v12, %v1861_v10 }
0x1603   :  { %v1865_v14 = vmax.f32 %v1863_v13, 1e-09 }
0x1605   :  { %3270 = vrcp.f32 %v1865_v14 }
0x160e   :  { %v3269_v15 = vpop.eup %3268 }
0x160f   :  { %v1868_v16 = vmul.f32 %v3269_v15, %v1848_v55 }
0x1611   :  { %v1870_v17 = vsel %vm41_vm0, %v1868_v16, 0.0 }
0x1612   :  { %v3271_v18 = vpop.eup %3270  ;;  %1871 = vadd.xlane.f32.xlu1 %v1870_v17 }
0x1613   :  { %v1869_v19 = vmul.f32 %v3271_v18, %v1849_v59 }
0x1615   :  { %v1873_v20 = vsel %vm41_vm0, %v1869_v19, 0.0 }
0x1616   :  { %1874 = vadd.xlane.f32.xlu0 %v1873_v20 }
0x169b   :  { %v1872_v21 = vpop.xlane.xlu1 %1871 }
0x169c   :  { %v1876_v22 = vmax.f32 %v1872_v21, 1e-09 }
0x169e   :  { %3272 = vrcp.f32 %v1876_v22 }
0x169f   :  { %v1875_v23 = vpop.xlane.xlu0 %1874 }
0x16a0   :  { %v1877_v24 = vmax.f32 %v1875_v23, 1e-09 }
0x16a2   :  { %3274 = vrcp.f32 %v1877_v24 }
0x16ab   :  { %v3273_v25 = vpop.eup %3272 }
0x16ac   :  { %v1880_v26 = vmul.f32 %v3273_v25, %v1868_v16 }
0x16ae   :  { %v1882_v27 = vsel %vm41_vm0, %v1880_v26, 0.0 }
0x16af   :  { %v3275_v28 = vpop.eup %3274  ;;  %v1883_v29 = vrot.slane %v1882_v27, 4 }
0x16b0   :  { %v1881_v30 = vmul.f32 %v3275_v28, %v1869_v19 }
0x16b1   :  { %v1884_v31 = vadd.f32 %v1883_v29, %v1882_v27 }
0x16b2   :  { %v1889_v32 = vsel %vm41_vm0, %v1881_v30, 0.0 }
0x16b3   :  { %v1885_v34 = vrot.slane %v1884_v31, 2  ;;  %v1890_v35 = vrot.slane %v1889_v32, 4 }
0x16b5   :  { %v1886_v38 = vadd.f32 %v1885_v34, %v1884_v31  ;;  %v1891_v39 = vadd.f32 %v1890_v35, %v1889_v32 }
0x16b7   :  { %v1887_v40 = vrot.slane %v1886_v38, 1  ;;  %v1892_v41 = vrot.slane %v1891_v39, 2 }
0x16b9   :  { %v1888_v42 = vadd.f32 %v1887_v40, %v1886_v38  ;;  %v1893_v45 = vadd.f32 %v1892_v41, %v1891_v39 }
0x16bb   :  { %v1896_v50 = vmax.f32 %v1888_v42, 1e-09  ;;  %v1894_v46 = vrot.slane %v1893_v45, 1 }
0x16bd   :  { %3276 = vrcp.f32 %v1896_v50  ;;  %v1895_v47 = vadd.f32 %v1894_v46, %v1893_v45 }
0x16bf   :  { %v1897_v52 = vmax.f32 %v1895_v47, 1e-09 }
0x16c1   :  { %3278 = vrcp.f32 %v1897_v52 }
0x16ca   :  { %v3277_v53 = vpop.eup %3276 }
0x16cb   :  { %v1900_v54 = vmul.f32 %v3277_v53, %v1880_v26 }
0x16cd   :  { %v1902_v0 = vsel %vm41_vm0, %v1900_v54, 0.0 }
0x16ce   :  { %v3279_v55 = vpop.eup %3278  ;;  %1903 = vadd.xlane.f32.xlu1 %v1902_v0 }
0x16cf   :  { %v1901_v57 = vmul.f32 %v3279_v55, %v1881_v30 }
0x16d1   :  { %v1905_v58 = vsel %vm41_vm0, %v1901_v57, 0.0 }
0x16d2   :  { %1906 = vadd.xlane.f32.xlu0 %v1905_v58 }
0x1757   :  { %v1904_v6 = vpop.xlane.xlu1 %1903 }
0x1758   :  { %v1908_v59 = vmax.f32 %v1904_v6, 1e-09 }
0x175a   :  { %3280 = vrcp.f32 %v1908_v59 }
0x175b   :  { %v1907_v60 = vpop.xlane.xlu0 %1906 }
0x175c   :  { %v1909_v61 = vmax.f32 %v1907_v60, 1e-09 }
0x175e   :  { %3282 = vrcp.f32 %v1909_v61 }
0x1767   :  { %v3281_v62 = vpop.eup %3280 }
0x1768   :  { %v1912_v1 = vmul.f32 %v3281_v62, %v1900_v54 }
0x176a   :  { %v1914_v3 = vsel %vm41_vm0, %v1912_v1, 0.0 }
0x176b   :  { %v3283_v4 = vpop.eup %3282  ;;  %v1915_v5 = vrot.slane %v1914_v3, 4 }
0x176c   :  { %v1913_v8 = vmul.f32 %v3283_v4, %v1901_v57 }
0x176d   :  { %v1916_v9 = vadd.f32 %v1915_v5, %v1914_v3 }
0x176e   :  { %v1921_v10 = vsel %vm41_vm0, %v1913_v8, 0.0 }
0x176f   :  { %v1917_v11 = vrot.slane %v1916_v9, 2  ;;  %v1922_v12 = vrot.slane %v1921_v10, 4 }
0x1771   :  { %v1918_v13 = vadd.f32 %v1917_v11, %v1916_v9  ;;  %v1923_v14 = vadd.f32 %v1922_v12, %v1921_v10 }
0x1773   :  { %v1919_v15 = vrot.slane %v1918_v13, 1  ;;  %v1924_v16 = vrot.slane %v1923_v14, 2 }
0x1775   :  { %v1920_v17 = vadd.f32 %v1919_v15, %v1918_v13  ;;  %v1925_v18 = vadd.f32 %v1924_v16, %v1923_v14 }
0x1777   :  { %v1928_v19 = vmax.f32 %v1920_v17, 1e-09  ;;  %v1926_v20 = vrot.slane %v1925_v18, 1 }
0x1779   :  { %3284 = vrcp.f32 %v1928_v19  ;;  %v1927_v21 = vadd.f32 %v1926_v20, %v1925_v18 }
0x177b   :  { %v1929_v22 = vmax.f32 %v1927_v21, 1e-09 }
0x177d   :  { %3286 = vrcp.f32 %v1929_v22 }
0x1786   :  { %v3285_v23 = vpop.eup %3284 }
0x1787   :  { %v1932_v24 = vmul.f32 %v3285_v23, %v1912_v1 }
0x1789   :  { %v1934_v25 = vsel %vm41_vm0, %v1932_v24, 0.0 }
0x178a   :  { %v3287_v26 = vpop.eup %3286  ;;  %1935 = vadd.xlane.f32.xlu1 %v1934_v25 }
0x178b   :  { %v1933_v27 = vmul.f32 %v3287_v26, %v1913_v8 }
0x178d   :  { %v1937_v28 = vsel %vm41_vm0, %v1933_v27, 0.0 }
0x178e   :  { %1938 = vadd.xlane.f32.xlu0 %v1937_v28 }
0x1813   :  { %v1936_v29 = vpop.xlane.xlu1 %1935 }
0x1814   :  { %v1940_v30 = vmax.f32 %v1936_v29, 1e-09 }
0x1816   :  { %3288 = vrcp.f32 %v1940_v30 }
0x1817   :  { %v1939_v31 = vpop.xlane.xlu0 %1938 }
0x1818   :  { %v1941_v32 = vmax.f32 %v1939_v31, 1e-09 }
0x181a   :  { %3290 = vrcp.f32 %v1941_v32 }
0x1823   :  { %v3289_v34 = vpop.eup %3288 }
0x1824   :  { %v1944_v35 = vmul.f32 %v3289_v34, %v1932_v24 }
0x1826   :  { %v1946_v38 = vsel %vm41_vm0, %v1944_v35, 0.0 }
0x1827   :  { %v3291_v39 = vpop.eup %3290  ;;  %v1947_v40 = vrot.slane %v1946_v38, 4 }
0x1828   :  { %v1945_v41 = vmul.f32 %v3291_v39, %v1933_v27 }
0x1829   :  { %v1948_v42 = vadd.f32 %v1947_v40, %v1946_v38 }
0x182a   :  { %v1953_v45 = vsel %vm41_vm0, %v1945_v41, 0.0 }
0x182b   :  { %v1949_v50 = vrot.slane %v1948_v42, 2  ;;  %v1954_v46 = vrot.slane %v1953_v45, 4 }
0x182d   :  { %v1950_v47 = vadd.f32 %v1949_v50, %v1948_v42  ;;  %v1955_v52 = vadd.f32 %v1954_v46, %v1953_v45 }
0x182f   :  { %v1951_v53 = vrot.slane %v1950_v47, 1  ;;  %v1956_v54 = vrot.slane %v1955_v52, 2 }
0x1831   :  { %v1952_v0 = vadd.f32 %v1951_v53, %v1950_v47  ;;  %v1957_v55 = vadd.f32 %v1956_v54, %v1955_v52 }
0x1833   :  { %v1960_v57 = vmax.f32 %v1952_v0, 1e-09  ;;  %v1958_v58 = vrot.slane %v1957_v55, 1 }
0x1835   :  { %3292 = vrcp.f32 %v1960_v57  ;;  %v1959_v6 = vadd.f32 %v1958_v58, %v1957_v55 }
0x1837   :  { %v1961_v59 = vmax.f32 %v1959_v6, 1e-09 }
0x1839   :  { %3294 = vrcp.f32 %v1961_v59 }
0x1842   :  { %v3293_v60 = vpop.eup %3292 }
0x1843   :  { %v1964_v61 = vmul.f32 %v3293_v60, %v1944_v35 }
0x1845   :  { %v1966_v62 = vsel %vm1120_vm8, %v1964_v61, -1e+30 }
0x1846   :  { %v3295_v1 = vpop.eup %3294  ;;  %v1968_v3 = vsel %vm41_vm0, %v1966_v62, -inf }
0x1847   :  { %1969 = vmax.xlane.f32.xlu1 %v1968_v3  ;;  %v1965_v4 = vmul.f32 %v3295_v1, %v1945_v41 }
0x1849   :  { %v1967_v5 = vsel %vm1121_vm9, %v1965_v4, -1e+30 }
0x184a   :  { %v1971_v8 = vsel %vm41_vm0, %v1967_v5, -inf }
0x184b   :  { %1972 = vmax.xlane.f32.xlu0 %v1971_v8 }
0x18d0   :  { %v1970_v9 = vpop.xlane.xlu1 %1969 }
0x18d1   :  { %vm1974_vm2 = vcmp.ge.f32.partialorder %v1966_v62, %v1970_v9 }
0x18d2   :  { %v1976_v10 = vsel %vm1974_vm2, %v3591_v56, 8 }
0x18d3   :  { %v1978_v11 = vsel %vm41_vm0, %v1976_v10, 2147483647 }
0x18d4   :  { %v1973_v12 = vpop.xlane.xlu0 %1972  ;;  %v1980_v13 = vshra.s32 %v1978_v11, 16  ;;  %v1979_v19 = vand.u32 65535, %v1978_v11 }
0x18d5   :  { %vm1975_vm4 = vcmp.ge.f32.partialorder %v1967_v5, %v1973_v12 }
0x18d6   :  { %v1977_v14 = vsel %vm1975_vm4, %v3591_v56, 8  ;;  %v1982_v15 = vcvt.s32.f32 %v1980_v13  ;;  %v1981_v21 = vcvt.s32.f32 %v1979_v19 }
0x18d7   :  { %v1993_v16 = vsel %vm41_vm0, %v1977_v14, 2147483647 }
0x18d8   :  { %1983 = vmin.xlane.f32.xlu1 %v1982_v15  ;;  %v1995_v17 = vshra.s32 %v1993_v16, 16  ;;  %v1994_v22 = vand.u32 65535, %v1993_v16 }
0x18da   :  { %v1997_v18 = vcvt.s32.f32 %v1995_v17  ;;  %v1996_v25 = vcvt.s32.f32 %v1994_v22 }
0x18dc   :  { %1998 = vmin.xlane.f32.xlu0 %v1997_v18 }
0x1961   :  { %v1984_v20 = vpop.xlane.xlu1 %1983 }
0x1962   :  { %vm1985_vm5 = vcmp.eq.f32.partialorder %v1982_v15, %v1984_v20  ;;  %v1990_v27 = vcvt.f32.s32 %v1984_v20 }
0x1963   :  { %v1986_v23 = vsel %vm1985_vm5, %v1981_v21, inf }
0x1964   :  { %1987 = vmin.xlane.f32.xlu1 %v1986_v23  ;;  %v1991_v29 = vshll.u32 %v1990_v27, 16 }
0x1965   :  { %v1999_v24 = vpop.xlane.xlu0 %1998 }
0x1966   :  { %vm2000_vm6 = vcmp.eq.f32.partialorder %v1997_v18, %v1999_v24  ;;  %v2005_v30 = vcvt.f32.s32 %v1999_v24 }
0x1967   :  { %v2001_v26 = vsel %vm2000_vm6, %v1996_v25, inf }
0x1968   :  { %2002 = vmin.xlane.f32.xlu0 %v2001_v26  ;;  %v2006_v35 = vshll.u32 %v2005_v30, 16 }
0x19ed   :  { %v1988_v28 = vpop.xlane.xlu1 %1987 }
0x19ee   :  { %v1989_v31 = vcvt.f32.s32 %v1988_v28 }
0x19f0   :  { %v1992_v32 = vadd.s32 %v1991_v29, %v1989_v31 }
0x19f1   :  { %v2003_v34 = vpop.xlane.xlu0 %2002 }
0x19f2   :  { %vm2008_vm7 = vcmp.eq.s32.totalorder %v3591_v56, %v1992_v32  ;;  %v2004_v38 = vcvt.f32.s32 %v2003_v34 }
0x19f3   :  { %v2930_v39 = vsel %vm2008_vm7, 1.0, %v3428_v2 }
0x19f4   :  { %v2014_v40 = vmul.f32 %v2930_v39, %v3621_v33  ;;  %v2007_v41 = vadd.s32 %v2006_v35, %v2004_v38 }
0x19f6   :  { %vm2009_vm10 = vcmp.eq.s32.totalorder %v3591_v56, %v2007_v41  ;;  %3079 = vmatmul.mubr.msk.f32.vlgmr.msra.gmra.mxu1 %vm41_vm0, %v2014_v40 }
0x19f7   :  { %v2931_v42 = vsel %vm2009_vm10, 1.0, %v3428_v2  ;;  %3087 = vmatpush3.xpose.msk.msra.mxu1 %vm460_vm3, %v3570_v49  ;;  %3088 = vmatprep.mubr.msk.f32.mxu1 %vm3429_vm1, %v3428_v2 }
0x19f8   :  { %v2015_v45 = vmul.f32 %v2931_v42, %v3623_v36  ;;  %3096 = vmatprep.subr.mxu1 %v3428_v2 }
0x19fa   :  { %3084 = vmatmul.mubr.msk.f32.vlgmr.msra.gmra.mxu0 %vm41_vm0, %v2015_v45 }
0x19fb   :  { %3092 = vmatpush3.xpose.msk.msra.mxu0 %vm460_vm3, %v3582_v51  ;;  %3093 = vmatprep.mubr.msk.f32.mxu0 %vm3429_vm1, %v3428_v2 }
0x19fc   :  { %3101 = vmatprep.subr.mxu0 %v3428_v2 }
0x1ab6   :  { %v2085_v50 = vpop.f32.mrf.mxu1 }
0x1ab7   :  { %3089 = vmatmul.mubr.msk.f32.vlgmr.msra.gmra.mxu1 %vm460_vm3, %v2085_v50 }
0x1ab8   :  { %3097 = vmatpush3.msra.mxu1 %v2014_v40  ;;  %v3080_v49 = vpop.f32.mrf.mxu1  ;;  %3098 = vmatprep.mubr.msk.f32.mxu1 %vm3429_vm1, %v3428_v2 }
0x1aba   :  { %v2158_v46 = vpop.f32.mrf.mxu0 }
0x1abb   :  { %3094 = vmatmul.mubr.msk.f32.vlgmr.msra.gmra.mxu0 %vm460_vm3, %v2158_v46 }
0x1abc   :  { %3102 = vmatpush3.msra.mxu0 %v2015_v45  ;;  %v3085_v47 = vpop.f32.mrf.mxu0  ;;  %3103 = vmatprep.mubr.msk.f32.mxu0 %vm3429_vm1, %v3428_v2 }
0x1b77   :  { %v2231_v51 = vpop.f32.mrf.mxu1 }
0x1b78   :  { %3099 = vmatmul.mubr.msk.f32.vlgmr.msra.gmra.mxu1 %vm41_vm0, %v2231_v51 }
0x1b79   :  { %v3090_v52 = vpop.f32.mrf.mxu1 }
0x1b7b   :  { %v2304_v53 = vpop.f32.mrf.mxu0 }
0x1b7c   :  { %3104 = vmatmul.mubr.msk.f32.vlgmr.msra.gmra.mxu0 %vm41_vm0, %v2304_v53 }
0x1b7d   :  { %v3095_v54 = vpop.f32.mrf.mxu0 }
0x1c38   :  { %v2377_v0 = vpop.f32.mrf.mxu1 }
0x1c39   :  { %v2454_v55 = vmul.f32 0.5, %v2377_v0 }
0x1c3a   :  { %v3100_v57 = vpop.f32.mrf.mxu1 }
0x1c3b   :  { %v2456_v58 = vadd.f32 %v2454_v55, %v3724_v48 }
0x1c3c   :  { %v2450_v6 = vpop.f32.mrf.mxu0 }
0x1c3d   :  { %v2458_v59 = vmul.f32 20.0, %v2456_v58  ;;  %v2455_v60 = vmul.f32 0.5, %v2450_v6 }
0x1c3e   :  { %v3105_v61 = vpop.f32.mrf.mxu0 }
0x1c3f   :  { %v2457_v62 = vadd.f32 %v2455_v60, %v3728_v44  ;;  %v2460_v1 = vadd.f32 %v2458_v59, %v3597_v63 }
0x1c41   :  { %v2459_v3 = vmul.f32 20.0, %v2457_v62  ;;  %v2462_v4 = vsel %vm41_vm0, %v2460_v1, -inf }
0x1c42   :  { %2463 = vmax.xlane.f32.xlu1 %v2462_v4 }
0x1c43   :  { %v2461_v5 = vadd.f32 %v2459_v3, %v3605_v7 }
0x1c45   :  { %v2465_v8 = vsel %vm41_vm0, %v2461_v5, -inf }
0x1c46   :  { %2466 = vmax.xlane.f32.xlu0 %v2465_v8 }
0x1ccb   :  { %v2464_v9 = vpop.xlane.xlu1 %2463 }
0x1ccc   :  { %v2468_v10 = vsub.f32 %v2460_v1, %v2464_v9 }
0x1cce   :  { %v2470_v48 = vmul.f32 1.442695, %v2468_v10 }
0x1ccf   :  { %v2467_v11 = vpop.xlane.xlu0 %2466 }
0x1cd0   :  { %3296 = vpow2.f32 %v2470_v48  ;;  %v2469_v12 = vsub.f32 %v2461_v5, %v2467_v11 }
0x1cd2   :  { %v2472_v13 = vmul.f32 1.442695, %v2469_v12 }
0x1cd4   :  { %3298 = vpow2.f32 %v2472_v13 }
0x1cdd   :  { %v3297_v44 = vpop.eup %3296 }
0x1cde   :  { %v2474_v63 = vsel %vm41_vm0, %v3297_v44, 0.0 }
0x1cdf   :  { %2475 = vadd.xlane.f32.xlu1 %v2474_v63 }
0x1ce1   :  { %v3299_v14 = vpop.eup %3298 }
0x1ce2   :  { %v2477_v15 = vsel %vm41_vm0, %v3299_v14, 0.0 }
0x1ce3   :  { %2478 = vadd.xlane.f32.xlu0 %v2477_v15 }
0x1d68   :  { %v2476_v7 = vpop.xlane.xlu1 %2475 }
0x1d69   :  { %3300 = vrcp.f32 %v2476_v7 }
0x1d6c   :  { %v2479_v16 = vpop.xlane.xlu0 %2478 }
0x1d6d   :  { %3302 = vrcp.f32 %v2479_v16 }
0x1d76   :  { %v3301_v17 = vpop.eup %3300 }
0x1d77   :  { %v2481_v18 = vmul.f32 %v3301_v17, %v3297_v44 }
0x1d79   :  { %v2484_v19 = vmul.f32 %v2481_v18, %v3621_v33 }
0x1d7a   :  { %v3303_v20 = vpop.eup %3302 }
0x1d7b   :  { %v2486_v21 = vadd.f32 %v2484_v19, %v3626_v37  ;;  %2858 = vst.msk [vmem:[#allocation2] sm:$0xff] %vm41_vm0, %v2484_v19  ;;  %v2483_v22 = vmul.f32 %v3303_v20, %v3299_v14 }
0x1d7d   :  { %v2488_v23 = vsel %vm41_vm0, %v2486_v21, 0.0  ;;  %v2485_v24 = vmul.f32 %v2483_v22, %v3623_v36 }
0x1d7e   :  { %2489 = vadd.xlane.f32.xlu1 %v2488_v23 }
0x1d7f   :  { %v2487_v25 = vadd.f32 %v2485_v24, %v3632_v43  ;;  %2859 = vst.msk [vmem:[#allocation2 + $0x8] sm:$0xff] %vm41_vm0, %v2485_v24 }
0x1d81   :  { %v2491_v26 = vsel %vm41_vm0, %v2487_v25, 0.0 }
0x1d82   :  { %2492 = vadd.xlane.f32.xlu0 %v2491_v26 }
0x1e07   :  { %v2490_v27 = vpop.xlane.xlu1 %2489 }
0x1e08   :  { %v2494_v28 = vmax.f32 %v2490_v27, 1e-09 }
0x1e0a   :  { %3304 = vrcp.f32 %v2494_v28 }
0x1e0b   :  { %v2493_v29 = vpop.xlane.xlu0 %2492 }
0x1e0c   :  { %v2495_v37 = vmax.f32 %v2493_v29, 1e-09 }
0x1e0e   :  { %3306 = vrcp.f32 %v2495_v37 }
0x1e17   :  { %v3305_v30 = vpop.eup %3304 }
0x1e18   :  { %v2498_v31 = vmul.f32 %v3305_v30, %v2486_v21 }
0x1e1a   :  { %v2500_v32 = vsel %vm41_vm0, %v2498_v31, 0.0 }
0x1e1b   :  { %v3307_v34 = vpop.eup %3306  ;;  %v2501_v35 = vrot.slane %v2500_v32, 4 }
0x1e1c   :  { %v2499_v38 = vmul.f32 %v3307_v34, %v2487_v25 }
0x1e1d   :  { %v2502_v39 = vadd.f32 %v2501_v35, %v2500_v32 }
0x1e1e   :  { %v2507_v43 = vsel %vm41_vm0, %v2499_v38, 0.0 }
0x1e1f   :  { %v2503_v40 = vrot.slane %v2502_v39, 2  ;;  %v2508_v41 = vrot.slane %v2507_v43, 4 }
0x1e21   :  { %v2504_v42 = vadd.f32 %v2503_v40, %v2502_v39  ;;  %v2509_v45 = vadd.f32 %v2508_v41, %v2507_v43 }
0x1e23   :  { %v2505_v50 = vrot.slane %v2504_v42, 1  ;;  %v2510_v49 = vrot.slane %v2509_v45, 2 }
0x1e25   :  { %v2506_v46 = vadd.f32 %v2505_v50, %v2504_v42  ;;  %v2511_v47 = vadd.f32 %v2510_v49, %v2509_v45 }
0x1e27   :  { %v2514_v51 = vmax.f32 %v2506_v46, 1e-09  ;;  %v2512_v52 = vrot.slane %v2511_v47, 1 }
0x1e29   :  { %3308 = vrcp.f32 %v2514_v51  ;;  %v2513_v53 = vadd.f32 %v2512_v52, %v2511_v47 }
0x1e2b   :  { %v2515_v54 = vmax.f32 %v2513_v53, 1e-09 }
0x1e2d   :  { %3310 = vrcp.f32 %v2515_v54 }
0x1e36   :  { %v3309_v0 = vpop.eup %3308 }
0x1e37   :  { %v2518_v55 = vmul.f32 %v3309_v0, %v2498_v31 }
0x1e39   :  { %v2520_v57 = vsel %vm41_vm0, %v2518_v55, 0.0 }
0x1e3a   :  { %v3311_v58 = vpop.eup %3310  ;;  %2521 = vadd.xlane.f32.xlu1 %v2520_v57 }
0x1e3b   :  { %v2519_v6 = vmul.f32 %v3311_v58, %v2499_v38 }
0x1e3d   :  { %v2523_v59 = vsel %vm41_vm0, %v2519_v6, 0.0 }
0x1e3e   :  { %2524 = vadd.xlane.f32.xlu0 %v2523_v59 }
0x1ec3   :  { %v2522_v60 = vpop.xlane.xlu1 %2521 }
0x1ec4   :  { %v2526_v61 = vmax.f32 %v2522_v60, 1e-09 }
0x1ec6   :  { %3312 = vrcp.f32 %v2526_v61 }
0x1ec7   :  { %v2525_v62 = vpop.xlane.xlu0 %2524 }
0x1ec8   :  { %v2527_v1 = vmax.f32 %v2525_v62, 1e-09 }
0x1eca   :  { %3314 = vrcp.f32 %v2527_v1 }
0x1ed3   :  { %v3313_v3 = vpop.eup %3312 }
0x1ed4   :  { %v2530_v4 = vmul.f32 %v3313_v3, %v2518_v55 }
0x1ed6   :  { %v2532_v5 = vsel %vm41_vm0, %v2530_v4, 0.0 }
0x1ed7   :  { %v3315_v8 = vpop.eup %3314  ;;  %v2533_v9 = vrot.slane %v2532_v5, 4 }
0x1ed8   :  { %v2531_v10 = vmul.f32 %v3315_v8, %v2519_v6 }
0x1ed9   :  { %v2534_v48 = vadd.f32 %v2533_v9, %v2532_v5 }
0x1eda   :  { %v2539_v11 = vsel %vm41_vm0, %v2531_v10, 0.0 }
0x1edb   :  { %v2535_v12 = vrot.slane %v2534_v48, 2  ;;  %v2540_v13 = vrot.slane %v2539_v11, 4 }
0x1edd   :  { %v2536_v44 = vadd.f32 %v2535_v12, %v2534_v48  ;;  %v2541_v63 = vadd.f32 %v2540_v13, %v2539_v11 }
0x1edf   :  { %v2537_v14 = vrot.slane %v2536_v44, 1  ;;  %v2542_v15 = vrot.slane %v2541_v63, 2 }
0x1ee1   :  { %v2538_v7 = vadd.f32 %v2537_v14, %v2536_v44  ;;  %v2543_v16 = vadd.f32 %v2542_v15, %v2541_v63 }
0x1ee3   :  { %v2546_v17 = vmax.f32 %v2538_v7, 1e-09  ;;  %v2544_v18 = vrot.slane %v2543_v16, 1 }
0x1ee5   :  { %3316 = vrcp.f32 %v2546_v17  ;;  %v2545_v19 = vadd.f32 %v2544_v18, %v2543_v16 }
0x1ee7   :  { %v2547_v20 = vmax.f32 %v2545_v19, 1e-09 }
0x1ee9   :  { %3318 = vrcp.f32 %v2547_v20 }
0x1ef2   :  { %v3317_v21 = vpop.eup %3316 }
0x1ef3   :  { %v2550_v22 = vmul.f32 %v3317_v21, %v2530_v4 }
0x1ef5   :  { %v2552_v23 = vsel %vm41_vm0, %v2550_v22, 0.0 }
0x1ef6   :  { %v3319_v24 = vpop.eup %3318  ;;  %2553 = vadd.xlane.f32.xlu1 %v2552_v23 }
0x1ef7   :  { %v2551_v25 = vmul.f32 %v3319_v24, %v2531_v10 }
0x1ef9   :  { %v2555_v26 = vsel %vm41_vm0, %v2551_v25, 0.0 }
0x1efa   :  { %2556 = vadd.xlane.f32.xlu0 %v2555_v26 }
0x1f7f   :  { %v2554_v27 = vpop.xlane.xlu1 %2553 }
0x1f80   :  { %v2558_v28 = vmax.f32 %v2554_v27, 1e-09 }
0x1f82   :  { %3320 = vrcp.f32 %v2558_v28 }
0x1f83   :  { %v2557_v29 = vpop.xlane.xlu0 %2556 }
0x1f84   :  { %v2559_v37 = vmax.f32 %v2557_v29, 1e-09 }
0x1f86   :  { %3322 = vrcp.f32 %v2559_v37 }
0x1f8f   :  { %v3321_v30 = vpop.eup %3320 }
0x1f90   :  { %v2562_v31 = vmul.f32 %v3321_v30, %v2550_v22 }
0x1f92   :  { %v2564_v32 = vsel %vm41_vm0, %v2562_v31, 0.0 }
0x1f93   :  { %v3323_v34 = vpop.eup %3322  ;;  %v2565_v35 = vrot.slane %v2564_v32, 4 }
0x1f94   :  { %v2563_v38 = vmul.f32 %v3323_v34, %v2551_v25 }
0x1f95   :  { %v2566_v39 = vadd.f32 %v2565_v35, %v2564_v32 }
0x1f96   :  { %v2571_v43 = vsel %vm41_vm0, %v2563_v38, 0.0 }
0x1f97   :  { %v2567_v40 = vrot.slane %v2566_v39, 2  ;;  %v2572_v41 = vrot.slane %v2571_v43, 4 }
0x1f99   :  { %v2568_v42 = vadd.f32 %v2567_v40, %v2566_v39  ;;  %v2573_v45 = vadd.f32 %v2572_v41, %v2571_v43 }
0x1f9b   :  { %v2569_v50 = vrot.slane %v2568_v42, 1  ;;  %v2574_v49 = vrot.slane %v2573_v45, 2 }
0x1f9d   :  { %v2570_v46 = vadd.f32 %v2569_v50, %v2568_v42  ;;  %v2575_v47 = vadd.f32 %v2574_v49, %v2573_v45 }
0x1f9f   :  { %v2578_v51 = vmax.f32 %v2570_v46, 1e-09  ;;  %v2576_v52 = vrot.slane %v2575_v47, 1 }
0x1fa1   :  { %3324 = vrcp.f32 %v2578_v51  ;;  %v2577_v53 = vadd.f32 %v2576_v52, %v2575_v47 }
0x1fa3   :  { %v2579_v54 = vmax.f32 %v2577_v53, 1e-09 }
0x1fa5   :  { %3326 = vrcp.f32 %v2579_v54 }
0x1fae   :  { %v3325_v0 = vpop.eup %3324 }
0x1faf   :  { %v2582_v55 = vmul.f32 %v3325_v0, %v2562_v31 }
0x1fb1   :  { %v2584_v57 = vsel %vm41_vm0, %v2582_v55, 0.0 }
0x1fb2   :  { %v3327_v58 = vpop.eup %3326  ;;  %2585 = vadd.xlane.f32.xlu1 %v2584_v57 }
0x1fb3   :  { %v2583_v6 = vmul.f32 %v3327_v58, %v2563_v38 }
0x1fb5   :  { %v2587_v59 = vsel %vm41_vm0, %v2583_v6, 0.0 }
0x1fb6   :  { %2588 = vadd.xlane.f32.xlu0 %v2587_v59 }
0x203b   :  { %v2586_v60 = vpop.xlane.xlu1 %2585 }
0x203c   :  { %v2590_v61 = vmax.f32 %v2586_v60, 1e-09 }
0x203e   :  { %3328 = vrcp.f32 %v2590_v61 }
0x203f   :  { %v2589_v62 = vpop.xlane.xlu0 %2588 }
0x2040   :  { %v2591_v1 = vmax.f32 %v2589_v62, 1e-09 }
0x2042   :  { %3330 = vrcp.f32 %v2591_v1 }
0x204b   :  { %v3329_v3 = vpop.eup %3328 }
0x204c   :  { %v2594_v4 = vmul.f32 %v3329_v3, %v2582_v55 }
0x204e   :  { %v2596_v5 = vsel %vm41_vm0, %v2594_v4, 0.0 }
0x204f   :  { %v3331_v8 = vpop.eup %3330  ;;  %v2597_v9 = vrot.slane %v2596_v5, 4 }
0x2050   :  { %v2595_v10 = vmul.f32 %v3331_v8, %v2583_v6 }
0x2051   :  { %v2598_v48 = vadd.f32 %v2597_v9, %v2596_v5 }
0x2052   :  { %v2603_v11 = vsel %vm41_vm0, %v2595_v10, 0.0 }
0x2053   :  { %v2599_v12 = vrot.slane %v2598_v48, 2  ;;  %v2604_v13 = vrot.slane %v2603_v11, 4 }
0x2055   :  { %v2600_v44 = vadd.f32 %v2599_v12, %v2598_v48  ;;  %v2605_v63 = vadd.f32 %v2604_v13, %v2603_v11 }
0x2057   :  { %v2601_v14 = vrot.slane %v2600_v44, 1  ;;  %v2606_v15 = vrot.slane %v2605_v63, 2 }
0x2059   :  { %v2602_v7 = vadd.f32 %v2601_v14, %v2600_v44  ;;  %v2607_v16 = vadd.f32 %v2606_v15, %v2605_v63 }
0x205b   :  { %v2610_v17 = vmax.f32 %v2602_v7, 1e-09  ;;  %v2608_v18 = vrot.slane %v2607_v16, 1 }
0x205d   :  { %3332 = vrcp.f32 %v2610_v17  ;;  %v2609_v19 = vadd.f32 %v2608_v18, %v2607_v16 }
0x205f   :  { %v2611_v20 = vmax.f32 %v2609_v19, 1e-09 }
0x2061   :  { %3334 = vrcp.f32 %v2611_v20 }
0x206a   :  { %v3333_v21 = vpop.eup %3332 }
0x206b   :  { %v2614_v22 = vmul.f32 %v3333_v21, %v2594_v4 }
0x206d   :  { %v2616_v23 = vsel %vm41_vm0, %v2614_v22, 0.0 }
0x206e   :  { %v3335_v24 = vpop.eup %3334  ;;  %2617 = vadd.xlane.f32.xlu1 %v2616_v23 }
0x206f   :  { %v2615_v25 = vmul.f32 %v3335_v24, %v2595_v10 }
0x2071   :  { %v2619_v26 = vsel %vm41_vm0, %v2615_v25, 0.0 }
0x2072   :  { %2620 = vadd.xlane.f32.xlu0 %v2619_v26 }
0x20f7   :  { %v2618_v27 = vpop.xlane.xlu1 %2617 }
0x20f8   :  { %v2622_v28 = vmax.f32 %v2618_v27, 1e-09 }
0x20fa   :  { %3336 = vrcp.f32 %v2622_v28 }
0x20fb   :  { %v2621_v29 = vpop.xlane.xlu0 %2620 }
0x20fc   :  { %v2623_v37 = vmax.f32 %v2621_v29, 1e-09 }
0x20fe   :  { %3338 = vrcp.f32 %v2623_v37 }
0x2107   :  { %v3337_v30 = vpop.eup %3336 }
0x2108   :  { %v2626_v31 = vmul.f32 %v3337_v30, %v2614_v22 }
0x210a   :  { %v2628_v32 = vsel %vm41_vm0, %v2626_v31, 0.0 }
0x210b   :  { %v3339_v34 = vpop.eup %3338  ;;  %v2629_v35 = vrot.slane %v2628_v32, 4 }
0x210c   :  { %v2627_v38 = vmul.f32 %v3339_v34, %v2615_v25 }
0x210d   :  { %v2630_v39 = vadd.f32 %v2629_v35, %v2628_v32 }
0x210e   :  { %v2635_v43 = vsel %vm41_vm0, %v2627_v38, 0.0 }
0x210f   :  { %v2631_v40 = vrot.slane %v2630_v39, 2  ;;  %v2636_v41 = vrot.slane %v2635_v43, 4 }
0x2111   :  { %v2632_v42 = vadd.f32 %v2631_v40, %v2630_v39  ;;  %v2637_v45 = vadd.f32 %v2636_v41, %v2635_v43 }
0x2113   :  { %v2633_v50 = vrot.slane %v2632_v42, 1  ;;  %v2638_v49 = vrot.slane %v2637_v45, 2 }
0x2115   :  { %v2634_v46 = vadd.f32 %v2633_v50, %v2632_v42  ;;  %v2639_v47 = vadd.f32 %v2638_v49, %v2637_v45 }
0x2117   :  { %v2642_v51 = vmax.f32 %v2634_v46, 1e-09  ;;  %v2640_v52 = vrot.slane %v2639_v47, 1 }
0x2119   :  { %3340 = vrcp.f32 %v2642_v51  ;;  %v2641_v53 = vadd.f32 %v2640_v52, %v2639_v47 }
0x211b   :  { %v2643_v54 = vmax.f32 %v2641_v53, 1e-09 }
0x211d   :  { %3342 = vrcp.f32 %v2643_v54 }
0x2126   :  { %v3341_v0 = vpop.eup %3340 }
0x2127   :  { %v2646_v55 = vmul.f32 %v3341_v0, %v2626_v31 }
0x2129   :  { %v2648_v57 = vsel %vm41_vm0, %v2646_v55, 0.0 }
0x212a   :  { %v3343_v58 = vpop.eup %3342  ;;  %2649 = vadd.xlane.f32.xlu1 %v2648_v57 }
0x212b   :  { %v2647_v6 = vmul.f32 %v3343_v58, %v2627_v38 }
0x212d   :  { %v2651_v59 = vsel %vm41_vm0, %v2647_v6, 0.0 }
0x212e   :  { %2652 = vadd.xlane.f32.xlu0 %v2651_v59 }
0x21b3   :  { %v2650_v60 = vpop.xlane.xlu1 %2649 }
0x21b4   :  { %v2654_v61 = vmax.f32 %v2650_v60, 1e-09 }
0x21b6   :  { %3344 = vrcp.f32 %v2654_v61 }
0x21b7   :  { %v2653_v62 = vpop.xlane.xlu0 %2652 }
0x21b8   :  { %v2655_v1 = vmax.f32 %v2653_v62, 1e-09 }
0x21ba   :  { %3346 = vrcp.f32 %v2655_v1 }
0x21c3   :  { %v3345_v3 = vpop.eup %3344 }
0x21c4   :  { %v2658_v4 = vmul.f32 %v3345_v3, %v2646_v55 }
0x21c6   :  { %v2660_v5 = vsel %vm41_vm0, %v2658_v4, 0.0 }
0x21c7   :  { %v3347_v8 = vpop.eup %3346  ;;  %v2661_v9 = vrot.slane %v2660_v5, 4 }
0x21c8   :  { %v2659_v10 = vmul.f32 %v3347_v8, %v2647_v6 }
0x21c9   :  { %v2662_v48 = vadd.f32 %v2661_v9, %v2660_v5 }
0x21ca   :  { %v2667_v11 = vsel %vm41_vm0, %v2659_v10, 0.0 }
0x21cb   :  { %v2663_v12 = vrot.slane %v2662_v48, 2  ;;  %v2668_v13 = vrot.slane %v2667_v11, 4 }
0x21cd   :  { %v2664_v44 = vadd.f32 %v2663_v12, %v2662_v48  ;;  %v2669_v63 = vadd.f32 %v2668_v13, %v2667_v11 }
0x21cf   :  { %v2665_v14 = vrot.slane %v2664_v44, 1  ;;  %v2670_v15 = vrot.slane %v2669_v63, 2 }
0x21d1   :  { %v2666_v7 = vadd.f32 %v2665_v14, %v2664_v44  ;;  %v2671_v16 = vadd.f32 %v2670_v15, %v2669_v63 }
0x21d3   :  { %v2674_v17 = vmax.f32 %v2666_v7, 1e-09  ;;  %v2672_v18 = vrot.slane %v2671_v16, 1 }
0x21d5   :  { %3348 = vrcp.f32 %v2674_v17  ;;  %v2673_v19 = vadd.f32 %v2672_v18, %v2671_v16 }
0x21d7   :  { %v2675_v20 = vmax.f32 %v2673_v19, 1e-09 }
0x21d9   :  { %3350 = vrcp.f32 %v2675_v20 }
0x21e2   :  { %v3349_v21 = vpop.eup %3348 }
0x21e3   :  { %v2678_v22 = vmul.f32 %v3349_v21, %v2658_v4 }
0x21e5   :  { %v2680_v23 = vsel %vm41_vm0, %v2678_v22, 0.0 }
0x21e6   :  { %v3351_v24 = vpop.eup %3350  ;;  %2681 = vadd.xlane.f32.xlu1 %v2680_v23 }
0x21e7   :  { %v2679_v25 = vmul.f32 %v3351_v24, %v2659_v10 }
0x21e9   :  { %v2683_v26 = vsel %vm41_vm0, %v2679_v25, 0.0 }
0x21ea   :  { %2684 = vadd.xlane.f32.xlu0 %v2683_v26 }
0x226f   :  { %v2682_v27 = vpop.xlane.xlu1 %2681 }
0x2270   :  { %v2686_v28 = vmax.f32 %v2682_v27, 1e-09 }
0x2272   :  { %3352 = vrcp.f32 %v2686_v28 }
0x2273   :  { %v2685_v29 = vpop.xlane.xlu0 %2684 }
0x2274   :  { %v2687_v37 = vmax.f32 %v2685_v29, 1e-09 }
0x2276   :  { %3354 = vrcp.f32 %v2687_v37 }
0x227f   :  { %v3353_v30 = vpop.eup %3352 }
0x2280   :  { %v2690_v31 = vmul.f32 %v3353_v30, %v2678_v22 }
0x2282   :  { %v2692_v32 = vsel %vm41_vm0, %v2690_v31, 0.0 }
0x2283   :  { %v3355_v34 = vpop.eup %3354  ;;  %v2693_v35 = vrot.slane %v2692_v32, 4 }
0x2284   :  { %v2691_v38 = vmul.f32 %v3355_v34, %v2679_v25 }
0x2285   :  { %v2694_v39 = vadd.f32 %v2693_v35, %v2692_v32 }
0x2286   :  { %v2699_v43 = vsel %vm41_vm0, %v2691_v38, 0.0 }
0x2287   :  { %v2695_v40 = vrot.slane %v2694_v39, 2  ;;  %v2700_v41 = vrot.slane %v2699_v43, 4 }
0x2289   :  { %v2696_v42 = vadd.f32 %v2695_v40, %v2694_v39  ;;  %v2701_v45 = vadd.f32 %v2700_v41, %v2699_v43 }
0x228b   :  { %v2697_v50 = vrot.slane %v2696_v42, 1  ;;  %v2702_v49 = vrot.slane %v2701_v45, 2 }
0x228d   :  { %v2698_v46 = vadd.f32 %v2697_v50, %v2696_v42  ;;  %v2703_v47 = vadd.f32 %v2702_v49, %v2701_v45 }
0x228f   :  { %v2706_v51 = vmax.f32 %v2698_v46, 1e-09  ;;  %v2704_v52 = vrot.slane %v2703_v47, 1 }
0x2291   :  { %3356 = vrcp.f32 %v2706_v51  ;;  %v2705_v53 = vadd.f32 %v2704_v52, %v2703_v47 }
0x2293   :  { %v2707_v54 = vmax.f32 %v2705_v53, 1e-09 }
0x2295   :  { %3358 = vrcp.f32 %v2707_v54 }
0x229e   :  { %v3357_v0 = vpop.eup %3356 }
0x229f   :  { %v2710_v55 = vmul.f32 %v3357_v0, %v2690_v31 }
0x22a1   :  { %v2712_v57 = vsel %vm41_vm0, %v2710_v55, 0.0 }
0x22a2   :  { %v3359_v58 = vpop.eup %3358  ;;  %2713 = vadd.xlane.f32.xlu1 %v2712_v57 }
0x22a3   :  { %v2711_v6 = vmul.f32 %v3359_v58, %v2691_v38 }
0x22a5   :  { %v2715_v59 = vsel %vm41_vm0, %v2711_v6, 0.0 }
0x22a6   :  { %2716 = vadd.xlane.f32.xlu0 %v2715_v59 }
0x232b   :  { %v2714_v60 = vpop.xlane.xlu1 %2713 }
0x232c   :  { %v2718_v61 = vmax.f32 %v2714_v60, 1e-09 }
0x232e   :  { %3360 = vrcp.f32 %v2718_v61 }
0x232f   :  { %v2717_v62 = vpop.xlane.xlu0 %2716 }
0x2330   :  { %v2719_v1 = vmax.f32 %v2717_v62, 1e-09 }
0x2332   :  { %3362 = vrcp.f32 %v2719_v1 }
0x233b   :  { %v3361_v3 = vpop.eup %3360 }
0x233c   :  { %v2722_v4 = vmul.f32 %v3361_v3, %v2710_v55 }
0x233e   :  { %v2724_v5 = vsel %vm41_vm0, %v2722_v4, 0.0 }
0x233f   :  { %v3363_v8 = vpop.eup %3362  ;;  %v2725_v9 = vrot.slane %v2724_v5, 4 }
0x2340   :  { %v2723_v10 = vmul.f32 %v3363_v8, %v2711_v6 }
0x2341   :  { %v2726_v48 = vadd.f32 %v2725_v9, %v2724_v5 }
0x2342   :  { %v2731_v11 = vsel %vm41_vm0, %v2723_v10, 0.0 }
0x2343   :  { %v2727_v12 = vrot.slane %v2726_v48, 2  ;;  %v2732_v13 = vrot.slane %v2731_v11, 4 }
0x2345   :  { %v2728_v44 = vadd.f32 %v2727_v12, %v2726_v48  ;;  %v2733_v63 = vadd.f32 %v2732_v13, %v2731_v11 }
0x2347   :  { %v2729_v14 = vrot.slane %v2728_v44, 1  ;;  %v2734_v15 = vrot.slane %v2733_v63, 2 }
0x2349   :  { %v2730_v7 = vadd.f32 %v2729_v14, %v2728_v44  ;;  %v2735_v16 = vadd.f32 %v2734_v15, %v2733_v63 }
0x234b   :  { %v2738_v17 = vmax.f32 %v2730_v7, 1e-09  ;;  %v2736_v18 = vrot.slane %v2735_v16, 1 }
0x234d   :  { %3364 = vrcp.f32 %v2738_v17  ;;  %v2737_v19 = vadd.f32 %v2736_v18, %v2735_v16 }
0x234f   :  { %v2739_v20 = vmax.f32 %v2737_v19, 1e-09 }
0x2351   :  { %3366 = vrcp.f32 %v2739_v20 }
0x235a   :  { %v3365_v21 = vpop.eup %3364 }
0x235b   :  { %v2742_v22 = vmul.f32 %v3365_v21, %v2722_v4 }
0x235d   :  { %v2744_v23 = vsel %vm41_vm0, %v2742_v22, 0.0 }
0x235e   :  { %v3367_v24 = vpop.eup %3366  ;;  %2745 = vadd.xlane.f32.xlu1 %v2744_v23 }
0x235f   :  { %v2743_v25 = vmul.f32 %v3367_v24, %v2723_v10 }
0x2361   :  { %v2747_v26 = vsel %vm41_vm0, %v2743_v25, 0.0 }
0x2362   :  { %2748 = vadd.xlane.f32.xlu0 %v2747_v26 }
0x23e7   :  { %v2746_v27 = vpop.xlane.xlu1 %2745 }
0x23e8   :  { %v2750_v28 = vmax.f32 %v2746_v27, 1e-09 }
0x23ea   :  { %3368 = vrcp.f32 %v2750_v28 }
0x23eb   :  { %v2749_v29 = vpop.xlane.xlu0 %2748 }
0x23ec   :  { %v2751_v37 = vmax.f32 %v2749_v29, 1e-09 }
0x23ee   :  { %3370 = vrcp.f32 %v2751_v37 }
0x23f7   :  { %v3369_v30 = vpop.eup %3368 }
0x23f8   :  { %v2754_v31 = vmul.f32 %v3369_v30, %v2742_v22 }
0x23fa   :  { %v2756_v32 = vsel %vm41_vm0, %v2754_v31, 0.0 }
0x23fb   :  { %v3371_v34 = vpop.eup %3370  ;;  %v2757_v35 = vrot.slane %v2756_v32, 4 }
0x23fc   :  { %v2755_v38 = vmul.f32 %v3371_v34, %v2743_v25 }
0x23fd   :  { %v2758_v39 = vadd.f32 %v2757_v35, %v2756_v32 }
0x23fe   :  { %v2763_v43 = vsel %vm41_vm0, %v2755_v38, 0.0 }
0x23ff   :  { %v2759_v40 = vrot.slane %v2758_v39, 2  ;;  %v2764_v41 = vrot.slane %v2763_v43, 4 }
0x2401   :  { %v2760_v42 = vadd.f32 %v2759_v40, %v2758_v39  ;;  %v2765_v45 = vadd.f32 %v2764_v41, %v2763_v43 }
0x2403   :  { %v2761_v50 = vrot.slane %v2760_v42, 1  ;;  %v2766_v49 = vrot.slane %v2765_v45, 2 }
0x2405   :  { %v2762_v46 = vadd.f32 %v2761_v50, %v2760_v42  ;;  %v2767_v47 = vadd.f32 %v2766_v49, %v2765_v45 }
0x2407   :  { %v2770_v51 = vmax.f32 %v2762_v46, 1e-09  ;;  %v2768_v52 = vrot.slane %v2767_v47, 1 }
0x2409   :  { %3372 = vrcp.f32 %v2770_v51  ;;  %v2769_v53 = vadd.f32 %v2768_v52, %v2767_v47 }
0x240b   :  { %v2771_v54 = vmax.f32 %v2769_v53, 1e-09 }
0x240d   :  { %3374 = vrcp.f32 %v2771_v54 }
0x2416   :  { %v3373_v0 = vpop.eup %3372 }
0x2417   :  { %v2774_v55 = vmul.f32 %v3373_v0, %v2754_v31 }
0x2419   :  { %v2776_v57 = vsel %vm41_vm0, %v2774_v55, 0.0 }
0x241a   :  { %v3375_v58 = vpop.eup %3374  ;;  %2777 = vadd.xlane.f32.xlu1 %v2776_v57 }
0x241b   :  { %v2775_v6 = vmul.f32 %v3375_v58, %v2755_v38 }
0x241d   :  { %v2779_v59 = vsel %vm41_vm0, %v2775_v6, 0.0 }
0x241e   :  { %2780 = vadd.xlane.f32.xlu0 %v2779_v59 }
0x24a3   :  { %v2778_v60 = vpop.xlane.xlu1 %2777 }
0x24a4   :  { %v2782_v61 = vmax.f32 %v2778_v60, 1e-09 }
0x24a6   :  { %3376 = vrcp.f32 %v2782_v61 }
0x24a7   :  { %v2781_v62 = vpop.xlane.xlu0 %2780 }
0x24a8   :  { %v2783_v1 = vmax.f32 %v2781_v62, 1e-09 }
0x24aa   :  { %3378 = vrcp.f32 %v2783_v1 }
0x24b3   :  { %v3377_v3 = vpop.eup %3376 }
0x24b4   :  { %v2786_v4 = vmul.f32 %v3377_v3, %v2774_v55 }
0x24b6   :  { %v2788_v5 = vsel %vm41_vm0, %v2786_v4, 0.0 }
0x24b7   :  { %v3379_v8 = vpop.eup %3378  ;;  %v2789_v9 = vrot.slane %v2788_v5, 4 }
0x24b8   :  { %v2787_v10 = vmul.f32 %v3379_v8, %v2775_v6 }
0x24b9   :  { %v2790_v48 = vadd.f32 %v2789_v9, %v2788_v5 }
0x24ba   :  { %v2795_v11 = vsel %vm41_vm0, %v2787_v10, 0.0 }
0x24bb   :  { %v2791_v12 = vrot.slane %v2790_v48, 2  ;;  %v2796_v13 = vrot.slane %v2795_v11, 4 }
0x24bd   :  { %v2792_v44 = vadd.f32 %v2791_v12, %v2790_v48  ;;  %v2797_v63 = vadd.f32 %v2796_v13, %v2795_v11 }
0x24bf   :  { %v2793_v14 = vrot.slane %v2792_v44, 1  ;;  %v2798_v15 = vrot.slane %v2797_v63, 2 }
0x24c1   :  { %v2794_v7 = vadd.f32 %v2793_v14, %v2792_v44  ;;  %v2799_v16 = vadd.f32 %v2798_v15, %v2797_v63 }
0x24c3   :  { %v2802_v17 = vmax.f32 %v2794_v7, 1e-09  ;;  %v2800_v18 = vrot.slane %v2799_v16, 1 }
0x24c5   :  { %3380 = vrcp.f32 %v2802_v17  ;;  %v2801_v19 = vadd.f32 %v2800_v18, %v2799_v16 }
0x24c7   :  { %v2803_v20 = vmax.f32 %v2801_v19, 1e-09 }
0x24c9   :  { %3382 = vrcp.f32 %v2803_v20 }
0x24d2   :  { %v3381_v21 = vpop.eup %3380 }
0x24d3   :  { %v2806_v22 = vmul.f32 %v3381_v21, %v2786_v4 }
0x24d5   :  { %v2808_v23 = vsel %vm1120_vm8, %v2806_v22, -1e+30 }
0x24d6   :  { %v3383_v24 = vpop.eup %3382  ;;  %v2810_v25 = vsel %vm41_vm0, %v2808_v23, -inf }
0x24d7   :  { %2811 = vmax.xlane.f32.xlu1 %v2810_v25  ;;  %v2807_v26 = vmul.f32 %v3383_v24, %v2787_v10 }
0x24d9   :  { %v2809_v27 = vsel %vm1121_vm9, %v2807_v26, -1e+30 }
0x24da   :  { %v2813_v28 = vsel %vm41_vm0, %v2809_v27, -inf }
0x24db   :  { %2814 = vmax.xlane.f32.xlu0 %v2813_v28 }
0x2560   :  { %v2812_v29 = vpop.xlane.xlu1 %2811 }
0x2561   :  { %vm2816_vm1 = vcmp.ge.f32.partialorder %v2808_v23, %v2812_v29 }
0x2562   :  { %v2818_v37 = vsel %vm2816_vm1, %v3591_v56, 8 }
0x2563   :  { %v2820_v30 = vsel %vm41_vm0, %v2818_v37, 2147483647 }
0x2564   :  { %v2815_v31 = vpop.xlane.xlu0 %2814  ;;  %v2822_v32 = vshra.s32 %v2820_v30, 16  ;;  %v2821_v40 = vand.u32 65535, %v2820_v30 }
0x2565   :  { %vm2817_vm3 = vcmp.ge.f32.partialorder %v2809_v27, %v2815_v31 }
0x2566   :  { %v2819_v34 = vsel %vm2817_vm3, %v3591_v56, 8  ;;  %v2824_v35 = vcvt.s32.f32 %v2822_v32  ;;  %v2823_v42 = vcvt.s32.f32 %v2821_v40 }
0x2567   :  { %v2835_v38 = vsel %vm41_vm0, %v2819_v34, 2147483647 }
0x2568   :  { %2825 = vmin.xlane.f32.xlu1 %v2824_v35  ;;  %v2837_v39 = vshra.s32 %v2835_v38, 16  ;;  %v2836_v45 = vand.u32 65535, %v2835_v38 }
0x256a   :  { %v2839_v43 = vcvt.s32.f32 %v2837_v39  ;;  %v2838_v46 = vcvt.s32.f32 %v2836_v45 }
0x256c   :  { %2840 = vmin.xlane.f32.xlu0 %v2839_v43 }
0x25f1   :  { %v2826_v41 = vpop.xlane.xlu1 %2825 }
0x25f2   :  { %vm2827_vm8 = vcmp.eq.f32.partialorder %v2824_v35, %v2826_v41 }
0x25f3   :  { %v2828_v50 = vsel %vm2827_vm8, %v2823_v42, inf }
0x25f4   :  { %2829 = vmin.xlane.f32.xlu1 %v2828_v50 }
0x25f5   :  { %v2841_v49 = vpop.xlane.xlu0 %2840 }
0x25f6   :  { %vm2842_vm9 = vcmp.eq.f32.partialorder %v2839_v43, %v2841_v49 }
0x25f7   :  { %v2843_v47 = vsel %vm2842_vm9, %v2838_v46, inf }
0x25f8   :  { %2844 = vmin.xlane.f32.xlu0 %v2843_v47 }
0x25f9   :  { %3395 = shalt.err (!%p3392_p4)
}
0x25fa   :  { %s3432_s23 = smov 128   ;;  %s3433_s24 = smov 8   ;;  %v2832_v51 = vcvt.f32.s32 %v2826_v41  ;;  %v2847_v54 = vcvt.f32.s32 %v2841_v49 }
0x25fb   :  { %2873 = dma.vmem_to_hbm [thread:$0]  %s2868_s21, 256, %s3909_s8, [#allocation3], %s3432_s23, %s3432_s23, %s3433_s24  }
0x25fc   :  { %v2833_v53 = vshll.u32 %v2832_v51, 16  ;;  %v2848_v58 = vshll.u32 %v2847_v54, 16  ;;  %s3434_s26 = smov [#allocation4]  }
0x25fd   :  { %s2879_s1 = sshll.u32 %s3434_s26, 4  ;;  %s2880_s1 = int_to_ptr.vmem [resolvable:$true] %s2879_s1 }
0x25fe   :  { %s3404_s8 = scalar_lea.vmem %s2880_s1, 256  ;;  %p3409_p6 = scmp.lt.s32.totalorder %s2880_s1, %s2880_s1 }
0x25ff   :  { %p3405_p5 = scmp.ne.s32.totalorder %s2880_s1, %s3404_s8  ;;  %p3410_p7 = scmp.lt.s32.totalorder %s3404_s8, %s3404_s8 }
0x2601   :  { %p3411_p8 = por %p3410_p7, %p3409_p6 }
0x2603   :  { %p3412_p9 = pnand %p3411_p8, %p3405_p5 }
0x267d   :  { %v2830_v52 = vpop.xlane.xlu1 %2829 }
0x267e   :  { %v2831_v0 = vcvt.f32.s32 %v2830_v52 }
0x2680   :  { %v2834_v55 = vadd.s32 %v2833_v53, %v2831_v0 }
0x2681   :  { %v2845_v57 = vpop.xlane.xlu0 %2844 }
0x2682   :  { %vm2850_vm11 = vcmp.eq.s32.totalorder %v3591_v56, %v2834_v55  ;;  %v2846_v6 = vcvt.f32.s32 %v2845_v57 }
0x2683   :  { %v2940_v59 = vsel %vm2850_vm11, 1.0, %v3428_v2 }
0x2684   :  { %v2856_v60 = vmul.f32 %v2940_v59, %v3621_v33  ;;  %v2849_v61 = vadd.s32 %v2848_v58, %v2846_v6 }
0x2686   :  { %2860 = vst.msk [vmem:[#allocation4] sm:$0xff] %vm41_vm0, %v2856_v60  ;;  %vm2851_vm12 = vcmp.eq.s32.totalorder %v3591_v56, %v2849_v61 }
0x2687   :  { %v2941_v62 = vsel %vm2851_vm12, 1.0, %v3428_v2 }
0x2688   :  { %v2857_v1 = vmul.f32 %v2941_v62, %v3623_v36 }
0x268a   :  { %2861 = vst.msk [vmem:[#allocation4 + $0x8] sm:$0xff] %vm41_vm0, %v2857_v1 }
0x268b   :  { %3415 = shalt.err (!%p3412_p9)
}
0x268c   :  { %2885 = dma.vmem_to_hbm [thread:$0]  %s2880_s1, 256, %s3910_s9, [#allocation5], %s3432_s23, %s3432_s23, %s3433_s24  }
0x268d   :  { %3424 = dma.done.wait [#allocation3], 256  }
0x268e   :  { %3425 = vsyncadd [#allocation3], 4294967040 }
0x268f   :  { %3426 = dma.done.wait [#allocation5], 256  }
0x2690   :  { %3427 = vsyncadd [#allocation5], 4294967040 }
0x2691   :  { %2892 = vsyncpa [#allocation3], 1 }
0x2692   :  { %2893 = vsyncpa [#allocation5], 1 }

</bundles_post_ra>
